<compile_context>
chip_gen: v5e
topology: v5e:2x2
jax: 0.10.0
libtpu: 0.0.40
codegen_flags: <defaults>
</compile_context>

<pallas_src>
import functools

import jax
import jax.numpy as jnp
from jax.experimental import pallas as pl
from jax.experimental.pallas import tpu as pltpu


def _round_up(x, m):
    return ((x + m - 1) // m) * m


# ---------------------------------------------------------------------------
# Fused matmul + bias + activation kernel (used for every conv layer)
# ---------------------------------------------------------------------------
def _matmul_bias_act_kernel(x_ref, w_ref, b_ref, o_ref, *, act):
    y = jnp.dot(x_ref[...], w_ref[...], preferred_element_type=jnp.float32)
    y = y + b_ref[...]
    if act == "relu":
        y = jnp.maximum(y, 0.0)
    elif act == "sigmoid":
        y = jax.nn.sigmoid(y)
    o_ref[...] = y.astype(o_ref.dtype)


def fused_matmul_bias_act(x, w, bias, *, act="relu",
                          out_dtype=jnp.bfloat16, tm_cap=512):
    """act(x @ w + bias).  x:(M,K), w:(K,N), bias:(N,).

    M is tiled (grid axis marked "parallel"); w/bias stay VMEM-resident.
    Inputs go through the MXU in bf16 with an f32 accumulator.
    """
    M, K = x.shape
    N = w.shape[1]

    # Tile M; pad to a multiple of the tile (rows are independent).
    tm = min(tm_cap, _round_up(M, 16))
    m_pad = _round_up(M, tm)
    if m_pad != M:
        x = jnp.pad(x, ((0, m_pad - M), (0, 0)))

    xb = x.astype(jnp.bfloat16)
    wb = w.astype(jnp.bfloat16)
    bias2 = bias.reshape(1, N).astype(jnp.float32)

    out_bytes = jnp.dtype(out_dtype).itemsize
    cost = pl.CostEstimate(
        flops=2 * m_pad * K * N,
        transcendentals=0,
        bytes_accessed=m_pad * K * 2 + K * N * 2 + N * 4 + m_pad * N * out_bytes,
    )

    out = pl.pallas_call(
        functools.partial(_matmul_bias_act_kernel, act=act),
        out_shape=jax.ShapeDtypeStruct((m_pad, N), out_dtype),
        grid=(m_pad // tm,),
        in_specs=[
            pl.BlockSpec((tm, K), lambda i: (i, 0)),   # streamed row tiles
            pl.BlockSpec((K, N), lambda i: (0, 0)),    # resident weights
            pl.BlockSpec((1, N), lambda i: (0, 0)),    # resident bias
        ],
        out_specs=pl.BlockSpec((tm, N), lambda i: (i, 0)),
        compiler_params=pltpu.CompilerParams(
            dimension_semantics=("parallel",),
            vmem_limit_bytes=32 * 1024 * 1024,
        ),
        cost_estimate=cost,
    )(xb, wb, bias2)

    return out[:M] if m_pad != M else out


# ---------------------------------------------------------------------------
# Fused head kernel: adaptive-avg-pool(1,1) + fc1+ReLU + fc2+Sigmoid
# (Dropout layers are identity at inference time.)
# ---------------------------------------------------------------------------
def _head_kernel(feat_ref, w1_ref, b1_ref, w2_ref, b2_ref, o_ref):
    pooled = jnp.mean(feat_ref[...].astype(jnp.float32), axis=1)      # (B, C)
    h1 = jnp.dot(pooled, w1_ref[...], preferred_element_type=jnp.float32)
    h1 = jnp.maximum(h1 + b1_ref[...], 0.0)
    h2 = jnp.dot(h1, w2_ref[...], preferred_element_type=jnp.float32)
    o_ref[...] = jax.nn.sigmoid(h2 + b2_ref[...])


def head_pool_fc(feat, w1, b1, w2, b2):
    """feat: (B, S, C) -> (B, n_out).  Pool over S, then fc1+ReLU, fc2+Sigmoid."""
    B, S, C = feat.shape
    N1 = w1.shape[1]
    n_out = w2.shape[1]
    n_pad = _round_up(max(n_out, 128), 128)            # lane-dense output

    w2p = jnp.pad(w2, ((0, 0), (0, n_pad - n_out))).astype(jnp.float32)
    b2p = jnp.pad(b2, (0, n_pad - n_out)).reshape(1, n_pad).astype(jnp.float32)

    out = pl.pallas_call(
        _head_kernel,
        out_shape=jax.ShapeDtypeStruct((B, n_pad), jnp.float32),
        grid=(1,),
        in_specs=[
            pl.BlockSpec((B, S, C), lambda i: (0, 0, 0)),
            pl.BlockSpec((C, N1), lambda i: (0, 0)),
            pl.BlockSpec((1, N1), lambda i: (0, 0)),
            pl.BlockSpec((N1, n_pad), lambda i: (0, 0)),
            pl.BlockSpec((1, n_pad), lambda i: (0, 0)),
        ],
        out_specs=pl.BlockSpec((B, n_pad), lambda i: (0, 0)),
        compiler_params=pltpu.CompilerParams(
            dimension_semantics=("arbitrary",),
            vmem_limit_bytes=32 * 1024 * 1024,
        ),
    )(feat, w1.astype(jnp.float32), b1.reshape(1, N1).astype(jnp.float32),
      w2p, b2p)

    return out[:, :n_out]


# ---------------------------------------------------------------------------
# JAX glue: NHWC im2col for Conv2d(kernel=5, stride=2, padding=2)
# Column order is (kh, kw, c) to match the weight flattening used below.
# ---------------------------------------------------------------------------
def im2col_nhwc(x, k=5, stride=2, pad=2):
    B, H, W, C = x.shape
    OH = (H + 2 * pad - k) // stride + 1
    OW = (W + 2 * pad - k) // stride + 1
    xp = jnp.pad(x, ((0, 0), (pad, pad), (pad, pad), (0, 0)))
    cols = []
    for kh in range(k):
        for kw in range(k):
            cols.append(
                xp[:, kh:kh + stride * OH:stride, kw:kw + stride * OW:stride, :]
            )
    patches = jnp.concatenate(cols, axis=-1)           # (B, OH, OW, k*k*C)
    return patches.reshape(B * OH * OW, k * k * C), OH, OW


# ---------------------------------------------------------------------------
# Deterministic synthetic parameters (same shapes as the PyTorch module)
# ---------------------------------------------------------------------------
def init_params(key):
    conv_channels = [(1, 32), (32, 64), (64, 128), (128, 256)]
    eps = 1e-5
    keys = jax.random.split(key, 6 * len(conv_channels) + 4)
    params = {"convs": []}
    ki = 0
    for cin, cout in conv_channels:
        kk = cin * 25
        # Conv weight stored as (kh*5*Cin + kw*Cin + cin, cout), i.e. the
        # (kh, kw, cin) flattening that matches im2col_nhwc's column order.
        # (A real PyTorch checkpoint (Cout,Cin,5,5) would need
        #  w.transpose(2,3,1,0).reshape(25*Cin, Cout).)
        w = jax.random.normal(keys[ki], (kk, cout), jnp.float32) * 0.05
        b = jax.random.normal(keys[ki + 1], (cout,), jnp.float32) * 0.05
        gamma = 1.0 + 0.1 * jax.random.normal(keys[ki + 2], (cout,), jnp.float32)
        beta = 0.1 * jax.random.normal(keys[ki + 3], (cout,), jnp.float32)
        mean = 0.1 * jax.random.normal(keys[ki + 4], (cout,), jnp.float32)
        var = jnp.abs(0.1 * jax.random.normal(keys[ki + 5], (cout,),
                                              jnp.float32)) + 1.0
        ki += 6
        # Fold conv bias + BatchNorm (eval) into the weight / bias:
        #   y = ((x@w + b) - mean) * gamma/sqrt(var+eps) + beta
        #     = x @ (w * s) + ((b - mean) * s + beta)
        bn_scale = gamma / jnp.sqrt(var + eps)
        w_eff = w * bn_scale[None, :]
        eff_bias = (b - mean) * bn_scale + beta
        # Zero-pad conv1's K (=25) up to 32 for aligned tiles.
        k_pad = _round_up(kk, 32) if kk < 32 else kk
        if k_pad != kk:
            w_eff = jnp.pad(w_eff, ((0, k_pad - kk), (0, 0)))
        params["convs"].append((w_eff, eff_bias))

    # Linear weights stored as (in, out) and used as x @ w (PyTorch stores
    # (out, in); a real checkpoint load would transpose).
    w1 = jax.random.normal(keys[ki], (256, 128), jnp.float32) * 0.05
    b1 = jax.random.normal(keys[ki + 1], (128,), jnp.float32) * 0.05
    w2 = jax.random.normal(keys[ki + 2], (128, 12), jnp.float32) * 0.05
    b2 = jax.random.normal(keys[ki + 3], (12,), jnp.float32) * 0.05
    params["fc1"] = (w1, b1)
    params["fc2"] = (w2, b2)
    return params


# ---------------------------------------------------------------------------
# Forward pass (mirrors LLRLandmarkCNN_v3_2.forward, eval mode)
# ---------------------------------------------------------------------------
def forward(x_nchw, params):
    # Single layout conversion at the boundary: NCHW (PyTorch) -> NHWC.
    h = jnp.transpose(x_nchw, (0, 2, 3, 1)).astype(jnp.float32)
    B = h.shape[0]

    for w_eff, bias in params["convs"]:
        patches, OH, OW = im2col_nhwc(h)               # (B*OH*OW, 25*Cin)
        K = w_eff.shape[0]
        if patches.shape[1] < K:                       # conv1: pad K 25 -> 32
            patches = jnp.pad(patches, ((0, 0), (0, K - patches.shape[1])))
        y = fused_matmul_bias_act(patches, w_eff, bias, act="relu",
                                  out_dtype=jnp.bfloat16)
        h = y.reshape(B, OH, OW, -1)                   # stays NHWC

    _, OH, OW, C = h.shape
    feat = h.reshape(B, OH * OW, C)                    # (B, S, 256), bf16

    # Pool + Dropout(identity) + fc1 + ReLU + Dropout(identity) + fc2 + Sigmoid
    w1, b1 = params["fc1"]
    w2, b2 = params["fc2"]
    return head_pool_fc(feat, w1, b1, w2, b2)          # (B, 12) f32


if __name__ == "__main__":
    key = jax.random.PRNGKey(0)
    k_param, k_x = jax.random.split(key)
    params = init_params(k_param)

    # 1-channel 16x16 image, batch 2 (conv stack: 16 -> 8 -> 4 -> 2 -> 1).
    x = jax.random.normal(k_x, (2, 1, 16, 16), jnp.float32)

    fwd = jax.jit(forward)
    out = fwd(x, params)
    out = jax.block_until_ready(out)

    assert out.shape == (2, 12), out.shape
    assert bool(jnp.all(jnp.isfinite(out)))
    assert bool(jnp.all((out >= 0.0) & (out <= 1.0)))  # sigmoid range
    print("KERNEL_OK")
</pallas_src>

<mosaic_0001>
module attributes {stable_mosaic.version = 11 : i64} {
  func.func @_matmul_bias_act_kernel(%arg0: i32, %arg1: memref<128x32xbf16, #tpu.memory_space<vmem>>, %arg2: memref<32x32xbf16, #tpu.memory_space<vmem>>, %arg3: memref<1x32xf32, #tpu.memory_space<vmem>>, %arg4: memref<128x32xbf16, #tpu.memory_space<vmem>>) attributes {dimension_semantics = [#tpu.dimension_semantics<parallel>], iteration_bounds = array<i64: 1>, scalar_prefetch = 0 : i64, scratch_operands = 0 : i64, tpu.core_type = #tpu.core_type<tc>, window_params = [{transform_indices = @transform_0, window_bounds = array<i64: 128, 32>}, {pipeline_mode = #tpu.pipeline_mode<synchronous>, transform_indices = @transform_1, window_bounds = array<i64: 32, 32>}, {pipeline_mode = #tpu.pipeline_mode<synchronous>, transform_indices = @transform_2, window_bounds = array<i64: 1, 32>}, {transform_indices = @transform_3, window_bounds = array<i64: 128, 32>}]} {
    %c0 = arith.constant 0 : index
    %c0_0 = arith.constant 0 : index
    %0 = vector.load %arg1[%c0, %c0_0] : memref<128x32xbf16, #tpu.memory_space<vmem>>, vector<128x32xbf16>
    %c0_1 = arith.constant 0 : index
    %c0_2 = arith.constant 0 : index
    %1 = vector.load %arg2[%c0_1, %c0_2] : memref<32x32xbf16, #tpu.memory_space<vmem>>, vector<32x32xbf16>
    %cst = arith.constant dense<0.000000e+00> : vector<128x32xf32>
    %2 = tpu.matmul %0, %1, %cst {dimension_numbers = #tpu.dot_dimension_numbers<[1], [0], [0], [1], [0, 0, 1, 1], [], []>} : vector<128x32xbf16>, vector<32x32xbf16>, vector<128x32xf32> -> vector<128x32xf32>
    %c0_3 = arith.constant 0 : index
    %c0_4 = arith.constant 0 : index
    %3 = vector.load %arg3[%c0_3, %c0_4] : memref<1x32xf32, #tpu.memory_space<vmem>>, vector<1x32xf32>
    %4 = vector.broadcast %3 : vector<1x32xf32> to vector<128x32xf32>
    %5 = arith.addf %2, %4 : vector<128x32xf32>
    %cst_5 = arith.constant 0.000000e+00 : f32
    %6 = vector.broadcast %cst_5 : f32 to vector<128x32xf32>
    %7 = arith.maximumf %5, %6 : vector<128x32xf32>
    %8 = arith.truncf %7 : vector<128x32xf32> to vector<128x32xbf16>
    %c0_6 = arith.constant 0 : index
    %c0_7 = arith.constant 0 : index
    %9 = vector.load %arg4[%c0_6, %c0_7] : memref<128x32xbf16, #tpu.memory_space<vmem>>, vector<128x32xbf16>
    tpu.vector_store %arg4[%c0_6, %c0_7], %8 {strides = array<i32>} : memref<128x32xbf16, #tpu.memory_space<vmem>>, vector<128x32xbf16>,
    return
  }
  func.func @transform_0(%arg0: i32) -> (i32, i32) {
    %c0_i32 = arith.constant 0 : i32
    %c0_i32_0 = arith.constant 0 : i32
    return %arg0, %c0_i32 : i32, i32
  }
  func.func @transform_1(%arg0: i32) -> (i32, i32) {
    %c0_i32 = arith.constant 0 : i32
    %c0_i32_0 = arith.constant 0 : i32
    %c0_i32_1 = arith.constant 0 : i32
    return %c0_i32, %c0_i32_0 : i32, i32
  }
  func.func @transform_2(%arg0: i32) -> (i32, i32) {
    %c0_i32 = arith.constant 0 : i32
    %c0_i32_0 = arith.constant 0 : i32
    %c0_i32_1 = arith.constant 0 : i32
    return %c0_i32, %c0_i32_0 : i32, i32
  }
  func.func @transform_3(%arg0: i32) -> (i32, i32) {
    %c0_i32 = arith.constant 0 : i32
    %c0_i32_0 = arith.constant 0 : i32
    return %arg0, %c0_i32 : i32, i32
  }
}

module attributes {stable_mosaic.version = 11 : i64} {
  func.func @_matmul_bias_act_kernel(%arg0: i32, %arg1: memref<32x800xbf16, #tpu.memory_space<vmem>>, %arg2: memref<800x64xbf16, #tpu.memory_space<vmem>>, %arg3: memref<1x64xf32, #tpu.memory_space<vmem>>, %arg4: memref<32x64xbf16, #tpu.memory_space<vmem>>) attributes {dimension_semantics = [#tpu.dimension_semantics<parallel>], iteration_bounds = array<i64: 1>, scalar_prefetch = 0 : i64, scratch_operands = 0 : i64, tpu.core_type = #tpu.core_type<tc>, window_params = [{transform_indices = @transform_0, window_bounds = array<i64: 32, 800>}, {pipeline_mode = #tpu.pipeline_mode<synchronous>, transform_indices = @transform_1, window_bounds = array<i64: 800, 64>}, {pipeline_mode = #tpu.pipeline_mode<synchronous>, transform_indices = @transform_2, window_bounds = array<i64: 1, 64>}, {transform_indices = @transform_3, window_bounds = array<i64: 32, 64>}]} {
    %c0 = arith.constant 0 : index
    %c0_0 = arith.constant 0 : index
    %0 = vector.load %arg1[%c0, %c0_0] : memref<32x800xbf16, #tpu.memory_space<vmem>>, vector<32x800xbf16>
    %c0_1 = arith.constant 0 : index
    %c0_2 = arith.constant 0 : index
    %1 = vector.load %arg2[%c0_1, %c0_2] : memref<800x64xbf16, #tpu.memory_space<vmem>>, vector<800x64xbf16>
    %cst = arith.constant dense<0.000000e+00> : vector<32x64xf32>
    %2 = tpu.matmul %0, %1, %cst {dimension_numbers = #tpu.dot_dimension_numbers<[1], [0], [0], [1], [0, 0, 1, 1], [], []>} : vector<32x800xbf16>, vector<800x64xbf16>, vector<32x64xf32> -> vector<32x64xf32>
    %c0_3 = arith.constant 0 : index
    %c0_4 = arith.constant 0 : index
    %3 = vector.load %arg3[%c0_3, %c0_4] : memref<1x64xf32, #tpu.memory_space<vmem>>, vector<1x64xf32>
    %4 = vector.broadcast %3 : vector<1x64xf32> to vector<32x64xf32>
    %5 = arith.addf %2, %4 : vector<32x64xf32>
    %cst_5 = arith.constant 0.000000e+00 : f32
    %6 = vector.broadcast %cst_5 : f32 to vector<32x64xf32>
    %7 = arith.maximumf %5, %6 : vector<32x64xf32>
    %8 = arith.truncf %7 : vector<32x64xf32> to vector<32x64xbf16>
    %c0_6 = arith.constant 0 : index
    %c0_7 = arith.constant 0 : index
    %9 = vector.load %arg4[%c0_6, %c0_7] : memref<32x64xbf16, #tpu.memory_space<vmem>>, vector<32x64xbf16>
    tpu.vector_store %arg4[%c0_6, %c0_7], %8 {strides = array<i32>} : memref<32x64xbf16, #tpu.memory_space<vmem>>, vector<32x64xbf16>,
    return
  }
  func.func @transform_0(%arg0: i32) -> (i32, i32) {
    %c0_i32 = arith.constant 0 : i32
    %c0_i32_0 = arith.constant 0 : i32
    return %arg0, %c0_i32 : i32, i32
  }
  func.func @transform_1(%arg0: i32) -> (i32, i32) {
    %c0_i32 = arith.constant 0 : i32
    %c0_i32_0 = arith.constant 0 : i32
    %c0_i32_1 = arith.constant 0 : i32
    return %c0_i32, %c0_i32_0 : i32, i32
  }
  func.func @transform_2(%arg0: i32) -> (i32, i32) {
    %c0_i32 = arith.constant 0 : i32
    %c0_i32_0 = arith.constant 0 : i32
    %c0_i32_1 = arith.constant 0 : i32
    return %c0_i32, %c0_i32_0 : i32, i32
  }
  func.func @transform_3(%arg0: i32) -> (i32, i32) {
    %c0_i32 = arith.constant 0 : i32
    %c0_i32_0 = arith.constant 0 : i32
    return %arg0, %c0_i32 : i32, i32
  }
}

module attributes {stable_mosaic.version = 11 : i64} {
  func.func @_matmul_bias_act_kernel(%arg0: i32, %arg1: memref<16x1600xbf16, #tpu.memory_space<vmem>>, %arg2: memref<1600x128xbf16, #tpu.memory_space<vmem>>, %arg3: memref<1x128xf32, #tpu.memory_space<vmem>>, %arg4: memref<16x128xbf16, #tpu.memory_space<vmem>>) attributes {dimension_semantics = [#tpu.dimension_semantics<parallel>], iteration_bounds = array<i64: 1>, scalar_prefetch = 0 : i64, scratch_operands = 0 : i64, tpu.core_type = #tpu.core_type<tc>, window_params = [{transform_indices = @transform_0, window_bounds = array<i64: 16, 1600>}, {pipeline_mode = #tpu.pipeline_mode<synchronous>, transform_indices = @transform_1, window_bounds = array<i64: 1600, 128>}, {pipeline_mode = #tpu.pipeline_mode<synchronous>, transform_indices = @transform_2, window_bounds = array<i64: 1, 128>}, {transform_indices = @transform_3, window_bounds = array<i64: 16, 128>}]} {
    %c0 = arith.constant 0 : index
    %c0_0 = arith.constant 0 : index
    %0 = vector.load %arg1[%c0, %c0_0] : memref<16x1600xbf16, #tpu.memory_space<vmem>>, vector<16x1600xbf16>
    %c0_1 = arith.constant 0 : index
    %c0_2 = arith.constant 0 : index
    %1 = vector.load %arg2[%c0_1, %c0_2] : memref<1600x128xbf16, #tpu.memory_space<vmem>>, vector<1600x128xbf16>
    %cst = arith.constant dense<0.000000e+00> : vector<16x128xf32>
    %2 = tpu.matmul %0, %1, %cst {dimension_numbers = #tpu.dot_dimension_numbers<[1], [0], [0], [1], [0, 0, 1, 1], [], []>} : vector<16x1600xbf16>, vector<1600x128xbf16>, vector<16x128xf32> -> vector<16x128xf32>
    %c0_3 = arith.constant 0 : index
    %c0_4 = arith.constant 0 : index
    %3 = vector.load %arg3[%c0_3, %c0_4] : memref<1x128xf32, #tpu.memory_space<vmem>>, vector<1x128xf32>
    %4 = vector.broadcast %3 : vector<1x128xf32> to vector<16x128xf32>
    %5 = arith.addf %2, %4 : vector<16x128xf32>
    %cst_5 = arith.constant 0.000000e+00 : f32
    %6 = vector.broadcast %cst_5 : f32 to vector<16x128xf32>
    %7 = arith.maximumf %5, %6 : vector<16x128xf32>
    %8 = arith.truncf %7 : vector<16x128xf32> to vector<16x128xbf16>
    %c0_6 = arith.constant 0 : index
    %c0_7 = arith.constant 0 : index
    %9 = vector.load %arg4[%c0_6, %c0_7] : memref<16x128xbf16, #tpu.memory_space<vmem>>, vector<16x128xbf16>
    tpu.vector_store %arg4[%c0_6, %c0_7], %8 {strides = array<i32>} : memref<16x128xbf16, #tpu.memory_space<vmem>>, vector<16x128xbf16>,
    return
  }
  func.func @transform_0(%arg0: i32) -> (i32, i32) {
    %c0_i32 = arith.constant 0 : i32
    %c0_i32_0 = arith.constant 0 : i32
    return %arg0, %c0_i32 : i32, i32
  }
  func.func @transform_1(%arg0: i32) -> (i32, i32) {
    %c0_i32 = arith.constant 0 : i32
    %c0_i32_0 = arith.constant 0 : i32
    %c0_i32_1 = arith.constant 0 : i32
    return %c0_i32, %c0_i32_0 : i32, i32
  }
  func.func @transform_2(%arg0: i32) -> (i32, i32) {
    %c0_i32 = arith.constant 0 : i32
    %c0_i32_0 = arith.constant 0 : i32
    %c0_i32_1 = arith.constant 0 : i32
    return %c0_i32, %c0_i32_0 : i32, i32
  }
  func.func @transform_3(%arg0: i32) -> (i32, i32) {
    %c0_i32 = arith.constant 0 : i32
    %c0_i32_0 = arith.constant 0 : i32
    return %arg0, %c0_i32 : i32, i32
  }
}

module attributes {stable_mosaic.version = 11 : i64} {
  func.func @_matmul_bias_act_kernel(%arg0: i32, %arg1: memref<16x3200xbf16, #tpu.memory_space<vmem>>, %arg2: memref<3200x256xbf16, #tpu.memory_space<vmem>>, %arg3: memref<1x256xf32, #tpu.memory_space<vmem>>, %arg4: memref<16x256xbf16, #tpu.memory_space<vmem>>) attributes {dimension_semantics = [#tpu.dimension_semantics<parallel>], iteration_bounds = array<i64: 1>, scalar_prefetch = 0 : i64, scratch_operands = 0 : i64, tpu.core_type = #tpu.core_type<tc>, window_params = [{transform_indices = @transform_0, window_bounds = array<i64: 16, 3200>}, {pipeline_mode = #tpu.pipeline_mode<synchronous>, transform_indices = @transform_1, window_bounds = array<i64: 3200, 256>}, {pipeline_mode = #tpu.pipeline_mode<synchronous>, transform_indices = @transform_2, window_bounds = array<i64: 1, 256>}, {transform_indices = @transform_3, window_bounds = array<i64: 16, 256>}]} {
    %c0 = arith.constant 0 : index
    %c0_0 = arith.constant 0 : index
    %0 = vector.load %arg1[%c0, %c0_0] : memref<16x3200xbf16, #tpu.memory_space<vmem>>, vector<16x3200xbf16>
    %c0_1 = arith.constant 0 : index
    %c0_2 = arith.constant 0 : index
    %1 = vector.load %arg2[%c0_1, %c0_2] : memref<3200x256xbf16, #tpu.memory_space<vmem>>, vector<3200x256xbf16>
    %cst = arith.constant dense<0.000000e+00> : vector<16x256xf32>
    %2 = tpu.matmul %0, %1, %cst {dimension_numbers = #tpu.dot_dimension_numbers<[1], [0], [0], [1], [0, 0, 1, 1], [], []>} : vector<16x3200xbf16>, vector<3200x256xbf16>, vector<16x256xf32> -> vector<16x256xf32>
    %c0_3 = arith.constant 0 : index
    %c0_4 = arith.constant 0 : index
    %3 = vector.load %arg3[%c0_3, %c0_4] : memref<1x256xf32, #tpu.memory_space<vmem>>, vector<1x256xf32>
    %4 = vector.broadcast %3 : vector<1x256xf32> to vector<16x256xf32>
    %5 = arith.addf %2, %4 : vector<16x256xf32>
    %cst_5 = arith.constant 0.000000e+00 : f32
    %6 = vector.broadcast %cst_5 : f32 to vector<16x256xf32>
    %7 = arith.maximumf %5, %6 : vector<16x256xf32>
    %8 = arith.truncf %7 : vector<16x256xf32> to vector<16x256xbf16>
    %c0_6 = arith.constant 0 : index
    %c0_7 = arith.constant 0 : index
    %9 = vector.load %arg4[%c0_6, %c0_7] : memref<16x256xbf16, #tpu.memory_space<vmem>>, vector<16x256xbf16>
    tpu.vector_store %arg4[%c0_6, %c0_7], %8 {strides = array<i32>} : memref<16x256xbf16, #tpu.memory_space<vmem>>, vector<16x256xbf16>,
    return
  }
  func.func @transform_0(%arg0: i32) -> (i32, i32) {
    %c0_i32 = arith.constant 0 : i32
    %c0_i32_0 = arith.constant 0 : i32
    return %arg0, %c0_i32 : i32, i32
  }
  func.func @transform_1(%arg0: i32) -> (i32, i32) {
    %c0_i32 = arith.constant 0 : i32
    %c0_i32_0 = arith.constant 0 : i32
    %c0_i32_1 = arith.constant 0 : i32
    return %c0_i32, %c0_i32_0 : i32, i32
  }
  func.func @transform_2(%arg0: i32) -> (i32, i32) {
    %c0_i32 = arith.constant 0 : i32
    %c0_i32_0 = arith.constant 0 : i32
    %c0_i32_1 = arith.constant 0 : i32
    return %c0_i32, %c0_i32_0 : i32, i32
  }
  func.func @transform_3(%arg0: i32) -> (i32, i32) {
    %c0_i32 = arith.constant 0 : i32
    %c0_i32_0 = arith.constant 0 : i32
    return %arg0, %c0_i32 : i32, i32
  }
}

module attributes {stable_mosaic.version = 11 : i64} {
  func.func @_head_kernel(%arg0: i32, %arg1: memref<2x1x256xbf16, #tpu.memory_space<vmem>>, %arg2: memref<256x128xf32, #tpu.memory_space<vmem>>, %arg3: memref<1x128xf32, #tpu.memory_space<vmem>>, %arg4: memref<128x128xf32, #tpu.memory_space<vmem>>, %arg5: memref<1x128xf32, #tpu.memory_space<vmem>>, %arg6: memref<2x128xf32, #tpu.memory_space<vmem>>) attributes {dimension_semantics = [#tpu.dimension_semantics<arbitrary>], iteration_bounds = array<i64: 1>, scalar_prefetch = 0 : i64, scratch_operands = 0 : i64, tpu.core_type = #tpu.core_type<tc>, window_params = [{pipeline_mode = #tpu.pipeline_mode<synchronous>, transform_indices = @transform_0, window_bounds = array<i64: 2, 1, 256>}, {pipeline_mode = #tpu.pipeline_mode<synchronous>, transform_indices = @transform_1, window_bounds = array<i64: 256, 128>}, {pipeline_mode = #tpu.pipeline_mode<synchronous>, transform_indices = @transform_2, window_bounds = array<i64: 1, 128>}, {pipeline_mode = #tpu.pipeline_mode<synchronous>, transform_indices = @transform_3, window_bounds = array<i64: 128, 128>}, {pipeline_mode = #tpu.pipeline_mode<synchronous>, transform_indices = @transform_4, window_bounds = array<i64: 1, 128>}, {pipeline_mode = #tpu.pipeline_mode<synchronous>, transform_indices = @transform_5, window_bounds = array<i64: 2, 128>}]} {
    %c0 = arith.constant 0 : index
    %c0_0 = arith.constant 0 : index
    %c0_1 = arith.constant 0 : index
    %0 = vector.load %arg1[%c0, %c0_0, %c0_1] : memref<2x1x256xbf16, #tpu.memory_space<vmem>>, vector<2x1x256xbf16>
    %1 = arith.extf %0 : vector<2x1x256xbf16> to vector<2x1x256xf32>
    %cst = arith.constant dense<0.000000e+00> : vector<2x256xf32>
    %2 = vector.multi_reduction <add>, %1, %cst [1] : vector<2x1x256xf32> to vector<2x256xf32>
    %cst_2 = arith.constant 1.000000e+00 : f32
    %3 = vector.broadcast %cst_2 : f32 to vector<2x256xf32>
    %4 = arith.divf %2, %3 : vector<2x256xf32>
    %c0_3 = arith.constant 0 : index
    %c0_4 = arith.constant 0 : index
    %5 = vector.load %arg2[%c0_3, %c0_4] : memref<256x128xf32, #tpu.memory_space<vmem>>, vector<256x128xf32>
    %cst_5 = arith.constant dense<0.000000e+00> : vector<2x128xf32>
    %6 = tpu.matmul %4, %5, %cst_5 {dimension_numbers = #tpu.dot_dimension_numbers<[1], [0], [0], [1], [0, 0, 1, 1], [], []>} : vector<2x256xf32>, vector<256x128xf32>, vector<2x128xf32> -> vector<2x128xf32>
    %c0_6 = arith.constant 0 : index
    %c0_7 = arith.constant 0 : index
    %7 = vector.load %arg3[%c0_6, %c0_7] : memref<1x128xf32, #tpu.memory_space<vmem>>, vector<1x128xf32>
    %8 = vector.broadcast %7 : vector<1x128xf32> to vector<2x128xf32>
    %9 = arith.addf %6, %8 : vector<2x128xf32>
    %cst_8 = arith.constant 0.000000e+00 : f32
    %10 = vector.broadcast %cst_8 : f32 to vector<2x128xf32>
    %11 = arith.maximumf %9, %10 : vector<2x128xf32>
    %c0_9 = arith.constant 0 : index
    %c0_10 = arith.constant 0 : index
    %12 = vector.load %arg4[%c0_9, %c0_10] : memref<128x128xf32, #tpu.memory_space<vmem>>, vector<128x128xf32>
    %cst_11 = arith.constant dense<0.000000e+00> : vector<2x128xf32>
    %13 = tpu.matmul %11, %12, %cst_11 {dimension_numbers = #tpu.dot_dimension_numbers<[1], [0], [0], [1], [0, 0, 1, 1], [], []>} : vector<2x128xf32>, vector<128x128xf32>, vector<2x128xf32> -> vector<2x128xf32>
    %c0_12 = arith.constant 0 : index
    %c0_13 = arith.constant 0 : index
    %14 = vector.load %arg5[%c0_12, %c0_13] : memref<1x128xf32, #tpu.memory_space<vmem>>, vector<1x128xf32>
    %15 = vector.broadcast %14 : vector<1x128xf32> to vector<2x128xf32>
    %16 = arith.addf %13, %15 : vector<2x128xf32>
    %17 = arith.negf %16 : vector<2x128xf32>
    %18 = math.exp %17 : vector<2x128xf32>
    %cst_14 = arith.constant 1.000000e+00 : f32
    %19 = vector.broadcast %cst_14 : f32 to vector<2x128xf32>
    %20 = arith.addf %19, %18 : vector<2x128xf32>
    %21 = arith.divf %19, %20 : vector<2x128xf32>
    %c0_15 = arith.constant 0 : index
    %c0_16 = arith.constant 0 : index
    %22 = vector.load %arg6[%c0_15, %c0_16] : memref<2x128xf32, #tpu.memory_space<vmem>>, vector<2x128xf32>
    tpu.vector_store %arg6[%c0_15, %c0_16], %21 {strides = array<i32>} : memref<2x128xf32, #tpu.memory_space<vmem>>, vector<2x128xf32>,
    return
  }
  func.func @transform_0(%arg0: i32) -> (i32, i32, i32) {
    %c0_i32 = arith.constant 0 : i32
    %c0_i32_0 = arith.constant 0 : i32
    %c0_i32_1 = arith.constant 0 : i32
    %c0_i32_2 = arith.constant 0 : i32
    return %c0_i32, %c0_i32_0, %c0_i32_1 : i32, i32, i32
  }
  func.func @transform_1(%arg0: i32) -> (i32, i32) {
    %c0_i32 = arith.constant 0 : i32
    %c0_i32_0 = arith.constant 0 : i32
    %c0_i32_1 = arith.constant 0 : i32
    return %c0_i32, %c0_i32_0 : i32, i32
  }
  func.func @transform_2(%arg0: i32) -> (i32, i32) {
    %c0_i32 = arith.constant 0 : i32
    %c0_i32_0 = arith.constant 0 : i32
    %c0_i32_1 = arith.constant 0 : i32
    return %c0_i32, %c0_i32_0 : i32, i32
  }
  func.func @transform_3(%arg0: i32) -> (i32, i32) {
    %c0_i32 = arith.constant 0 : i32
    %c0_i32_0 = arith.constant 0 : i32
    %c0_i32_1 = arith.constant 0 : i32
    return %c0_i32, %c0_i32_0 : i32, i32
  }
  func.func @transform_4(%arg0: i32) -> (i32, i32) {
    %c0_i32 = arith.constant 0 : i32
    %c0_i32_0 = arith.constant 0 : i32
    %c0_i32_1 = arith.constant 0 : i32
    return %c0_i32, %c0_i32_0 : i32, i32
  }
  func.func @transform_5(%arg0: i32) -> (i32, i32) {
    %c0_i32 = arith.constant 0 : i32
    %c0_i32_0 = arith.constant 0 : i32
    %c0_i32_1 = arith.constant 0 : i32
    return %c0_i32, %c0_i32_0 : i32, i32
  }
}

</mosaic_0001>

<bundles_post_ra>
// kernel: forward.5
= control target key start
LH: loop header
LB: loop body
LE: loop exit
PB: predicated region body
PF: predicated region fallthrough
CT: control target
= control target key end

     0   :  { %8 = vsyncpa [#allocation3], 0  ;;  %s325_s15 = smov [#allocation2]   ;;  %s469_s0 = inlined_call_operand.vmem [shape: bf16[128,32], index: 0, kind: input, shape index: {}]   ;;  %s470_s1 = inlined_call_operand.vmem [shape: bf16[32,32], index: 1, kind: input, shape index: {}]   ;;  %s471_s2 = inlined_call_operand.hbm [shape: f32[1,32], index: 2, kind: input, shape index: {}]   ;;  %s472_s3 = inlined_call_operand.vmem [shape: bf16[128,32], index: 3, kind: output, shape index: {}]  }
   0x1   :  { %s18_s14 = sshll.u32 %s471_s2, 4  ;;  %s20_s16 = sshll.u32 %s325_s15, 4  ;;  %s19_s14 = int_to_ptr.hbm [resolvable:$true] %s18_s14  ;;  %s21_s16 = int_to_ptr.vmem [resolvable:$true] %s20_s16 }
   0x2   :  { %23 = dma.hbm_to_vmem [thread:$0]  %s19_s14, 16, %s21_s16, [#allocation3]  }
   0x3   :  { %323 = dma.done.wait [#allocation3], 16  }
   0x4   :  { %324 = vsyncadd [#allocation3], 4294967280  ;;  %v290_v0 = vld [vmem:[%s470_s1 + $0x8] sm:$0xff]  ;;  %v289_v1 = vld [vmem:[%s470_s1] sm:$0xff]  ;;  %vm105_vm0 = vcmask 261120   ;;  %vm211_vm1 = vcmask 257024  }
   0x5   :  { %136 = vmatpush.bf16.msra.mxu0 %v290_v0  ;;  %291 = vmatpush.bf16.msra.mxu1 %v290_v0  ;;  %v281_v2 = vld [vmem:[%s469_s0] sm:$0xff]  ;;  %v283_v3 = vld [vmem:[%s469_s0 + $0x10] sm:$0xff]  ;;  %v282_v6 = vld [vmem:[%s469_s0 + $0x8] sm:$0xff] }
   0x6   :  { %292 = vmatpush.bf16.msra.mxu2 %v290_v0  ;;  %293 = vmatpush.bf16.msra.mxu3 %v290_v0  ;;  %v285_v4 = vld [vmem:[%s469_s0 + $0x20] sm:$0xff]  ;;  %v287_v5 = vld [vmem:[%s469_s0 + $0x30] sm:$0xff]  ;;  %v284_v7 = vld [vmem:[%s469_s0 + $0x18] sm:$0xff] }
   0x7   :  { %v286_v8 = vld [vmem:[%s469_s0 + $0x28] sm:$0xff]  ;;  %v288_v9 = vld [vmem:[%s469_s0 + $0x38] sm:$0xff]  ;;  %v387_v10 = vld [vmem:[#allocation2] ss:$0 sm:$0xff] }
   0x9   :  { %137 = vmatpush.bf16.msra.mxu0 %v289_v1  ;;  %294 = vmatpush.bf16.msra.mxu1 %v289_v1 }
   0xa   :  { %295 = vmatpush.bf16.msra.mxu2 %v289_v1  ;;  %296 = vmatpush.bf16.msra.mxu3 %v289_v1 }
   0xc   :  { %273 = vmatmul.msk.bf16.vlgmr.msra.gmra.mxu0 %vm105_vm0, %v281_v2  ;;  %275 = vmatmul.msk.bf16.vlgmr.msra.gmra.mxu1 %vm105_vm0, %v283_v3 }
   0xd   :  { %277 = vmatmul.msk.bf16.vlgmr.msra.gmra.mxu2 %vm105_vm0, %v285_v4  ;;  %279 = vmatmul.msk.bf16.vlgmr.msra.gmra.mxu3 %vm105_vm0, %v287_v5 }
  0x1c   :  { %274 = vmatmul.msk.bf16.gmra.mxu0 %vm105_vm0, %v282_v6  ;;  %276 = vmatmul.msk.bf16.gmra.mxu1 %vm105_vm0, %v284_v7 }
  0x1d   :  { %278 = vmatmul.msk.bf16.gmra.mxu2 %vm105_vm0, %v286_v8  ;;  %280 = vmatmul.msk.bf16.gmra.mxu3 %vm105_vm0, %v288_v9 }
  0x89   :  { %v139_v11 = vpop.f32.mrf.mxu0  ;;  %v149_v12 = vpop.f32.mrf.mxu1 }
  0x8a   :  { %v140_v13 = vadd.f32 %v387_v10, %v139_v11  ;;  %v150_v14 = vadd.f32 %v387_v10, %v149_v12 }
  0x8c   :  { %v179_v15 = vmax.f32 %v140_v13, 0.0  ;;  %v183_v16 = vmax.f32 %v150_v14, 0.0 }
  0x8e   :  { %v195_v17 = vpack.c.bf16 %v179_v15, %v179_v15  ;;  %v199_v18 = vpack.c.bf16 %v183_v16, %v183_v16 }
  0x90   :  { %212 = vst.msk [vmem:[%s472_s3] sm:$0xf] %vm211_vm1, %v195_v17  ;;  %v159_v19 = vpop.f32.mrf.mxu2  ;;  %v169_v20 = vpop.f32.mrf.mxu3 }
  0x91   :  { %216 = vst.msk [vmem:[%s472_s3 + $0x10] sm:$0xf] %vm211_vm1, %v199_v18  ;;  %v160_v21 = vadd.f32 %v387_v10, %v159_v19  ;;  %v170_v22 = vadd.f32 %v387_v10, %v169_v20  ;;  %v141_v23 = vpop.f32.mrf.mxu0  ;;  %v151_v24 = vpop.f32.mrf.mxu1 }
  0x92   :  { %v142_v25 = vadd.f32 %v387_v10, %v141_v23  ;;  %v152_v26 = vadd.f32 %v387_v10, %v151_v24 }
  0x93   :  { %v187_v27 = vmax.f32 %v160_v21, 0.0  ;;  %v191_v28 = vmax.f32 %v170_v22, 0.0 }
  0x94   :  { %v180_v29 = vmax.f32 %v142_v25, 0.0  ;;  %v184_v30 = vmax.f32 %v152_v26, 0.0 }
  0x95   :  { %v203_v31 = vpack.c.bf16 %v187_v27, %v187_v27  ;;  %v207_v32 = vpack.c.bf16 %v191_v28, %v191_v28 }
  0x96   :  { %v196_v33 = vpack.c.bf16 %v180_v29, %v180_v29  ;;  %v200_v34 = vpack.c.bf16 %v184_v30, %v184_v30 }
  0x97   :  { %220 = vst.msk [vmem:[%s472_s3 + $0x20] sm:$0xf] %vm211_vm1, %v203_v31 }
  0x98   :  { %224 = vst.msk [vmem:[%s472_s3 + $0x30] sm:$0xf] %vm211_vm1, %v207_v32  ;;  %v161_v35 = vpop.f32.mrf.mxu2  ;;  %v171_v36 = vpop.f32.mrf.mxu3 }
  0x99   :  { %213 = vst.msk [vmem:[%s472_s3 + $0x4] sm:$0xf] %vm211_vm1, %v196_v33  ;;  %v162_v37 = vadd.f32 %v387_v10, %v161_v35  ;;  %v172_v38 = vadd.f32 %v387_v10, %v171_v36  ;;  %v144_v39 = vpop.f32.mrf.mxu0  ;;  %v154_v40 = vpop.f32.mrf.mxu1 }
  0x9a   :  { %217 = vst.msk [vmem:[%s472_s3 + $0x14] sm:$0xf] %vm211_vm1, %v200_v34  ;;  %v145_v41 = vadd.f32 %v387_v10, %v144_v39  ;;  %v155_v42 = vadd.f32 %v387_v10, %v154_v40 }
  0x9b   :  { %v188_v43 = vmax.f32 %v162_v37, 0.0  ;;  %v192_v44 = vmax.f32 %v172_v38, 0.0 }
  0x9c   :  { %v181_v45 = vmax.f32 %v145_v41, 0.0  ;;  %v185_v46 = vmax.f32 %v155_v42, 0.0 }
  0x9d   :  { %v204_v47 = vpack.c.bf16 %v188_v43, %v188_v43  ;;  %v208_v48 = vpack.c.bf16 %v192_v44, %v192_v44 }
  0x9e   :  { %v197_v49 = vpack.c.bf16 %v181_v45, %v181_v45  ;;  %v201_v50 = vpack.c.bf16 %v185_v46, %v185_v46 }
  0x9f   :  { %221 = vst.msk [vmem:[%s472_s3 + $0x24] sm:$0xf] %vm211_vm1, %v204_v47 }
  0xa0   :  { %225 = vst.msk [vmem:[%s472_s3 + $0x34] sm:$0xf] %vm211_vm1, %v208_v48  ;;  %v164_v51 = vpop.f32.mrf.mxu2  ;;  %v174_v52 = vpop.f32.mrf.mxu3 }
  0xa1   :  { %214 = vst.msk [vmem:[%s472_s3 + $0x8] sm:$0xf] %vm211_vm1, %v197_v49  ;;  %v165_v53 = vadd.f32 %v387_v10, %v164_v51  ;;  %v175_v54 = vadd.f32 %v387_v10, %v174_v52  ;;  %v146_v55 = vpop.f32.mrf.mxu0  ;;  %v156_v56 = vpop.f32.mrf.mxu1 }
  0xa2   :  { %218 = vst.msk [vmem:[%s472_s3 + $0x18] sm:$0xf] %vm211_vm1, %v201_v50  ;;  %v147_v57 = vadd.f32 %v387_v10, %v146_v55  ;;  %v157_v58 = vadd.f32 %v387_v10, %v156_v56 }
  0xa3   :  { %v189_v59 = vmax.f32 %v165_v53, 0.0  ;;  %v193_v60 = vmax.f32 %v175_v54, 0.0 }
  0xa4   :  { %v182_v61 = vmax.f32 %v147_v57, 0.0  ;;  %v186_v62 = vmax.f32 %v157_v58, 0.0 }
  0xa5   :  { %v205_v63 = vpack.c.bf16 %v189_v59, %v189_v59  ;;  %v209_v0 = vpack.c.bf16 %v193_v60, %v193_v60 }
  0xa6   :  { %v198_v1 = vpack.c.bf16 %v182_v61, %v182_v61  ;;  %v202_v2 = vpack.c.bf16 %v186_v62, %v186_v62 }
  0xa7   :  { %222 = vst.msk [vmem:[%s472_s3 + $0x28] sm:$0xf] %vm211_vm1, %v205_v63 }
  0xa8   :  { %226 = vst.msk [vmem:[%s472_s3 + $0x38] sm:$0xf] %vm211_vm1, %v209_v0  ;;  %v166_v3 = vpop.f32.mrf.mxu2  ;;  %v176_v4 = vpop.f32.mrf.mxu3 }
  0xa9   :  { %215 = vst.msk [vmem:[%s472_s3 + $0xc] sm:$0xf] %vm211_vm1, %v198_v1  ;;  %v167_v5 = vadd.f32 %v387_v10, %v166_v3  ;;  %v177_v6 = vadd.f32 %v387_v10, %v176_v4 }
  0xaa   :  { %219 = vst.msk [vmem:[%s472_s3 + $0x1c] sm:$0xf] %vm211_vm1, %v202_v2 }
  0xab   :  { %v190_v7 = vmax.f32 %v167_v5, 0.0  ;;  %v194_v8 = vmax.f32 %v177_v6, 0.0 }
  0xad   :  { %v206_v9 = vpack.c.bf16 %v190_v7, %v190_v7  ;;  %v210_v11 = vpack.c.bf16 %v194_v8, %v194_v8 }
  0xaf   :  { %223 = vst.msk [vmem:[%s472_s3 + $0x2c] sm:$0xf] %vm211_vm1, %v206_v9 }
  0xb0   :  { %227 = vst.msk [vmem:[%s472_s3 + $0x3c] sm:$0xf] %vm211_vm1, %v210_v11 }
  0xb1   :  { %232 = vsyncpa [#allocation3], 1 }

// kernel: forward.6
= control target key start
LH: loop header
LB: loop body
LE: loop exit
PB: predicated region body
PF: predicated region fallthrough
CT: control target
= control target key end

     0   :  { %vm505_vm0 = vcmask 261120   ;;  %vm653_vm1 = vcmask 519168   ;;  %s1266_s1 = inlined_call_operand.vmem [shape: bf16[800,64], index: 1, kind: input, shape index: {}]   ;;  %s1267_s2 = inlined_call_operand.vmem [shape: f32[1,64], index: 2, kind: input, shape index: {}]   ;;  %s1268_s0 = inlined_call_operand.vmem [shape: bf16[32,800], index: 0, kind: input, shape index: {}]   ;;  %s1269_s3 = inlined_call_operand.vmem [shape: bf16[32,64], index: 3, kind: output, shape index: {}]  }
   0x1   :  { %v941_v0 = vld [vmem:[%s1266_s1 + $0x38] sm:$0xff]  ;;  %v940_v4 = vld [vmem:[%s1266_s1 + $0x30] sm:$0xff]  ;;  %v939_v8 = vld [vmem:[%s1266_s1 + $0x28] sm:$0xff] }
   0x2   :  { %v949_v1 = vld [vmem:[%s1266_s1 + $0x78] sm:$0xff]  ;;  %512 = vmatpush.bf16.msra.mxu0 %v941_v0  ;;  %v948_v5 = vld [vmem:[%s1266_s1 + $0x70] sm:$0xff]  ;;  %v947_v9 = vld [vmem:[%s1266_s1 + $0x68] sm:$0xff] }
   0x3   :  { %v957_v2 = vld [vmem:[%s1266_s1 + $0xb8] sm:$0xff]  ;;  %531 = vmatpush.bf16.msra.mxu1 %v949_v1  ;;  %v956_v6 = vld [vmem:[%s1266_s1 + $0xb0] sm:$0xff]  ;;  %v955_v10 = vld [vmem:[%s1266_s1 + $0xa8] sm:$0xff] }
   0x4   :  { %v965_v3 = vld [vmem:[%s1266_s1 + $0xf8] sm:$0xff]  ;;  %550 = vmatpush.bf16.msra.mxu2 %v957_v2  ;;  %v964_v7 = vld [vmem:[%s1266_s1 + $0xf0] sm:$0xff]  ;;  %v963_v11 = vld [vmem:[%s1266_s1 + $0xe8] sm:$0xff] }
   0x5   :  { %569 = vmatpush.bf16.msra.mxu3 %v965_v3  ;;  %v938_v12 = vld [vmem:[%s1266_s1 + $0x20] sm:$0xff]  ;;  %v937_v16 = vld [vmem:[%s1266_s1 + $0x18] sm:$0xff]  ;;  %v936_v20 = vld [vmem:[%s1266_s1 + $0x10] sm:$0xff] }
   0x6   :  { %513 = vmatpush.bf16.msra.mxu0 %v940_v4  ;;  %v946_v13 = vld [vmem:[%s1266_s1 + $0x60] sm:$0xff]  ;;  %v945_v17 = vld [vmem:[%s1266_s1 + $0x58] sm:$0xff]  ;;  %v944_v21 = vld [vmem:[%s1266_s1 + $0x50] sm:$0xff] }
   0x7   :  { %532 = vmatpush.bf16.msra.mxu1 %v948_v5  ;;  %v954_v14 = vld [vmem:[%s1266_s1 + $0xa0] sm:$0xff]  ;;  %v953_v18 = vld [vmem:[%s1266_s1 + $0x98] sm:$0xff]  ;;  %v952_v22 = vld [vmem:[%s1266_s1 + $0x90] sm:$0xff] }
   0x8   :  { %551 = vmatpush.bf16.msra.mxu2 %v956_v6  ;;  %v962_v15 = vld [vmem:[%s1266_s1 + $0xe0] sm:$0xff]  ;;  %v961_v19 = vld [vmem:[%s1266_s1 + $0xd8] sm:$0xff]  ;;  %v960_v23 = vld [vmem:[%s1266_s1 + $0xd0] sm:$0xff] }
   0x9   :  { %570 = vmatpush.bf16.msra.mxu3 %v964_v7  ;;  %v935_v24 = vld [vmem:[%s1266_s1 + $0x8] sm:$0xff]  ;;  %v934_v28 = vld [vmem:[%s1266_s1] sm:$0xff]  ;;  %v923_v33 = vld [vmem:[%s1268_s0 + $0x18] sm:$0xf0] }
   0xa   :  { %514 = vmatpush.bf16.msra.mxu0 %v939_v8  ;;  %v943_v25 = vld [vmem:[%s1266_s1 + $0x48] sm:$0xff]  ;;  %v942_v29 = vld [vmem:[%s1266_s1 + $0x40] sm:$0xff]  ;;  %v973_v41 = vld [vmem:[%s1266_s1 + $0x138] sm:$0xff] }
   0xb   :  { %533 = vmatpush.bf16.msra.mxu1 %v947_v9  ;;  %v951_v26 = vld [vmem:[%s1266_s1 + $0x88] sm:$0xff]  ;;  %v950_v30 = vld [vmem:[%s1266_s1 + $0x80] sm:$0xff]  ;;  %v981_v46 = vld [vmem:[%s1266_s1 + $0x178] sm:$0xff] }
   0xc   :  { %552 = vmatpush.bf16.msra.mxu2 %v955_v10  ;;  %v959_v27 = vld [vmem:[%s1266_s1 + $0xc8] sm:$0xff]  ;;  %v958_v31 = vld [vmem:[%s1266_s1 + $0xc0] sm:$0xff]  ;;  %v972_v47 = vld [vmem:[%s1266_s1 + $0x130] sm:$0xff] }
   0xd   :  { %571 = vmatpush.bf16.msra.mxu3 %v963_v11  ;;  %v664_v32 = vld [vmem:[%s1268_s0] sm:$0xf]  ;;  %v920_v34 = vld [vmem:[%s1268_s0 + $0x4] sm:$0xf]  ;;  %v672_v36 = vld [vmem:[%s1268_s0 + $0x8] sm:$0xf] }
   0xe   :  { %515 = vmatpush.bf16.msra.mxu0 %v938_v12  ;;  %v666_v35 = vld [vmem:[%s1268_s0 + $0x1c] sm:$0xf0]  ;;  %v924_v37 = vld [vmem:[%s1268_s0 + $0x20] sm:$0xf0]  ;;  %v921_v38 = vld [vmem:[%s1268_s0 + $0xc] sm:$0xf]  ;;  %v665_v42 = vor.u32 %v923_v33, %v664_v32 }
   0xf   :  { %534 = vmatpush.bf16.msra.mxu1 %v946_v13  ;;  %v674_v39 = vld [vmem:[%s1268_s0 + $0x24] sm:$0xf0]  ;;  %v669_v43 = vor.u32 %v920_v34, %v666_v35  ;;  %v673_v44 = vor.u32 %v924_v37, %v672_v36  ;;  %v982_v48 = vld [vmem:[%s1266_s1 + $0x180] sm:$0xff]  ;;  %v980_v49 = vld [vmem:[%s1266_s1 + $0x170] sm:$0xff] }
  0x10   :  { %553 = vmatpush.bf16.msra.mxu2 %v954_v14  ;;  %v983_v40 = vld [vmem:[%s1266_s1 + $0x188] sm:$0xff]  ;;  %v677_v45 = vor.u32 %v921_v38, %v674_v39  ;;  %v970_v52 = vld [vmem:[%s1266_s1 + $0x120] sm:$0xff]  ;;  %v692_v54 = vld [vmem:[%s1268_s0 + $0x38] sm:$0xf] }
  0x11   :  { %572 = vmatpush.bf16.msra.mxu3 %v962_v15  ;;  %v971_v50 = vld [vmem:[%s1266_s1 + $0x128] sm:$0xff]  ;;  %v978_v53 = vld [vmem:[%s1266_s1 + $0x160] sm:$0xff]  ;;  %v930_v55 = vld [vmem:[%s1268_s0 + $0x50] sm:$0xf0] }
  0x12   :  { %516 = vmatpush.bf16.msra.mxu0 %v937_v16  ;;  %v979_v51 = vld [vmem:[%s1266_s1 + $0x168] sm:$0xff]  ;;  %v927_v56 = vld [vmem:[%s1268_s0 + $0x3c] sm:$0xf]  ;;  %v694_v57 = vld [vmem:[%s1268_s0 + $0x54] sm:$0xf0]  ;;  %v693_v63 = vor.u32 %v930_v55, %v692_v54 }
  0x13   :  { %535 = vmatpush.bf16.msra.mxu1 %v945_v17  ;;  %v700_v58 = vld [vmem:[%s1268_s0 + $0x40] sm:$0xf]  ;;  %v931_v59 = vld [vmem:[%s1268_s0 + $0x58] sm:$0xf0]  ;;  %v928_v60 = vld [vmem:[%s1268_s0 + $0x44] sm:$0xf]  ;;  %v697_v0 = vor.u32 %v927_v56, %v694_v57 }
  0x14   :  { %554 = vmatpush.bf16.msra.mxu2 %v953_v18  ;;  %v702_v61 = vld [vmem:[%s1268_s0 + $0x5c] sm:$0xf0]  ;;  %v969_v62 = vld [vmem:[%s1266_s1 + $0x118] sm:$0xff]  ;;  %v701_v1 = vor.u32 %v931_v59, %v700_v58  ;;  %v968_v4 = vld [vmem:[%s1266_s1 + $0x110] sm:$0xff] }
  0x15   :  { %573 = vmatpush.bf16.msra.mxu3 %v961_v19  ;;  %v705_v2 = vor.u32 %v928_v60, %v702_v61  ;;  %v977_v3 = vld [vmem:[%s1266_s1 + $0x158] sm:$0xff]  ;;  %v976_v5 = vld [vmem:[%s1266_s1 + $0x150] sm:$0xff]  ;;  %v967_v6 = vld [vmem:[%s1266_s1 + $0x108] sm:$0xff] }
  0x16   :  { %517 = vmatpush.bf16.msra.mxu0 %v936_v20  ;;  %v975_v7 = vld [vmem:[%s1266_s1 + $0x148] sm:$0xff]  ;;  %v966_v8 = vld [vmem:[%s1266_s1 + $0x100] sm:$0xff]  ;;  %v680_v10 = vld [vmem:[%s1268_s0 + $0x10] sm:$0xf] }
  0x17   :  { %536 = vmatpush.bf16.msra.mxu1 %v944_v21  ;;  %v974_v9 = vld [vmem:[%s1266_s1 + $0x140] sm:$0xff]  ;;  %v925_v11 = vld [vmem:[%s1268_s0 + $0x28] sm:$0xf0]  ;;  %v708_v12 = vld [vmem:[%s1268_s0 + $0x48] sm:$0xf] }
  0x18   :  { %555 = vmatpush.bf16.msra.mxu2 %v952_v22  ;;  %v932_v13 = vld [vmem:[%s1268_s0 + $0x60] sm:$0xf0]  ;;  %v922_v14 = vld [vmem:[%s1268_s0 + $0x14] sm:$0xf]  ;;  %v682_v15 = vld [vmem:[%s1268_s0 + $0x2c] sm:$0xf0]  ;;  %v681_v18 = vor.u32 %v925_v11, %v680_v10 }
  0x19   :  { %574 = vmatpush.bf16.msra.mxu3 %v960_v23  ;;  %v688_v16 = vld [vmem:[%s1268_s0 + $0x18] sm:$0xf]  ;;  %v926_v17 = vld [vmem:[%s1268_s0 + $0x30] sm:$0xf0]  ;;  %v709_v19 = vor.u32 %v932_v13, %v708_v12  ;;  %v685_v20 = vor.u32 %v922_v14, %v682_v15  ;;  %v929_v22 = vld [vmem:[%s1268_s0 + $0x4c] sm:$0xf] }
  0x1a   :  { %518 = vmatpush.bf16.msra.mxu0 %v935_v24  ;;  %v689_v21 = vor.u32 %v926_v17, %v688_v16  ;;  %v710_v23 = vld [vmem:[%s1268_s0 + $0x64] sm:$0xf0]  ;;  %v716_v24 = vld [vmem:[%s1268_s0 + $0x50] sm:$0xf]  ;;  %v992_v37 = vld [vmem:[%s1267_s2] ss:$0 sm:$0xff] }
  0x1b   :  { %537 = vmatpush.bf16.msra.mxu1 %v943_v25  ;;  %v933_v25 = vld [vmem:[%s1268_s0 + $0x68] sm:$0xf0] }
  0x1c   :  { %556 = vmatpush.bf16.msra.mxu2 %v951_v26  ;;  %v713_v26 = vor.u32 %v929_v22, %v710_v23 }
  0x1d   :  { %575 = vmatpush.bf16.msra.mxu3 %v959_v27  ;;  %v717_v27 = vor.u32 %v933_v25, %v716_v24 }
  0x1e   :  { %519 = vmatpush.bf16.msra.mxu0 %v934_v28 }
  0x1f   :  { %538 = vmatpush.bf16.msra.mxu1 %v942_v29 }
  0x20   :  { %557 = vmatpush.bf16.msra.mxu2 %v950_v30 }
  0x21   :  { %576 = vmatpush.bf16.msra.mxu3 %v958_v31  ;;  %520 = vmatmul.bf16.vlgmr.msra.gmra.mxu0 %v665_v42 }
  0x22   :  { %588 = vmatpush.bf16.msrb.mxu0 %v973_v41  ;;  %539 = vmatmul.bf16.vlgmr.msra.gmra.mxu1 %v669_v43 }
  0x23   :  { %558 = vmatmul.bf16.vlgmr.msra.gmra.mxu2 %v673_v44  ;;  %607 = vmatpush.bf16.msrb.mxu1 %v981_v46 }
  0x24   :  { %632 = vmatpush.bf16.msrb.mxu2 %v983_v40  ;;  %577 = vmatmul.bf16.vlgmr.msra.gmra.mxu3 %v677_v45 }
  0x25   :  { %984 = vmatpush.bf16.msrb.mxu3 %v973_v41 }
  0x26   :  { %589 = vmatpush.bf16.msrb.mxu0 %v972_v47 }
  0x27   :  { %608 = vmatpush.bf16.msrb.mxu1 %v980_v49 }
  0x28   :  { %633 = vmatpush.bf16.msrb.mxu2 %v982_v48 }
  0x29   :  { %985 = vmatpush.bf16.msrb.mxu3 %v972_v47 }
  0x2a   :  { %590 = vmatpush.bf16.msrb.mxu0 %v971_v50 }
  0x2b   :  { %609 = vmatpush.bf16.msrb.mxu1 %v979_v51 }
  0x2d   :  { %986 = vmatpush.bf16.msrb.mxu3 %v971_v50 }
  0x2e   :  { %591 = vmatpush.bf16.msrb.mxu0 %v970_v52 }
  0x2f   :  { %610 = vmatpush.bf16.msrb.mxu1 %v978_v53 }
  0x31   :  { %987 = vmatpush.bf16.msrb.mxu3 %v970_v52  ;;  %525 = vmatmul.bf16.gmra.mxu0 %v693_v63 }
  0x32   :  { %592 = vmatpush.bf16.msrb.mxu0 %v969_v62  ;;  %544 = vmatmul.bf16.gmra.mxu1 %v697_v0 }
  0x33   :  { %563 = vmatmul.bf16.gmra.mxu2 %v701_v1  ;;  %611 = vmatpush.bf16.msrb.mxu1 %v977_v3 }
  0x34   :  { %582 = vmatmul.bf16.gmra.mxu3 %v705_v2 }
  0x35   :  { %988 = vmatpush.bf16.msrb.mxu3 %v969_v62 }
  0x36   :  { %593 = vmatpush.bf16.msrb.mxu0 %v968_v4 }
  0x37   :  { %612 = vmatpush.bf16.msrb.mxu1 %v976_v5 }
  0x39   :  { %989 = vmatpush.bf16.msrb.mxu3 %v968_v4 }
  0x3a   :  { %594 = vmatpush.bf16.msrb.mxu0 %v967_v6 }
  0x3b   :  { %613 = vmatpush.bf16.msrb.mxu1 %v975_v7 }
  0x3d   :  { %990 = vmatpush.bf16.msrb.mxu3 %v967_v6 }
  0x3e   :  { %595 = vmatpush.bf16.msrb.mxu0 %v966_v8 }
  0x3f   :  { %614 = vmatpush.bf16.msrb.mxu1 %v974_v9 }
  0x41   :  { %991 = vmatpush.bf16.msrb.mxu3 %v966_v8  ;;  %596 = vmatmul.bf16.vlgmr.msrb.gmra.mxu0 %v681_v18 }
  0x42   :  { %615 = vmatmul.bf16.vlgmr.msrb.gmra.mxu1 %v685_v20 }
  0x43   :  { %918 = vmatmul.msk.bf16.vlgmr.msrb.gmra.mxu2 %vm505_vm0, %v689_v21 }
  0x44   :  { %601 = vmatmul.bf16.vlgmr.msrb.gmra.mxu3 %v709_v19 }
  0x52   :  { %620 = vmatmul.bf16.gmra.mxu1 %v713_v26 }
  0x53   :  { %919 = vmatmul.msk.bf16.gmra.mxu2 %vm505_vm0, %v717_v27 }
  0x9e   :  { %v521_v28 = vpop.f32.mrf.mxu0 }
  0x9f   :  { %v540_v29 = vpop.f32.mrf.mxu1  ;;  %v522_v39 = vadd.f32 %v992_v37, %v521_v28 }
  0xa1   :  { %v541_v43 = vadd.f32 %v540_v29, %v522_v39 }
  0xa6   :  { %v559_v30 = vpop.f32.mrf.mxu2  ;;  %v523_v32 = vpop.f32.mrf.mxu0 }
  0xa7   :  { %v578_v31 = vpop.f32.mrf.mxu3  ;;  %v542_v33 = vpop.f32.mrf.mxu1  ;;  %v560_v45 = vadd.f32 %v559_v30, %v541_v43  ;;  %v524_v46 = vadd.f32 %v992_v37, %v523_v32 }
  0xa9   :  { %v579_v49 = vadd.f32 %v578_v31, %v560_v45  ;;  %v543_v51 = vadd.f32 %v542_v33, %v524_v46 }
  0xae   :  { %v561_v34 = vpop.f32.mrf.mxu2  ;;  %v526_v35 = vpop.f32.mrf.mxu0 }
  0xaf   :  { %v545_v36 = vpop.f32.mrf.mxu1  ;;  %v580_v38 = vpop.f32.mrf.mxu3  ;;  %v562_v53 = vadd.f32 %v561_v34, %v543_v51  ;;  %v527_v55 = vadd.f32 %v992_v37, %v526_v35 }
  0xb1   :  { %v581_v59 = vadd.f32 %v580_v38, %v562_v53  ;;  %v546_v62 = vadd.f32 %v545_v36, %v527_v55 }
  0xb6   :  { %v564_v40 = vpop.f32.mrf.mxu2  ;;  %v528_v41 = vpop.f32.mrf.mxu0 }
  0xb7   :  { %v547_v42 = vpop.f32.mrf.mxu1  ;;  %v583_v44 = vpop.f32.mrf.mxu3  ;;  %v565_v2 = vadd.f32 %v564_v40, %v546_v62  ;;  %v529_v6 = vadd.f32 %v992_v37, %v528_v41 }
  0xb9   :  { %v584_v9 = vadd.f32 %v583_v44, %v565_v2  ;;  %v548_v11 = vadd.f32 %v547_v42, %v529_v6 }
  0xbe   :  { %v566_v47 = vpop.f32.mrf.mxu2  ;;  %v597_v48 = vpop.f32.mrf.mxu0 }
  0xbf   :  { %v616_v50 = vpop.f32.mrf.mxu1  ;;  %v598_v52 = vadd.f32 %v597_v48, %v579_v49  ;;  %v585_v54 = vpop.f32.mrf.mxu3  ;;  %v567_v14 = vadd.f32 %v566_v47, %v548_v11 }
  0xc1   :  { %v617_v56 = vadd.f32 %v616_v50, %v598_v52  ;;  %v586_v19 = vadd.f32 %v585_v54, %v567_v14 }
  0xc6   :  { %v635_v57 = vpop.f32.mrf.mxu2  ;;  %v599_v58 = vpop.f32.mrf.mxu0 }
  0xc7   :  { %v636_v60 = vadd.f32 %v635_v57, %v617_v56  ;;  %v618_v61 = vpop.f32.mrf.mxu1  ;;  %v600_v0 = vadd.f32 %v599_v58, %v581_v59  ;;  %v602_v4 = vpop.f32.mrf.mxu3 }
  0xc8   :  { %v603_v12 = vadd.f32 %v602_v4, %v584_v9 }
  0xc9   :  { %v645_v63 = vmax.f32 %v636_v60, 0.0  ;;  %v619_v3 = vadd.f32 %v618_v61, %v600_v0 }
  0xcb   :  { %v649_v1 = vpack.c.bf16 %v645_v63, %v645_v63 }
  0xcd   :  { %654 = vst.msk [vmem:[%s1269_s3] sm:$0xf] %vm653_vm1, %v649_v1 }
  0xce   :  { %v637_v5 = vpop.f32.mrf.mxu2 }
  0xcf   :  { %v638_v7 = vadd.f32 %v637_v5, %v619_v3  ;;  %v621_v8 = vpop.f32.mrf.mxu1  ;;  %v604_v18 = vpop.f32.mrf.mxu3 }
  0xd0   :  { %v622_v15 = vadd.f32 %v621_v8, %v603_v12  ;;  %v605_v22 = vadd.f32 %v604_v18, %v586_v19 }
  0xd1   :  { %v646_v10 = vmax.f32 %v638_v7, 0.0 }
  0xd3   :  { %v650_v13 = vpack.c.bf16 %v646_v10, %v646_v10 }
  0xd5   :  { %655 = vst.msk [vmem:[%s1269_s3 + $0x4] sm:$0xf] %vm653_vm1, %v650_v13 }
  0xd6   :  { %v640_v16 = vpop.f32.mrf.mxu2 }
  0xd7   :  { %v641_v17 = vadd.f32 %v640_v16, %v622_v15  ;;  %v623_v21 = vpop.f32.mrf.mxu1 }
  0xd8   :  { %v624_v24 = vadd.f32 %v623_v21, %v605_v22 }
  0xd9   :  { %v647_v20 = vmax.f32 %v641_v17, 0.0 }
  0xdb   :  { %v651_v23 = vpack.c.bf16 %v647_v20, %v647_v20 }
  0xdd   :  { %656 = vst.msk [vmem:[%s1269_s3 + $0x8] sm:$0xf] %vm653_vm1, %v651_v23 }
  0xde   :  { %v642_v25 = vpop.f32.mrf.mxu2 }
  0xdf   :  { %v643_v26 = vadd.f32 %v642_v25, %v624_v24 }
  0xe1   :  { %v648_v27 = vmax.f32 %v643_v26, 0.0 }
  0xe3   :  { %v652_v28 = vpack.c.bf16 %v648_v27, %v648_v27 }
  0xe5   :  { %657 = vst.msk [vmem:[%s1269_s3 + $0xc] sm:$0xf] %vm653_vm1, %v652_v28 }

// kernel: forward.7
= control target key start
LH: loop header
LB: loop body
LE: loop exit
PB: predicated region body
PF: predicated region fallthrough
CT: control target
= control target key end

     0   :  { %vm898_vm0 = vcmask 523264   ;;  %s2070_s1 = inlined_call_operand.vmem [shape: bf16[1600,128], index: 1, kind: input, shape index: {}]   ;;  %s2071_s2 = inlined_call_operand.vmem [shape: f32[1,128], index: 2, kind: input, shape index: {}]   ;;  %s2072_s0 = inlined_call_operand.vmem [shape: bf16[16,1600], index: 0, kind: input, shape index: {}]   ;;  %s2073_s3 = inlined_call_operand.vmem [shape: bf16[16,128], index: 3, kind: output, shape index: {}]  }
   0x1   :  { %v1567_v0 = vld [vmem:[%s2070_s1 + $0x38] sm:$0xff]  ;;  %v1566_v4 = vld [vmem:[%s2070_s1 + $0x30] sm:$0xff]  ;;  %v1565_v8 = vld [vmem:[%s2070_s1 + $0x28] sm:$0xff] }
   0x2   :  { %v1583_v1 = vld [vmem:[%s2070_s1 + $0xb8] sm:$0xff]  ;;  %902 = vmatpush.bf16.msra.mxu0 %v1567_v0  ;;  %v1582_v5 = vld [vmem:[%s2070_s1 + $0xb0] sm:$0xff]  ;;  %v1581_v9 = vld [vmem:[%s2070_s1 + $0xa8] sm:$0xff] }
   0x3   :  { %v1591_v2 = vld [vmem:[%s2070_s1 + $0xf8] sm:$0xff]  ;;  %930 = vmatpush.bf16.msra.mxu2 %v1583_v1  ;;  %v1590_v6 = vld [vmem:[%s2070_s1 + $0xf0] sm:$0xff]  ;;  %v1589_v10 = vld [vmem:[%s2070_s1 + $0xe8] sm:$0xff] }
   0x4   :  { %v1575_v3 = vld [vmem:[%s2070_s1 + $0x78] sm:$0xff]  ;;  %944 = vmatpush.bf16.msra.mxu3 %v1591_v2  ;;  %v1574_v7 = vld [vmem:[%s2070_s1 + $0x70] sm:$0xff]  ;;  %v1573_v11 = vld [vmem:[%s2070_s1 + $0x68] sm:$0xff] }
   0x5   :  { %916 = vmatpush.bf16.msra.mxu1 %v1575_v3  ;;  %v1564_v12 = vld [vmem:[%s2070_s1 + $0x20] sm:$0xff]  ;;  %v1563_v16 = vld [vmem:[%s2070_s1 + $0x18] sm:$0xff]  ;;  %v1562_v20 = vld [vmem:[%s2070_s1 + $0x10] sm:$0xff] }
   0x6   :  { %903 = vmatpush.bf16.msra.mxu0 %v1566_v4  ;;  %v1580_v13 = vld [vmem:[%s2070_s1 + $0xa0] sm:$0xff]  ;;  %v1579_v17 = vld [vmem:[%s2070_s1 + $0x98] sm:$0xff]  ;;  %v1578_v21 = vld [vmem:[%s2070_s1 + $0x90] sm:$0xff] }
   0x7   :  { %931 = vmatpush.bf16.msra.mxu2 %v1582_v5  ;;  %v1588_v14 = vld [vmem:[%s2070_s1 + $0xe0] sm:$0xff]  ;;  %v1587_v18 = vld [vmem:[%s2070_s1 + $0xd8] sm:$0xff]  ;;  %v1586_v22 = vld [vmem:[%s2070_s1 + $0xd0] sm:$0xff] }
   0x8   :  { %945 = vmatpush.bf16.msra.mxu3 %v1590_v6  ;;  %v1572_v15 = vld [vmem:[%s2070_s1 + $0x60] sm:$0xff]  ;;  %v1571_v19 = vld [vmem:[%s2070_s1 + $0x58] sm:$0xff]  ;;  %v1570_v23 = vld [vmem:[%s2070_s1 + $0x50] sm:$0xff] }
   0x9   :  { %917 = vmatpush.bf16.msra.mxu1 %v1574_v7  ;;  %v1561_v24 = vld [vmem:[%s2070_s1 + $0x8] sm:$0xff]  ;;  %v1560_v28 = vld [vmem:[%s2070_s1] sm:$0xff]  ;;  %v1599_v31 = vld [vmem:[%s2070_s1 + $0x138] sm:$0xff] }
   0xa   :  { %904 = vmatpush.bf16.msra.mxu0 %v1565_v8  ;;  %v1577_v25 = vld [vmem:[%s2070_s1 + $0x88] sm:$0xff]  ;;  %v1576_v29 = vld [vmem:[%s2070_s1 + $0x80] sm:$0xff]  ;;  %v1553_v33 = vld [vmem:[%s2072_s0 + $0x30] sm:$0xf0] }
   0xb   :  { %932 = vmatpush.bf16.msra.mxu2 %v1581_v9  ;;  %v1585_v26 = vld [vmem:[%s2070_s1 + $0xc8] sm:$0xff]  ;;  %v1584_v30 = vld [vmem:[%s2070_s1 + $0xc0] sm:$0xff]  ;;  %v1615_v34 = vld [vmem:[%s2070_s1 + $0x1b8] sm:$0xff] }
   0xc   :  { %946 = vmatpush.bf16.msra.mxu3 %v1589_v10  ;;  %v1569_v27 = vld [vmem:[%s2070_s1 + $0x48] sm:$0xff]  ;;  %v1096_v32 = vld [vmem:[%s2072_s0] sm:$0xf]  ;;  %v1554_v36 = vld [vmem:[%s2072_s0 + $0x38] sm:$0xf0] }
   0xd   :  { %918 = vmatpush.bf16.msra.mxu1 %v1573_v11  ;;  %v1104_v35 = vld [vmem:[%s2072_s0 + $0x8] sm:$0xf]  ;;  %v1623_v37 = vld [vmem:[%s2070_s1 + $0x1f8] sm:$0xff]  ;;  %v1548_v38 = vld [vmem:[%s2072_s0 + $0xc] sm:$0xf]  ;;  %v1097_v41 = vor.u32 %v1553_v33, %v1096_v32 }
   0xe   :  { %905 = vmatpush.bf16.msra.mxu0 %v1564_v12  ;;  %v1106_v39 = vld [vmem:[%s2072_s0 + $0x3c] sm:$0xf0]  ;;  %v1607_v42 = vld [vmem:[%s2070_s1 + $0x178] sm:$0xff]  ;;  %v1105_v43 = vor.u32 %v1554_v36, %v1104_v35  ;;  %v1547_v44 = vld [vmem:[%s2072_s0 + $0x4] sm:$0xf] }
   0xf   :  { %933 = vmatpush.bf16.msra.mxu2 %v1580_v13  ;;  %v1568_v40 = vld [vmem:[%s2070_s1 + $0x40] sm:$0xff]  ;;  %v1098_v45 = vld [vmem:[%s2072_s0 + $0x34] sm:$0xf0]  ;;  %v1598_v46 = vld [vmem:[%s2070_s1 + $0x130] sm:$0xff]  ;;  %v1109_v47 = vor.u32 %v1548_v38, %v1106_v39 }
  0x10   :  { %947 = vmatpush.bf16.msra.mxu3 %v1588_v14  ;;  %v1614_v48 = vld [vmem:[%s2070_s1 + $0x1b0] sm:$0xff]  ;;  %v1101_v50 = vor.u32 %v1547_v44, %v1098_v45  ;;  %v1597_v52 = vld [vmem:[%s2070_s1 + $0x128] sm:$0xff]  ;;  %v1596_v56 = vld [vmem:[%s2070_s1 + $0x120] sm:$0xff] }
  0x11   :  { %919 = vmatpush.bf16.msra.mxu1 %v1572_v15  ;;  %v1622_v49 = vld [vmem:[%s2070_s1 + $0x1f0] sm:$0xff]  ;;  %v1613_v53 = vld [vmem:[%s2070_s1 + $0x1a8] sm:$0xff]  ;;  %v1612_v57 = vld [vmem:[%s2070_s1 + $0x1a0] sm:$0xff] }
  0x12   :  { %906 = vmatpush.bf16.msra.mxu0 %v1563_v16  ;;  %v1606_v51 = vld [vmem:[%s2070_s1 + $0x170] sm:$0xff]  ;;  %v1621_v54 = vld [vmem:[%s2070_s1 + $0x1e8] sm:$0xff]  ;;  %v1620_v58 = vld [vmem:[%s2070_s1 + $0x1e0] sm:$0xff] }
  0x13   :  { %934 = vmatpush.bf16.msra.mxu2 %v1579_v17  ;;  %v1605_v55 = vld [vmem:[%s2070_s1 + $0x168] sm:$0xff]  ;;  %v1604_v59 = vld [vmem:[%s2070_s1 + $0x160] sm:$0xff]  ;;  %v1595_v60 = vld [vmem:[%s2070_s1 + $0x118] sm:$0xff] }
  0x14   :  { %948 = vmatpush.bf16.msra.mxu3 %v1587_v18  ;;  %v1611_v61 = vld [vmem:[%s2070_s1 + $0x198] sm:$0xff]  ;;  %v1594_v0 = vld [vmem:[%s2070_s1 + $0x110] sm:$0xff]  ;;  %v1593_v4 = vld [vmem:[%s2070_s1 + $0x108] sm:$0xff] }
  0x15   :  { %920 = vmatpush.bf16.msra.mxu1 %v1571_v19  ;;  %v1619_v62 = vld [vmem:[%s2070_s1 + $0x1d8] sm:$0xff]  ;;  %v1610_v1 = vld [vmem:[%s2070_s1 + $0x190] sm:$0xff]  ;;  %v1609_v5 = vld [vmem:[%s2070_s1 + $0x188] sm:$0xff] }
  0x16   :  { %907 = vmatpush.bf16.msra.mxu0 %v1562_v20  ;;  %v1603_v63 = vld [vmem:[%s2070_s1 + $0x158] sm:$0xff]  ;;  %v1618_v2 = vld [vmem:[%s2070_s1 + $0x1d0] sm:$0xff]  ;;  %v1617_v6 = vld [vmem:[%s2070_s1 + $0x1c8] sm:$0xff] }
  0x17   :  { %935 = vmatpush.bf16.msra.mxu2 %v1578_v21  ;;  %v1602_v3 = vld [vmem:[%s2070_s1 + $0x150] sm:$0xff]  ;;  %v1601_v7 = vld [vmem:[%s2070_s1 + $0x148] sm:$0xff]  ;;  %v1592_v8 = vld [vmem:[%s2070_s1 + $0x100] sm:$0xff] }
  0x18   :  { %949 = vmatpush.bf16.msra.mxu3 %v1586_v22  ;;  %v1608_v9 = vld [vmem:[%s2070_s1 + $0x180] sm:$0xff]  ;;  %v1631_v11 = vld [vmem:[%s2070_s1 + $0x238] sm:$0xff]  ;;  %v1112_v13 = vld [vmem:[%s2072_s0 + $0x10] sm:$0xf] }
  0x19   :  { %921 = vmatpush.bf16.msra.mxu1 %v1570_v23  ;;  %v1616_v10 = vld [vmem:[%s2070_s1 + $0x1c0] sm:$0xff]  ;;  %v1647_v12 = vld [vmem:[%s2070_s1 + $0x2b8] sm:$0xff]  ;;  %v1556_v16 = vld [vmem:[%s2072_s0 + $0x48] sm:$0xf0] }
  0x1a   :  { %908 = vmatpush.bf16.msra.mxu0 %v1561_v24  ;;  %v1555_v14 = vld [vmem:[%s2072_s0 + $0x40] sm:$0xf0]  ;;  %v1120_v15 = vld [vmem:[%s2072_s0 + $0x18] sm:$0xf]  ;;  %v1550_v18 = vld [vmem:[%s2072_s0 + $0x1c] sm:$0xf] }
  0x1b   :  { %936 = vmatpush.bf16.msra.mxu2 %v1577_v25  ;;  %v1655_v17 = vld [vmem:[%s2070_s1 + $0x2f8] sm:$0xff]  ;;  %v1122_v19 = vld [vmem:[%s2072_s0 + $0x4c] sm:$0xf0]  ;;  %v1600_v20 = vld [vmem:[%s2070_s1 + $0x140] sm:$0xff]  ;;  %v1113_v23 = vor.u32 %v1555_v14, %v1112_v13  ;;  %v1121_v24 = vor.u32 %v1556_v16, %v1120_v15 }
  0x1c   :  { %950 = vmatpush.bf16.msra.mxu3 %v1585_v26  ;;  %v1549_v21 = vld [vmem:[%s2072_s0 + $0x14] sm:$0xf]  ;;  %v1114_v22 = vld [vmem:[%s2072_s0 + $0x44] sm:$0xf0]  ;;  %v1639_v25 = vld [vmem:[%s2070_s1 + $0x278] sm:$0xff]  ;;  %v1125_v26 = vor.u32 %v1550_v18, %v1122_v19 }
  0x1d   :  { %922 = vmatpush.bf16.msra.mxu1 %v1569_v27  ;;  %v1117_v27 = vor.u32 %v1549_v21, %v1114_v22  ;;  %v1629_v32 = vld [vmem:[%s2070_s1 + $0x228] sm:$0xff]  ;;  %v1628_v36 = vld [vmem:[%s2070_s1 + $0x220] sm:$0xff]  ;;  %v1626_v44 = vld [vmem:[%s2070_s1 + $0x210] sm:$0xff] }
  0x1e   :  { %909 = vmatpush.bf16.msra.mxu0 %v1560_v28  ;;  %v1630_v28 = vld [vmem:[%s2070_s1 + $0x230] sm:$0xff]  ;;  %v1645_v33 = vld [vmem:[%s2070_s1 + $0x2a8] sm:$0xff]  ;;  %v1652_v38 = vld [vmem:[%s2070_s1 + $0x2e0] sm:$0xff] }
  0x1f   :  { %937 = vmatpush.bf16.msra.mxu2 %v1576_v29  ;;  %v1646_v29 = vld [vmem:[%s2070_s1 + $0x2b0] sm:$0xff]  ;;  %v1637_v35 = vld [vmem:[%s2070_s1 + $0x268] sm:$0xff]  ;;  %v1636_v39 = vld [vmem:[%s2070_s1 + $0x260] sm:$0xff] }
  0x20   :  { %951 = vmatpush.bf16.msra.mxu3 %v1584_v30  ;;  %v1654_v30 = vld [vmem:[%s2070_s1 + $0x2f0] sm:$0xff] }
  0x21   :  { %923 = vmatpush.bf16.msra.mxu1 %v1568_v40  ;;  %910 = vmatmul.bf16.vlgmr.msra.gmra.mxu0 %v1097_v41  ;;  %v1627_v40 = vld [vmem:[%s2070_s1 + $0x218] sm:$0xff]  ;;  %v1642_v45 = vld [vmem:[%s2070_s1 + $0x290] sm:$0xff] }
  0x22   :  { %958 = vmatpush.bf16.msrb.mxu0 %v1599_v31  ;;  %938 = vmatmul.bf16.vlgmr.msra.gmra.mxu2 %v1105_v43  ;;  %v1638_v31 = vld [vmem:[%s2070_s1 + $0x270] sm:$0xff]  ;;  %v1643_v41 = vld [vmem:[%s2070_s1 + $0x298] sm:$0xff] }
  0x23   :  { %986 = vmatpush.bf16.msrb.mxu2 %v1615_v34  ;;  %952 = vmatmul.bf16.vlgmr.msra.gmra.mxu3 %v1109_v47  ;;  %v1653_v34 = vld [vmem:[%s2070_s1 + $0x2e8] sm:$0xff]  ;;  %v1635_v43 = vld [vmem:[%s2070_s1 + $0x258] sm:$0xff]  ;;  %v1634_v47 = vld [vmem:[%s2070_s1 + $0x250] sm:$0xff] }
  0x24   :  { %1000 = vmatpush.bf16.msrb.mxu3 %v1623_v37  ;;  %924 = vmatmul.bf16.vlgmr.msra.gmra.mxu1 %v1101_v50  ;;  %v1644_v37 = vld [vmem:[%s2070_s1 + $0x2a0] sm:$0xff]  ;;  %v1649_v50 = vld [vmem:[%s2070_s1 + $0x2c8] sm:$0xff] }
  0x25   :  { %972 = vmatpush.bf16.msrb.mxu1 %v1607_v42  ;;  %v1651_v42 = vld [vmem:[%s2070_s1 + $0x2d8] sm:$0xff] }
  0x26   :  { %959 = vmatpush.bf16.msrb.mxu0 %v1598_v46  ;;  %v1650_v46 = vld [vmem:[%s2070_s1 + $0x2d0] sm:$0xff] }
  0x27   :  { %987 = vmatpush.bf16.msrb.mxu2 %v1614_v48  ;;  %v1625_v48 = vld [vmem:[%s2070_s1 + $0x208] sm:$0xff] }
  0x28   :  { %1001 = vmatpush.bf16.msrb.mxu3 %v1622_v49  ;;  %v1641_v49 = vld [vmem:[%s2070_s1 + $0x288] sm:$0xff] }
  0x29   :  { %973 = vmatpush.bf16.msrb.mxu1 %v1606_v51  ;;  %v1633_v51 = vld [vmem:[%s2070_s1 + $0x248] sm:$0xff] }
  0x2a   :  { %960 = vmatpush.bf16.msrb.mxu0 %v1597_v52  ;;  %v1624_v52 = vld [vmem:[%s2070_s1 + $0x200] sm:$0xff] }
  0x2b   :  { %988 = vmatpush.bf16.msrb.mxu2 %v1613_v53  ;;  %v1640_v53 = vld [vmem:[%s2070_s1 + $0x280] sm:$0xff] }
  0x2c   :  { %1002 = vmatpush.bf16.msrb.mxu3 %v1621_v54  ;;  %v1648_v54 = vld [vmem:[%s2070_s1 + $0x2c0] sm:$0xff] }
  0x2d   :  { %974 = vmatpush.bf16.msrb.mxu1 %v1605_v55  ;;  %v1128_v55 = vld [vmem:[%s2072_s0 + $0x20] sm:$0xf] }
  0x2e   :  { %961 = vmatpush.bf16.msrb.mxu0 %v1596_v56  ;;  %v1557_v56 = vld [vmem:[%s2072_s0 + $0x50] sm:$0xf0] }
  0x2f   :  { %989 = vmatpush.bf16.msrb.mxu2 %v1612_v57  ;;  %v1136_v57 = vld [vmem:[%s2072_s0 + $0x28] sm:$0xf] }
  0x30   :  { %1003 = vmatpush.bf16.msrb.mxu3 %v1620_v58  ;;  %v1558_v58 = vld [vmem:[%s2072_s0 + $0x58] sm:$0xf0] }
  0x31   :  { %975 = vmatpush.bf16.msrb.mxu1 %v1604_v59  ;;  %v1552_v59 = vld [vmem:[%s2072_s0 + $0x2c] sm:$0xf] }
  0x32   :  { %962 = vmatpush.bf16.msrb.mxu0 %v1595_v60  ;;  %v1138_v60 = vld [vmem:[%s2072_s0 + $0x5c] sm:$0xf0] }
  0x33   :  { %990 = vmatpush.bf16.msrb.mxu2 %v1611_v61  ;;  %v1659_v61 = vld [vmem:[%s2070_s1 + $0x318] sm:$0xff] }
  0x34   :  { %1004 = vmatpush.bf16.msrb.mxu3 %v1619_v62  ;;  %v1632_v62 = vld [vmem:[%s2070_s1 + $0x240] sm:$0xff] }
  0x35   :  { %976 = vmatpush.bf16.msrb.mxu1 %v1603_v63  ;;  %v1129_v63 = vor.u32 %v1557_v56, %v1128_v55 }
  0x36   :  { %963 = vmatpush.bf16.msrb.mxu0 %v1594_v0  ;;  %v1551_v0 = vld [vmem:[%s2072_s0 + $0x24] sm:$0xf] }
  0x37   :  { %991 = vmatpush.bf16.msrb.mxu2 %v1610_v1  ;;  %v1130_v1 = vld [vmem:[%s2072_s0 + $0x54] sm:$0xf0] }
  0x38   :  { %1005 = vmatpush.bf16.msrb.mxu3 %v1618_v2  ;;  %v1137_v2 = vor.u32 %v1558_v58, %v1136_v57 }
  0x39   :  { %977 = vmatpush.bf16.msrb.mxu1 %v1602_v3  ;;  %v1141_v3 = vor.u32 %v1552_v59, %v1138_v60 }
  0x3a   :  { %964 = vmatpush.bf16.msrb.mxu0 %v1593_v4  ;;  %v1133_v4 = vor.u32 %v1551_v0, %v1130_v1 }
  0x3b   :  { %992 = vmatpush.bf16.msrb.mxu2 %v1609_v5  ;;  %v1658_v5 = vld [vmem:[%s2070_s1 + $0x310] sm:$0xff] }
  0x3c   :  { %1006 = vmatpush.bf16.msrb.mxu3 %v1617_v6  ;;  %v1657_v6 = vld [vmem:[%s2070_s1 + $0x308] sm:$0xff] }
  0x3d   :  { %978 = vmatpush.bf16.msrb.mxu1 %v1601_v7  ;;  %v1656_v7 = vld [vmem:[%s2070_s1 + $0x300] sm:$0xff] }
  0x3e   :  { %965 = vmatpush.bf16.msrb.mxu0 %v1592_v8  ;;  %v1144_v8 = vld [vmem:[%s2072_s0 + $0x30] sm:$0xf] }
  0x3f   :  { %993 = vmatpush.bf16.msrb.mxu2 %v1608_v9  ;;  %v1559_v9 = vld [vmem:[%s2072_s0 + $0x60] sm:$0xf0] }
  0x40   :  { %1007 = vmatpush.bf16.msrb.mxu3 %v1616_v10  ;;  %v1145_v10 = vor.u32 %v1559_v9, %v1144_v8 }
  0x41   :  { %979 = vmatpush.bf16.msrb.mxu1 %v1600_v20  ;;  %966 = vmatmul.bf16.vlgmr.msrb.gmra.mxu0 %v1113_v23 }
  0x42   :  { %1014 = vmatpush.bf16.msra.mxu0 %v1631_v11  ;;  %994 = vmatmul.bf16.vlgmr.msrb.gmra.mxu2 %v1121_v24 }
  0x43   :  { %1042 = vmatpush.bf16.msra.mxu2 %v1647_v12  ;;  %1008 = vmatmul.bf16.vlgmr.msrb.gmra.mxu3 %v1125_v26 }
  0x44   :  { %1056 = vmatpush.bf16.msra.mxu3 %v1655_v17  ;;  %980 = vmatmul.bf16.vlgmr.msrb.gmra.mxu1 %v1117_v27  ;;  %v1665_v17 = vld [vmem:[%s2071_s2] ss:$0 sm:$0xff] }
  0x45   :  { %1028 = vmatpush.bf16.msra.mxu1 %v1639_v25 }
  0x46   :  { %1015 = vmatpush.bf16.msra.mxu0 %v1630_v28 }
  0x47   :  { %1043 = vmatpush.bf16.msra.mxu2 %v1646_v29 }
  0x48   :  { %1057 = vmatpush.bf16.msra.mxu3 %v1654_v30 }
  0x49   :  { %1029 = vmatpush.bf16.msra.mxu1 %v1638_v31 }
  0x4a   :  { %1016 = vmatpush.bf16.msra.mxu0 %v1629_v32 }
  0x4b   :  { %1044 = vmatpush.bf16.msra.mxu2 %v1645_v33 }
  0x4c   :  { %1058 = vmatpush.bf16.msra.mxu3 %v1653_v34 }
  0x4d   :  { %1030 = vmatpush.bf16.msra.mxu1 %v1637_v35 }
  0x4e   :  { %1017 = vmatpush.bf16.msra.mxu0 %v1628_v36 }
  0x4f   :  { %1045 = vmatpush.bf16.msra.mxu2 %v1644_v37 }
  0x50   :  { %1059 = vmatpush.bf16.msra.mxu3 %v1652_v38 }
  0x51   :  { %1031 = vmatpush.bf16.msra.mxu1 %v1636_v39 }
  0x52   :  { %1018 = vmatpush.bf16.msra.mxu0 %v1627_v40 }
  0x53   :  { %1046 = vmatpush.bf16.msra.mxu2 %v1643_v41 }
  0x54   :  { %1060 = vmatpush.bf16.msra.mxu3 %v1651_v42 }
  0x55   :  { %1032 = vmatpush.bf16.msra.mxu1 %v1635_v43 }
  0x56   :  { %1019 = vmatpush.bf16.msra.mxu0 %v1626_v44 }
  0x57   :  { %1047 = vmatpush.bf16.msra.mxu2 %v1642_v45 }
  0x58   :  { %1061 = vmatpush.bf16.msra.mxu3 %v1650_v46 }
  0x59   :  { %1033 = vmatpush.bf16.msra.mxu1 %v1634_v47 }
  0x5a   :  { %1020 = vmatpush.bf16.msra.mxu0 %v1625_v48 }
  0x5b   :  { %1048 = vmatpush.bf16.msra.mxu2 %v1641_v49 }
  0x5c   :  { %1062 = vmatpush.bf16.msra.mxu3 %v1649_v50 }
  0x5d   :  { %1034 = vmatpush.bf16.msra.mxu1 %v1633_v51 }
  0x5e   :  { %1021 = vmatpush.bf16.msra.mxu0 %v1624_v52 }
  0x5f   :  { %1049 = vmatpush.bf16.msra.mxu2 %v1640_v53 }
  0x60   :  { %1063 = vmatpush.bf16.msra.mxu3 %v1648_v54 }
  0x61   :  { %1035 = vmatpush.bf16.msra.mxu1 %v1632_v62  ;;  %1022 = vmatmul.bf16.vlgmr.msra.gmra.mxu0 %v1129_v63 }
  0x62   :  { %1074 = vmatpush.bf16.msrb.mxu0 %v1659_v61  ;;  %1050 = vmatmul.bf16.vlgmr.msra.gmra.mxu2 %v1137_v2 }
  0x63   :  { %1064 = vmatmul.bf16.vlgmr.msra.gmra.mxu3 %v1141_v3 }
  0x64   :  { %1036 = vmatmul.bf16.vlgmr.msra.gmra.mxu1 %v1133_v4 }
  0x66   :  { %1075 = vmatpush.bf16.msrb.mxu0 %v1658_v5 }
  0x6a   :  { %1076 = vmatpush.bf16.msrb.mxu0 %v1657_v6 }
  0x6e   :  { %1077 = vmatpush.bf16.msrb.mxu0 %v1656_v7 }
  0x71   :  { %1546 = vmatmul.msk.bf16.vlgmr.msrb.gmra.mxu0 %vm898_vm0, %v1145_v10 }
  0x9e   :  { %v911_v11 = vpop.f32.mrf.mxu0 }
  0x9f   :  { %v912_v19 = vadd.f32 %v1665_v17, %v911_v11 }
  0xa1   :  { %v925_v12 = vpop.f32.mrf.mxu1 }
  0xa2   :  { %v926_v22 = vadd.f32 %v925_v12, %v912_v19 }
  0xa5   :  { %v939_v13 = vpop.f32.mrf.mxu2 }
  0xa6   :  { %v913_v14 = vpop.f32.mrf.mxu0  ;;  %v953_v15 = vpop.f32.mrf.mxu3  ;;  %v940_v25 = vadd.f32 %v939_v13, %v926_v22 }
  0xa7   :  { %v914_v24 = vadd.f32 %v1665_v17, %v913_v14 }
  0xa8   :  { %v954_v29 = vadd.f32 %v953_v15, %v940_v25 }
  0xa9   :  { %v927_v16 = vpop.f32.mrf.mxu1 }
  0xaa   :  { %v928_v27 = vadd.f32 %v927_v16, %v914_v24 }
  0xad   :  { %v941_v18 = vpop.f32.mrf.mxu2 }
  0xae   :  { %v955_v21 = vpop.f32.mrf.mxu3  ;;  %v942_v31 = vadd.f32 %v941_v18, %v928_v27 }
  0xb0   :  { %v956_v34 = vadd.f32 %v955_v21, %v942_v31 }
  0xbe   :  { %v967_v20 = vpop.f32.mrf.mxu0 }
  0xbf   :  { %v968_v33 = vadd.f32 %v967_v20, %v954_v29 }
  0xc1   :  { %v981_v23 = vpop.f32.mrf.mxu1 }
  0xc2   :  { %v982_v37 = vadd.f32 %v981_v23, %v968_v33 }
  0xc5   :  { %v995_v26 = vpop.f32.mrf.mxu2 }
  0xc6   :  { %v969_v28 = vpop.f32.mrf.mxu0  ;;  %v1009_v30 = vpop.f32.mrf.mxu3  ;;  %v996_v41 = vadd.f32 %v995_v26, %v982_v37 }
  0xc7   :  { %v970_v38 = vadd.f32 %v969_v28, %v956_v34 }
  0xc8   :  { %v1010_v46 = vadd.f32 %v1009_v30, %v996_v41 }
  0xc9   :  { %v983_v32 = vpop.f32.mrf.mxu1 }
  0xca   :  { %v984_v42 = vadd.f32 %v983_v32, %v970_v38 }
  0xcd   :  { %v997_v35 = vpop.f32.mrf.mxu2 }
  0xce   :  { %v1011_v39 = vpop.f32.mrf.mxu3  ;;  %v998_v43 = vadd.f32 %v997_v35, %v984_v42 }
  0xd0   :  { %v1012_v47 = vadd.f32 %v1011_v39, %v998_v43 }
  0xde   :  { %v1023_v36 = vpop.f32.mrf.mxu0 }
  0xdf   :  { %v1024_v48 = vadd.f32 %v1023_v36, %v1010_v46 }
  0xe1   :  { %v1037_v40 = vpop.f32.mrf.mxu1 }
  0xe2   :  { %v1038_v52 = vadd.f32 %v1037_v40, %v1024_v48 }
  0xe5   :  { %v1051_v44 = vpop.f32.mrf.mxu2 }
  0xe6   :  { %v1025_v45 = vpop.f32.mrf.mxu0  ;;  %v1065_v49 = vpop.f32.mrf.mxu3  ;;  %v1052_v55 = vadd.f32 %v1051_v44, %v1038_v52 }
  0xe7   :  { %v1026_v50 = vadd.f32 %v1025_v45, %v1012_v47 }
  0xe8   :  { %v1066_v58 = vadd.f32 %v1065_v49, %v1052_v55 }
  0xe9   :  { %v1039_v51 = vpop.f32.mrf.mxu1 }
  0xea   :  { %v1040_v56 = vadd.f32 %v1039_v51, %v1026_v50 }
  0xed   :  { %v1053_v53 = vpop.f32.mrf.mxu2 }
  0xee   :  { %v1079_v54 = vpop.f32.mrf.mxu0  ;;  %v1054_v57 = vadd.f32 %v1053_v53, %v1040_v56  ;;  %v1067_v59 = vpop.f32.mrf.mxu3 }
  0xef   :  { %v1080_v61 = vadd.f32 %v1079_v54, %v1066_v58 }
  0xf0   :  { %v1068_v60 = vadd.f32 %v1067_v59, %v1054_v57 }
  0xf1   :  { %v1084_v0 = vmax.f32 %v1080_v61, 0.0 }
  0xf6   :  { %v1081_v62 = vpop.f32.mrf.mxu0 }
  0xf7   :  { %v1082_v63 = vadd.f32 %v1081_v62, %v1068_v60 }
  0xf9   :  { %v1085_v1 = vmax.f32 %v1082_v63, 0.0 }
  0xfb   :  { %v1663_v2 = vpack.c.bf16 %v1085_v1, %v1084_v0 }
  0xfd   :  { %1664 = vst [vmem:[%s2073_s3] sm:$0xff] %v1663_v2  }

// kernel: forward.9
= control target key start
LH: loop header
LB: loop body
LE: loop exit
PB: predicated region body
PF: predicated region fallthrough
CT: control target
= control target key end

     0   :  { %s415_s0 = inlined_call_operand.vmem [shape: bf16[2,1,256], index: 0, kind: input, shape index: {}]   ;;  %s416_s1 = inlined_call_operand.vmem [shape: f32[256,128], index: 1, kind: input, shape index: {}]   ;;  %s417_s2 = inlined_call_operand.vmem [shape: f32[1,128], index: 2, kind: input, shape index: {}]   ;;  %s418_s3 = inlined_call_operand.vmem [shape: f32[128,128], index: 3, kind: input, shape index: {}]   ;;  %s419_s4 = inlined_call_operand.vmem [shape: f32[1,128], index: 4, kind: input, shape index: {}]   ;;  %s420_s5 = inlined_call_operand.hbm [shape: f32[2,128], index: 5, kind: output, shape index: {}]  }
   0x1   :  { %v42_v0 = vld [vmem:[%s416_s1 + $0x78] sm:$0xff]  ;;  %v41_v1 = vld [vmem:[%s416_s1 + $0x70] sm:$0xff]  ;;  %v40_v4 = vld [vmem:[%s416_s1 + $0x68] sm:$0xff] }
   0x2   :  { %v58_v2 = vld [vmem:[%s416_s1 + $0xf8] sm:$0xff]  ;;  %74 = vmatpush.msra.mxu0 %v42_v0  ;;  %v57_v3 = vld [vmem:[%s416_s1 + $0xf0] sm:$0xff]  ;;  %v56_v5 = vld [vmem:[%s416_s1 + $0xe8] sm:$0xff] }
   0x3   :  { %94 = vmatpush.msra.mxu1 %v58_v2  ;;  %v39_v6 = vld [vmem:[%s416_s1 + $0x60] sm:$0xff]  ;;  %v38_v8 = vld [vmem:[%s416_s1 + $0x58] sm:$0xff]  ;;  %v37_v10 = vld [vmem:[%s416_s1 + $0x50] sm:$0xff] }
   0x4   :  { %75 = vmatpush.msra.mxu0 %v41_v1  ;;  %v55_v7 = vld [vmem:[%s416_s1 + $0xe0] sm:$0xff]  ;;  %v54_v9 = vld [vmem:[%s416_s1 + $0xd8] sm:$0xff]  ;;  %v53_v11 = vld [vmem:[%s416_s1 + $0xd0] sm:$0xff] }
   0x5   :  { %95 = vmatpush.msra.mxu1 %v57_v3  ;;  %v36_v12 = vld [vmem:[%s416_s1 + $0x48] sm:$0xff]  ;;  %v130_v14 = vld [vmem:[%s418_s3 + $0x78] sm:$0xff]  ;;  %v129_v15 = vld [vmem:[%s418_s3 + $0x70] sm:$0xff] }
   0x6   :  { %76 = vmatpush.msra.mxu0 %v40_v4  ;;  %v52_v13 = vld [vmem:[%s416_s1 + $0xc8] sm:$0xff]  ;;  %v35_v16 = vld [vmem:[%s416_s1 + $0x40] sm:$0xff]  ;;  %135 = vmatpush.msra.mxu2 %v130_v14  ;;  %v34_v19 = vld [vmem:[%s416_s1 + $0x38] sm:$0xff] }
   0x7   :  { %96 = vmatpush.msra.mxu1 %v56_v5  ;;  %v51_v17 = vld [vmem:[%s416_s1 + $0xc0] sm:$0xff]  ;;  %v128_v18 = vld [vmem:[%s418_s3 + $0x68] sm:$0xff]  ;;  %v50_v20 = vld [vmem:[%s416_s1 + $0xb8] sm:$0xff] }
   0x8   :  { %77 = vmatpush.msra.mxu0 %v39_v6  ;;  %136 = vmatpush.msra.mxu2 %v129_v15  ;;  %v33_v21 = vld [vmem:[%s416_s1 + $0x30] sm:$0xff]  ;;  %v127_v22 = vld [vmem:[%s418_s3 + $0x60] sm:$0xff] }
   0x9   :  { %97 = vmatpush.msra.mxu1 %v55_v7  ;;  %v49_v23 = vld [vmem:[%s416_s1 + $0xb0] sm:$0xff] }
   0xa   :  { %78 = vmatpush.msra.mxu0 %v38_v8  ;;  %137 = vmatpush.msra.mxu2 %v128_v18 }
   0xb   :  { %98 = vmatpush.msra.mxu1 %v54_v9 }
   0xc   :  { %79 = vmatpush.msra.mxu0 %v37_v10 }
   0xd   :  { %99 = vmatpush.msra.mxu1 %v53_v11 }
   0xe   :  { %80 = vmatpush.msra.mxu0 %v36_v12 }
   0xf   :  { %100 = vmatpush.msra.mxu1 %v52_v13 }
  0x10   :  { %81 = vmatpush.msra.mxu0 %v35_v16 }
  0x11   :  { %101 = vmatpush.msra.mxu1 %v51_v17 }
  0x12   :  { %10 = vsyncpa [#allocation3], 0  ;;  %82 = vmatpush.msra.mxu0 %v34_v19  ;;  %v32_v24 = vld [vmem:[%s416_s1 + $0x28] sm:$0xff]  ;;  %v126_v25 = vld [vmem:[%s418_s3 + $0x58] sm:$0xff]  ;;  %138 = vmatpush.msra.mxu2 %v127_v22  ;;  %vm69_vm0 = vcmask 1041409  }
  0x13   :  { %102 = vmatpush.msra.mxu1 %v50_v20  ;;  %v48_v26 = vld [vmem:[%s416_s1 + $0xa8] sm:$0xff]  ;;  %v21_v27 = vld [vmem:[%s415_s0] sm:$0x3]  ;;  %v22_v28 = vld [vmem:[%s415_s0 + $0x2] sm:$0x3] }
  0x14   :  { %83 = vmatpush.msra.mxu0 %v33_v21  ;;  %v125_v29 = vld [vmem:[%s418_s3 + $0x50] sm:$0xff]  ;;  %v31_v30 = vld [vmem:[%s416_s1 + $0x20] sm:$0xff]  ;;  %139 = vmatpush.msra.mxu2 %v126_v25  ;;  %v23_v32 = vunpack.c.l.bf16 %v21_v27  ;;  %v24_v33 = vunpack.c.l.bf16 %v22_v28  ;;  %v124_v34 = vld [vmem:[%s418_s3 + $0x48] sm:$0xff] }
  0x15   :  { %103 = vmatpush.msra.mxu1 %v49_v23  ;;  %v47_v31 = vld [vmem:[%s416_s1 + $0xa0] sm:$0xff]  ;;  %v30_v35 = vld [vmem:[%s416_s1 + $0x18] sm:$0xff]  ;;  %v29_v38 = vld [vmem:[%s416_s1 + $0x10] sm:$0xff] }
  0x16   :  { %84 = vmatpush.msra.mxu0 %v32_v24  ;;  %v46_v36 = vld [vmem:[%s416_s1 + $0x98] sm:$0xff]  ;;  %140 = vmatpush.msra.mxu2 %v125_v29  ;;  %v123_v37 = vld [vmem:[%s418_s3 + $0x40] sm:$0xff]  ;;  %v45_v39 = vld [vmem:[%s416_s1 + $0x90] sm:$0xff]  ;;  %v65_v40 = vperm.slane %v23_v32, 0  ;;  %v67_v41 = vperm.slane %v24_v33, 0  ;;  %v66_v42 = vperm.slane %v23_v32, 2 }
  0x17   :  { %104 = vmatpush.msra.mxu1 %v48_v26  ;;  %v68_v43 = vperm.slane %v24_v33, 2  ;;  %v122_v44 = vld [vmem:[%s418_s3 + $0x38] sm:$0xff]  ;;  %v28_v45 = vld [vmem:[%s416_s1 + $0x8] sm:$0xff]  ;;  %v121_v47 = vld [vmem:[%s418_s3 + $0x30] sm:$0xff] }
  0x18   :  { %85 = vmatpush.msra.mxu0 %v31_v30  ;;  %141 = vmatpush.msra.mxu2 %v124_v34  ;;  %v44_v46 = vld [vmem:[%s416_s1 + $0x88] sm:$0xff]  ;;  %v27_v48 = vld [vmem:[%s416_s1] sm:$0xff]  ;;  %v70_v50 = vsel %vm69_vm0, %v67_v41, %v65_v40  ;;  %v118_v54 = vld [vmem:[%s418_s3 + $0x18] sm:$0xff] }
  0x19   :  { %105 = vmatpush.msra.mxu1 %v47_v31  ;;  %v43_v49 = vld [vmem:[%s416_s1 + $0x80] sm:$0xff]  ;;  %v71_v51 = vsel %vm69_vm0, %v68_v43, %v66_v42  ;;  %v120_v52 = vld [vmem:[%s418_s3 + $0x28] sm:$0xff]  ;;  %v117_v55 = vld [vmem:[%s418_s3 + $0x10] sm:$0xff] }
  0x1a   :  { %86 = vmatpush.msra.mxu0 %v30_v35  ;;  %142 = vmatpush.msra.mxu2 %v123_v37  ;;  %v119_v53 = vld [vmem:[%s418_s3 + $0x20] sm:$0xff]  ;;  %v116_v56 = vld [vmem:[%s418_s3 + $0x8] sm:$0xff] }
  0x1b   :  { %106 = vmatpush.msra.mxu1 %v46_v36  ;;  %v115_v57 = vld [vmem:[%s418_s3] sm:$0xff] }
  0x1c   :  { %87 = vmatpush.msra.mxu0 %v29_v38  ;;  %143 = vmatpush.msra.mxu2 %v122_v44  ;;  %v193_v58 = vld [vmem:[%s417_s2] ss:$0 sm:$0xff]  ;;  %s225_s2 = smov [#allocation2]  }
  0x1d   :  { %107 = vmatpush.msra.mxu1 %v45_v39  ;;  %v194_v0 = vld [vmem:[%s419_s4] ss:$0 sm:$0xff]  ;;  %s180_s3 = sshll.u32 %s225_s2, 4  ;;  %s182_s4 = sshll.u32 %s420_s5, 4  ;;  %s181_s3 = int_to_ptr.vmem [resolvable:$true] %s180_s3  ;;  %s183_s4 = int_to_ptr.hbm [resolvable:$true] %s182_s4 }
  0x1e   :  { %88 = vmatpush.msra.mxu0 %v28_v45  ;;  %144 = vmatpush.msra.mxu2 %v121_v47 }
  0x1f   :  { %108 = vmatpush.msra.mxu1 %v44_v46 }
  0x20   :  { %89 = vmatpush.msra.mxu0 %v27_v48  ;;  %145 = vmatpush.msra.mxu2 %v120_v52 }
  0x21   :  { %109 = vmatpush.msra.mxu1 %v43_v49  ;;  %90 = vmatmul.f32.vlgmr.msra.gmra.mxu0 %v70_v50 }
  0x22   :  { %110 = vmatmul.f32.vlgmr.msra.gmra.mxu1 %v71_v51  ;;  %146 = vmatpush.msra.mxu2 %v119_v53 }
  0x24   :  { %147 = vmatpush.msra.mxu2 %v118_v54 }
  0x26   :  { %148 = vmatpush.msra.mxu2 %v117_v55 }
  0x28   :  { %149 = vmatpush.msra.mxu2 %v116_v56 }
  0x2a   :  { %150 = vmatpush.msra.mxu2 %v115_v57 }
  0x9e   :  { %v91_v59 = vpop.f32.mrf.mxu0 }
  0x9f   :  { %v111_v60 = vpop.f32.mrf.mxu1  ;;  %v92_v61 = vadd.f32 %v193_v58, %v91_v59 }
  0xa1   :  { %v112_v62 = vadd.f32 %v111_v60, %v92_v61 }
  0xa3   :  { %v114_v63 = vmax.f32 %v112_v62, 0.0 }
  0xa5   :  { %151 = vmatmul.f32.vlgmr.msra.gmra.mxu2 %v114_v63 }
 0x128   :  { %v152_v1 = vpop.f32.mrf.mxu2 }
 0x129   :  { %v153_v2 = vadd.f32 %v194_v0, %v152_v1 }
 0x12b   :  { %v191_v3 = vmul.f32 -1.442695, %v153_v2 }
 0x12d   :  { %195 = vpow2.f32 %v191_v3 }
 0x133   :  { %v196_v4 = vpop.eup %195 }
 0x134   :  { %v158_v5 = vadd.f32 1.0, %v196_v4 }
 0x136   :  { %197 = vrcp.f32 %v158_v5  ;;  %v170_v9 = vand.u32 2147483648, %v158_v5  ;;  %v168_v11 = vand.u32 2147483647, %v158_v5  ;;  %vm164_vm2 = vweird.f32 %v158_v5 }
 0x138   :  { %v171_v13 = vor.u32 1.1754944e-38, %v170_v9  ;;  %vm169_vm4 = vcmp.eq.f32.partialorder %v168_v11, 8.507059e+37 }
 0x13c   :  { %v198_v6 = vpop.eup %197 }
 0x13d   :  { %v160_v7 = vmul.f32 %v198_v6, %v158_v5  ;;  %vm165_vm1 = vweird.f32 %v198_v6 }
 0x13e   :  { %vm166_vm3 = vmor %vm164_vm2, %vm165_vm1 }
 0x13f   :  { %v161_v8 = vsub.f32 1.0, %v160_v7 }
 0x141   :  { %v162_v10 = vmul.f32 %v198_v6, %v161_v8 }
 0x143   :  { %v163_v12 = vadd.f32 %v198_v6, %v162_v10 }
 0x145   :  { %v167_v14 = vsel %vm166_vm3, %v198_v6, %v163_v12 }
 0x146   :  { %v172_v15 = vsel %vm169_vm4, %v171_v13, %v167_v14 }
 0x147   :  { %174 = vst [vmem:[#allocation2] sm:$0x3] %v172_v15 }
 0x148   :  { %185 = dma.vmem_to_hbm [thread:$0]  %s181_s3, 32, %s183_s4, [#allocation3]  }
 0x149   :  { %223 = dma.done.wait [#allocation3], 32  }
 0x14a   :  { %224 = vsyncadd [#allocation3], 4294967264 }
 0x14b   :  { %190 = vsyncpa [#allocation3], 1 }

// kernel: forward.8
= control target key start
LH: loop header
LB: loop body
LE: loop exit
PB: predicated region body
PF: predicated region fallthrough
CT: control target
= control target key end

     0   :  { %s8137_s1 = inlined_call_operand.vmem [shape: bf16[3200,256], index: 1, kind: input, shape index: {}]   ;;  %s8138_s0 = inlined_call_operand.vmem [shape: bf16[16,3200], index: 0, kind: input, shape index: {}]   ;;  %s8139_s2 = inlined_call_operand.vmem [shape: f32[1,256], index: 2, kind: input, shape index: {}]   ;;  %s8140_s3 = inlined_call_operand.vmem [shape: bf16[16,256], index: 3, kind: output, shape index: {}]  }
   0x1   :  { %v3442_v0 = vld [vmem:[%s8137_s1 + $0x70] sm:$0xf]  ;;  %v5024_v1 = vld [vmem:[%s8137_s1 + $0x74] sm:$0xf0]  ;;  %v3434_v11 = vld [vmem:[%s8137_s1 + $0x60] sm:$0xf] }
   0x2   :  { %v3506_v2 = vld [vmem:[%s8137_s1 + $0xf0] sm:$0xf]  ;;  %v3443_v3 = vor.u32 %v5024_v1, %v3442_v0  ;;  %v5040_v4 = vld [vmem:[%s8137_s1 + $0xf4] sm:$0xf0]  ;;  %v5022_v13 = vld [vmem:[%s8137_s1 + $0x64] sm:$0xf0] }
   0x3   :  { %v3570_v5 = vld [vmem:[%s8137_s1 + $0x170] sm:$0xf]  ;;  %v5056_v6 = vld [vmem:[%s8137_s1 + $0x174] sm:$0xf0]  ;;  %v3507_v7 = vor.u32 %v5040_v4, %v3506_v2  ;;  %v3498_v14 = vld [vmem:[%s8137_s1 + $0xe0] sm:$0xf]  ;;  %v3435_v16 = vor.u32 %v5022_v13, %v3434_v11 }
   0x4   :  { %v3571_v8 = vor.u32 %v5056_v6, %v3570_v5  ;;  %v3634_v9 = vld [vmem:[%s8137_s1 + $0x1f0] sm:$0xf]  ;;  %v5072_v10 = vld [vmem:[%s8137_s1 + $0x1f4] sm:$0xf0]  ;;  %2572 = vmatpush.bf16.msra.mxu0 %v3443_v3  ;;  %v5038_v15 = vld [vmem:[%s8137_s1 + $0xe4] sm:$0xf0] }
   0x5   :  { %v3635_v12 = vor.u32 %v5072_v10, %v3634_v9  ;;  %2586 = vmatpush.bf16.msra.mxu1 %v3507_v7  ;;  %v3499_v17 = vor.u32 %v5038_v15, %v3498_v14  ;;  %v3562_v18 = vld [vmem:[%s8137_s1 + $0x160] sm:$0xf]  ;;  %v5054_v19 = vld [vmem:[%s8137_s1 + $0x164] sm:$0xf0]  ;;  %v3426_v23 = vld [vmem:[%s8137_s1 + $0x50] sm:$0xf] }
   0x6   :  { %2600 = vmatpush.bf16.msra.mxu2 %v3571_v8  ;;  %v3626_v20 = vld [vmem:[%s8137_s1 + $0x1e0] sm:$0xf]  ;;  %v3563_v21 = vor.u32 %v5054_v19, %v3562_v18  ;;  %v5070_v22 = vld [vmem:[%s8137_s1 + $0x1e4] sm:$0xf0]  ;;  %v5020_v24 = vld [vmem:[%s8137_s1 + $0x54] sm:$0xf0] }
   0x7   :  { %2614 = vmatpush.bf16.msra.mxu3 %v3635_v12  ;;  %v3627_v25 = vor.u32 %v5070_v22, %v3626_v20  ;;  %v3490_v26 = vld [vmem:[%s8137_s1 + $0xd0] sm:$0xf]  ;;  %v5036_v27 = vld [vmem:[%s8137_s1 + $0xd4] sm:$0xf0]  ;;  %v3427_v29 = vor.u32 %v5020_v24, %v3426_v23  ;;  %v3418_v35 = vld [vmem:[%s8137_s1 + $0x40] sm:$0xf] }
   0x8   :  { %v3554_v28 = vld [vmem:[%s8137_s1 + $0x150] sm:$0xf]  ;;  %2573 = vmatpush.bf16.msra.mxu0 %v3435_v16  ;;  %v5052_v30 = vld [vmem:[%s8137_s1 + $0x154] sm:$0xf0]  ;;  %v3491_v33 = vor.u32 %v5036_v27, %v3490_v26  ;;  %v5018_v36 = vld [vmem:[%s8137_s1 + $0x44] sm:$0xf0] }
   0x9   :  { %v3618_v31 = vld [vmem:[%s8137_s1 + $0x1d0] sm:$0xf]  ;;  %v5068_v32 = vld [vmem:[%s8137_s1 + $0x1d4] sm:$0xf0]  ;;  %2587 = vmatpush.bf16.msra.mxu1 %v3499_v17  ;;  %v3555_v34 = vor.u32 %v5052_v30, %v3554_v28  ;;  %v3482_v37 = vld [vmem:[%s8137_s1 + $0xc0] sm:$0xf]  ;;  %v3419_v44 = vor.u32 %v5018_v36, %v3418_v35 }
   0xa   :  { %2601 = vmatpush.bf16.msra.mxu2 %v3563_v21  ;;  %v3619_v38 = vor.u32 %v5068_v32, %v3618_v31  ;;  %v5034_v39 = vld [vmem:[%s8137_s1 + $0xc4] sm:$0xf0]  ;;  %v3546_v40 = vld [vmem:[%s8137_s1 + $0x140] sm:$0xf]  ;;  %v3410_v47 = vld [vmem:[%s8137_s1 + $0x30] sm:$0xf] }
   0xb   :  { %2615 = vmatpush.bf16.msra.mxu3 %v3627_v25  ;;  %v5050_v41 = vld [vmem:[%s8137_s1 + $0x144] sm:$0xf0]  ;;  %v3610_v42 = vld [vmem:[%s8137_s1 + $0x1c0] sm:$0xf]  ;;  %v3483_v45 = vor.u32 %v5034_v39, %v3482_v37  ;;  %v5016_v48 = vld [vmem:[%s8137_s1 + $0x34] sm:$0xf0] }
   0xc   :  { %v5066_v43 = vld [vmem:[%s8137_s1 + $0x1c4] sm:$0xf0]  ;;  %2574 = vmatpush.bf16.msra.mxu0 %v3427_v29  ;;  %v3547_v46 = vor.u32 %v5050_v41, %v3546_v40  ;;  %v3474_v49 = vld [vmem:[%s8137_s1 + $0xb0] sm:$0xf]  ;;  %v5032_v51 = vld [vmem:[%s8137_s1 + $0xb4] sm:$0xf0]  ;;  %v3411_v56 = vor.u32 %v5016_v48, %v3410_v47 }
   0xd   :  { %2588 = vmatpush.bf16.msra.mxu1 %v3491_v33  ;;  %v3611_v50 = vor.u32 %v5066_v43, %v3610_v42  ;;  %v3538_v52 = vld [vmem:[%s8137_s1 + $0x130] sm:$0xf]  ;;  %v5048_v53 = vld [vmem:[%s8137_s1 + $0x134] sm:$0xf0]  ;;  %v3475_v57 = vor.u32 %v5032_v51, %v3474_v49  ;;  %v3402_v59 = vld [vmem:[%s8137_s1 + $0x20] sm:$0xf] }
   0xe   :  { %2602 = vmatpush.bf16.msra.mxu2 %v3555_v34  ;;  %v3602_v54 = vld [vmem:[%s8137_s1 + $0x1b0] sm:$0xf]  ;;  %v5064_v55 = vld [vmem:[%s8137_s1 + $0x1b4] sm:$0xf0]  ;;  %v3539_v58 = vor.u32 %v5048_v53, %v3538_v52  ;;  %v5014_v60 = vld [vmem:[%s8137_s1 + $0x24] sm:$0xf0] }
   0xf   :  { %2616 = vmatpush.bf16.msra.mxu3 %v3619_v38  ;;  %v3466_v61 = vld [vmem:[%s8137_s1 + $0xa0] sm:$0xf]  ;;  %v3603_v62 = vor.u32 %v5064_v55, %v3602_v54  ;;  %v5030_v63 = vld [vmem:[%s8137_s1 + $0xa4] sm:$0xf0]  ;;  %v3403_v4 = vor.u32 %v5014_v60, %v3402_v59  ;;  %v3394_v7 = vld [vmem:[%s8137_s1 + $0x10] sm:$0xf] }
  0x10   :  { %2575 = vmatpush.bf16.msra.mxu0 %v3419_v44  ;;  %v3530_v0 = vld [vmem:[%s8137_s1 + $0x120] sm:$0xf]  ;;  %v5046_v1 = vld [vmem:[%s8137_s1 + $0x124] sm:$0xf0]  ;;  %v3467_v5 = vor.u32 %v5030_v63, %v3466_v61  ;;  %v5012_v8 = vld [vmem:[%s8137_s1 + $0x14] sm:$0xf0] }
  0x11   :  { %2589 = vmatpush.bf16.msra.mxu1 %v3483_v45  ;;  %v3594_v2 = vld [vmem:[%s8137_s1 + $0x1a0] sm:$0xf]  ;;  %v5062_v3 = vld [vmem:[%s8137_s1 + $0x1a4] sm:$0xf0]  ;;  %v3531_v6 = vor.u32 %v5046_v1, %v3530_v0  ;;  %v3458_v9 = vld [vmem:[%s8137_s1 + $0x90] sm:$0xf]  ;;  %v3395_v16 = vor.u32 %v5012_v8, %v3394_v7 }
  0x12   :  { %2603 = vmatpush.bf16.msra.mxu2 %v3547_v46  ;;  %v3595_v10 = vor.u32 %v5062_v3, %v3594_v2  ;;  %v5028_v11 = vld [vmem:[%s8137_s1 + $0x94] sm:$0xf0]  ;;  %v3522_v12 = vld [vmem:[%s8137_s1 + $0x110] sm:$0xf]  ;;  %v3386_v17 = vld [vmem:[%s8137_s1] sm:$0xf] }
  0x13   :  { %2617 = vmatpush.bf16.msra.mxu3 %v3611_v50  ;;  %v5044_v13 = vld [vmem:[%s8137_s1 + $0x114] sm:$0xf0]  ;;  %v3586_v14 = vld [vmem:[%s8137_s1 + $0x190] sm:$0xf]  ;;  %v5010_v18 = vld [vmem:[%s8137_s1 + $0x4] sm:$0xf0]  ;;  %v3459_v19 = vor.u32 %v5028_v11, %v3458_v9 }
  0x14   :  { %2576 = vmatpush.bf16.msra.mxu0 %v3411_v56  ;;  %v5060_v15 = vld [vmem:[%s8137_s1 + $0x194] sm:$0xf0]  ;;  %v3523_v20 = vor.u32 %v5044_v13, %v3522_v12  ;;  %v3450_v21 = vld [vmem:[%s8137_s1 + $0x80] sm:$0xf]  ;;  %v5026_v22 = vld [vmem:[%s8137_s1 + $0x84] sm:$0xf0]  ;;  %v3387_v31 = vor.u32 %v5010_v18, %v3386_v17 }
  0x15   :  { %2590 = vmatpush.bf16.msra.mxu1 %v3475_v57  ;;  %v3514_v23 = vld [vmem:[%s8137_s1 + $0x100] sm:$0xf]  ;;  %v3587_v24 = vor.u32 %v5060_v15, %v3586_v14  ;;  %v5042_v25 = vld [vmem:[%s8137_s1 + $0x104] sm:$0xf0]  ;;  %v3698_v26 = vld [vmem:[%s8137_s1 + $0x270] sm:$0xf]  ;;  %v3451_v35 = vor.u32 %v5026_v22, %v3450_v21 }
  0x16   :  { %2604 = vmatpush.bf16.msra.mxu2 %v3539_v58  ;;  %v5088_v27 = vld [vmem:[%s8137_s1 + $0x274] sm:$0xf0]  ;;  %v3762_v28 = vld [vmem:[%s8137_s1 + $0x2f0] sm:$0xf]  ;;  %v3578_v33 = vld [vmem:[%s8137_s1 + $0x180] sm:$0xf]  ;;  %v3515_v36 = vor.u32 %v5042_v25, %v3514_v23 }
  0x17   :  { %2618 = vmatpush.bf16.msra.mxu3 %v3603_v62  ;;  %v5104_v29 = vld [vmem:[%s8137_s1 + $0x2f4] sm:$0xf0]  ;;  %v3826_v30 = vld [vmem:[%s8137_s1 + $0x370] sm:$0xf]  ;;  %v5058_v34 = vld [vmem:[%s8137_s1 + $0x184] sm:$0xf0]  ;;  %v3699_v39 = vor.u32 %v5088_v27, %v3698_v26 }
  0x18   :  { %2577 = vmatpush.bf16.msra.mxu0 %v3403_v4  ;;  %v5120_v32 = vld [vmem:[%s8137_s1 + $0x374] sm:$0xf0]  ;;  %v3890_v37 = vld [vmem:[%s8137_s1 + $0x3f0] sm:$0xf]  ;;  %v3763_v40 = vor.u32 %v5104_v29, %v3762_v28  ;;  %v3690_v41 = vld [vmem:[%s8137_s1 + $0x260] sm:$0xf]  ;;  %v3579_v44 = vor.u32 %v5058_v34, %v3578_v33 }
  0x19   :  { %2591 = vmatpush.bf16.msra.mxu1 %v3467_v5  ;;  %v5136_v38 = vld [vmem:[%s8137_s1 + $0x3f4] sm:$0xf0]  ;;  %v5086_v42 = vld [vmem:[%s8137_s1 + $0x264] sm:$0xf0]  ;;  %v3827_v43 = vor.u32 %v5120_v32, %v3826_v30  ;;  %v3754_v45 = vld [vmem:[%s8137_s1 + $0x2e0] sm:$0xf] }
  0x1a   :  { %2605 = vmatpush.bf16.msra.mxu2 %v3531_v6  ;;  %v5102_v46 = vld [vmem:[%s8137_s1 + $0x2e4] sm:$0xf0]  ;;  %v3818_v47 = vld [vmem:[%s8137_s1 + $0x360] sm:$0xf]  ;;  %v3891_v48 = vor.u32 %v5136_v38, %v3890_v37  ;;  %v3682_v52 = vld [vmem:[%s8137_s1 + $0x250] sm:$0xf]  ;;  %v3691_v56 = vor.u32 %v5086_v42, %v3690_v41 }
  0x1b   :  { %2619 = vmatpush.bf16.msra.mxu3 %v3595_v10  ;;  %v5118_v49 = vld [vmem:[%s8137_s1 + $0x364] sm:$0xf0]  ;;  %v3882_v50 = vld [vmem:[%s8137_s1 + $0x3e0] sm:$0xf]  ;;  %v4996_v54 = vld [vmem:[%s8138_s0 + $0x60] sm:$0xf0]  ;;  %v3755_v57 = vor.u32 %v5102_v46, %v3754_v45 }
  0x1c   :  { %2578 = vmatpush.bf16.msra.mxu0 %v3395_v16  ;;  %v5134_v51 = vld [vmem:[%s8137_s1 + $0x3e4] sm:$0xf0]  ;;  %v3286_v53 = vld [vmem:[%s8138_s0] sm:$0xf]  ;;  %v5084_v58 = vld [vmem:[%s8137_s1 + $0x254] sm:$0xf0]  ;;  %v3819_v62 = vor.u32 %v5118_v49, %v3818_v47 }
  0x1d   :  { %2592 = vmatpush.bf16.msra.mxu1 %v3459_v19  ;;  %v3294_v55 = vld [vmem:[%s8138_s0 + $0x8] sm:$0xf]  ;;  %v3746_v59 = vld [vmem:[%s8137_s1 + $0x2d0] sm:$0xf]  ;;  %v5688_v60 = vor.u32 %v4996_v54, %v3286_v53  ;;  %v4997_v61 = vld [vmem:[%s8138_s0 + $0x68] sm:$0xf0]  ;;  %v3883_v3 = vor.u32 %v5134_v51, %v3882_v50  ;;  %v3683_v11 = vor.u32 %v5084_v58, %v3682_v52 }
  0x1e   :  { %2606 = vmatpush.bf16.msra.mxu2 %v3523_v20  ;;  %v5100_v63 = vld [vmem:[%s8137_s1 + $0x2d4] sm:$0xf0]  ;;  %v3810_v0 = vld [vmem:[%s8137_s1 + $0x350] sm:$0xf]  ;;  %v5702_v2 = vor.u32 %v4997_v61, %v3294_v55  ;;  %v4984_v5 = vld [vmem:[%s8138_s0 + $0x4] sm:$0xf] }
  0x1f   :  { %2620 = vmatpush.bf16.msra.mxu3 %v3587_v24  ;;  %v5116_v1 = vld [vmem:[%s8137_s1 + $0x354] sm:$0xf0]  ;;  %v3874_v4 = vld [vmem:[%s8137_s1 + $0x3d0] sm:$0xf]  ;;  %v3288_v6 = vld [vmem:[%s8138_s0 + $0x64] sm:$0xf0]  ;;  %v3747_v12 = vor.u32 %v5100_v63, %v3746_v59 }
  0x20   :  { %2579 = vmatpush.bf16.msra.mxu0 %v3387_v31  ;;  %v5132_v7 = vld [vmem:[%s8137_s1 + $0x3d4] sm:$0xf0]  ;;  %v5718_v8 = vor.u32 %v4984_v5, %v3288_v6  ;;  %v4985_v9 = vld [vmem:[%s8138_s0 + $0xc] sm:$0xf]  ;;  %v3296_v10 = vld [vmem:[%s8138_s0 + $0x6c] sm:$0xf0]  ;;  %v3811_v15 = vor.u32 %v5116_v1, %v3810_v0 }
  0x21   :  { %2593 = vmatpush.bf16.msra.mxu1 %v3451_v35  ;;  %v3674_v13 = vld [vmem:[%s8137_s1 + $0x240] sm:$0xf]  ;;  %v5729_v14 = vor.u32 %v4985_v9, %v3296_v10  ;;  %v5082_v16 = vld [vmem:[%s8137_s1 + $0x244] sm:$0xf0]  ;;  %v3875_v19 = vor.u32 %v5132_v7, %v3874_v4  ;;  %v3666_v26 = vld [vmem:[%s8137_s1 + $0x230] sm:$0xf] }
  0x22   :  { %2607 = vmatpush.bf16.msra.mxu2 %v3515_v36  ;;  %v3738_v17 = vld [vmem:[%s8137_s1 + $0x2c0] sm:$0xf]  ;;  %v5098_v18 = vld [vmem:[%s8137_s1 + $0x2c4] sm:$0xf0]  ;;  %v3675_v24 = vor.u32 %v5082_v16, %v3674_v13  ;;  %v5080_v28 = vld [vmem:[%s8137_s1 + $0x234] sm:$0xf0] }
  0x23   :  { %2621 = vmatpush.bf16.msra.mxu3 %v3579_v44  ;;  %2580 = vmatmul.bf16.vlgmr.msra.gmra.mxu0 %v5688_v60  ;;  %v3802_v20 = vld [vmem:[%s8137_s1 + $0x340] sm:$0xf]  ;;  %v5114_v21 = vld [vmem:[%s8137_s1 + $0x344] sm:$0xf0]  ;;  %v3739_v25 = vor.u32 %v5098_v18, %v3738_v17  ;;  %v3730_v29 = vld [vmem:[%s8137_s1 + $0x2b0] sm:$0xf]  ;;  %v3667_v36 = vor.u32 %v5080_v28, %v3666_v26 }
  0x24   :  { %2628 = vmatpush.bf16.msrb.mxu0 %v3699_v39  ;;  %2594 = vmatmul.bf16.vlgmr.msra.gmra.mxu1 %v5718_v8  ;;  %v3866_v22 = vld [vmem:[%s8137_s1 + $0x3c0] sm:$0xf]  ;;  %v5130_v23 = vld [vmem:[%s8137_s1 + $0x3c4] sm:$0xf0]  ;;  %v3803_v27 = vor.u32 %v5114_v21, %v3802_v20  ;;  %v5096_v30 = vld [vmem:[%s8137_s1 + $0x2b4] sm:$0xf0] }
  0x25   :  { %2642 = vmatpush.bf16.msrb.mxu1 %v3763_v40  ;;  %2608 = vmatmul.bf16.vlgmr.msra.gmra.mxu2 %v5702_v2  ;;  %v3867_v31 = vor.u32 %v5130_v23, %v3866_v22  ;;  %v3794_v32 = vld [vmem:[%s8137_s1 + $0x330] sm:$0xf]  ;;  %v5112_v33 = vld [vmem:[%s8137_s1 + $0x334] sm:$0xf0]  ;;  %v3731_v37 = vor.u32 %v5096_v30, %v3730_v29  ;;  %v3658_v38 = vld [vmem:[%s8137_s1 + $0x220] sm:$0xf] }
  0x26   :  { %2656 = vmatpush.bf16.msrb.mxu2 %v3827_v43  ;;  %2622 = vmatmul.bf16.vlgmr.msra.gmra.mxu3 %v5729_v14  ;;  %v3858_v34 = vld [vmem:[%s8137_s1 + $0x3b0] sm:$0xf]  ;;  %v5128_v35 = vld [vmem:[%s8137_s1 + $0x3b4] sm:$0xf0]  ;;  %v3795_v39 = vor.u32 %v5112_v33, %v3794_v32  ;;  %v5078_v40 = vld [vmem:[%s8137_s1 + $0x224] sm:$0xf0] }
  0x27   :  { %2670 = vmatpush.bf16.msrb.mxu3 %v3891_v48  ;;  %v3722_v41 = vld [vmem:[%s8137_s1 + $0x2a0] sm:$0xf]  ;;  %v5094_v42 = vld [vmem:[%s8137_s1 + $0x2a4] sm:$0xf0]  ;;  %v3859_v43 = vor.u32 %v5128_v35, %v3858_v34  ;;  %v3659_v48 = vor.u32 %v5078_v40, %v3658_v38  ;;  %v3650_v50 = vld [vmem:[%s8137_s1 + $0x210] sm:$0xf] }
  0x28   :  { %2629 = vmatpush.bf16.msrb.mxu0 %v3691_v56  ;;  %v3786_v44 = vld [vmem:[%s8137_s1 + $0x320] sm:$0xf]  ;;  %v5110_v45 = vld [vmem:[%s8137_s1 + $0x324] sm:$0xf0]  ;;  %v3723_v49 = vor.u32 %v5094_v42, %v3722_v41  ;;  %v5076_v51 = vld [vmem:[%s8137_s1 + $0x214] sm:$0xf0] }
  0x29   :  { %2643 = vmatpush.bf16.msrb.mxu1 %v3755_v57  ;;  %v3850_v46 = vld [vmem:[%s8137_s1 + $0x3a0] sm:$0xf]  ;;  %v5126_v47 = vld [vmem:[%s8137_s1 + $0x3a4] sm:$0xf0]  ;;  %v3787_v52 = vor.u32 %v5110_v45, %v3786_v44  ;;  %v3714_v53 = vld [vmem:[%s8137_s1 + $0x290] sm:$0xf]  ;;  %v3651_v1 = vor.u32 %v5076_v51, %v3650_v50 }
  0x2a   :  { %2657 = vmatpush.bf16.msrb.mxu2 %v3819_v62  ;;  %v5092_v54 = vld [vmem:[%s8137_s1 + $0x294] sm:$0xf0]  ;;  %v3778_v55 = vld [vmem:[%s8137_s1 + $0x310] sm:$0xf]  ;;  %v3851_v56 = vor.u32 %v5126_v47, %v3850_v46  ;;  %v3642_v61 = vld [vmem:[%s8137_s1 + $0x200] sm:$0xf] }
  0x2b   :  { %2671 = vmatpush.bf16.msrb.mxu3 %v3883_v3  ;;  %v5108_v57 = vld [vmem:[%s8137_s1 + $0x314] sm:$0xf0]  ;;  %v3842_v58 = vld [vmem:[%s8137_s1 + $0x390] sm:$0xf]  ;;  %v5074_v62 = vld [vmem:[%s8137_s1 + $0x204] sm:$0xf0]  ;;  %v3715_v3 = vor.u32 %v5092_v54, %v3714_v53 }
  0x2c   :  { %2630 = vmatpush.bf16.msrb.mxu0 %v3683_v11  ;;  %v5124_v59 = vld [vmem:[%s8137_s1 + $0x394] sm:$0xf0]  ;;  %v3706_v63 = vld [vmem:[%s8137_s1 + $0x280] sm:$0xf]  ;;  %v5090_v0 = vld [vmem:[%s8137_s1 + $0x284] sm:$0xf0]  ;;  %v3779_v7 = vor.u32 %v5108_v57, %v3778_v55  ;;  %v3643_v20 = vor.u32 %v5074_v62, %v3642_v61 }
  0x2d   :  { %2644 = vmatpush.bf16.msrb.mxu1 %v3747_v12  ;;  %v3770_v4 = vld [vmem:[%s8137_s1 + $0x300] sm:$0xf]  ;;  %v5106_v5 = vld [vmem:[%s8137_s1 + $0x304] sm:$0xf0]  ;;  %v3954_v6 = vld [vmem:[%s8137_s1 + $0x470] sm:$0xf]  ;;  %v3843_v12 = vor.u32 %v5124_v59, %v3842_v58  ;;  %v3707_v21 = vor.u32 %v5090_v0, %v3706_v63 }
  0x2e   :  { %2658 = vmatpush.bf16.msrb.mxu2 %v3811_v15  ;;  %v5152_v9 = vld [vmem:[%s8137_s1 + $0x474] sm:$0xf0]  ;;  %v4018_v10 = vld [vmem:[%s8137_s1 + $0x4f0] sm:$0xf]  ;;  %v3834_v16 = vld [vmem:[%s8137_s1 + $0x380] sm:$0xf] }
  0x2f   :  { %2672 = vmatpush.bf16.msrb.mxu3 %v3875_v19  ;;  %v5168_v11 = vld [vmem:[%s8137_s1 + $0x4f4] sm:$0xf0]  ;;  %v4082_v13 = vld [vmem:[%s8137_s1 + $0x570] sm:$0xf]  ;;  %v5122_v17 = vld [vmem:[%s8137_s1 + $0x384] sm:$0xf0]  ;;  %v3955_v26 = vor.u32 %v5152_v9, %v3954_v6 }
  0x30   :  { %2631 = vmatpush.bf16.msrb.mxu0 %v3675_v24  ;;  %v5184_v15 = vld [vmem:[%s8137_s1 + $0x574] sm:$0xf0]  ;;  %v3302_v18 = vld [vmem:[%s8138_s0 + $0x10] sm:$0xf]  ;;  %v4998_v19 = vld [vmem:[%s8138_s0 + $0x70] sm:$0xf0]  ;;  %v4019_v30 = vor.u32 %v5168_v11, %v4018_v10  ;;  %v3835_v35 = vor.u32 %v5122_v17, %v3834_v16 }
  0x31   :  { %2645 = vmatpush.bf16.msrb.mxu1 %v3739_v25  ;;  %v3310_v22 = vld [vmem:[%s8138_s0 + $0x18] sm:$0xf]  ;;  %v4999_v23 = vld [vmem:[%s8138_s0 + $0x78] sm:$0xf0]  ;;  %v4146_v24 = vld [vmem:[%s8137_s1 + $0x5f0] sm:$0xf]  ;;  %v3771_v25 = vor.u32 %v5106_v5, %v3770_v4 }
  0x32   :  { %2659 = vmatpush.bf16.msrb.mxu2 %v3803_v27  ;;  %v5200_v27 = vld [vmem:[%s8137_s1 + $0x5f4] sm:$0xf0]  ;;  %v4986_v28 = vld [vmem:[%s8138_s0 + $0x14] sm:$0xf]  ;;  %v4987_v32 = vld [vmem:[%s8138_s0 + $0x1c] sm:$0xf]  ;;  %v5912_v40 = vor.u32 %v4999_v23, %v3310_v22 }
  0x33   :  { %2673 = vmatpush.bf16.msrb.mxu3 %v3867_v31  ;;  %v3304_v29 = vld [vmem:[%s8138_s0 + $0x74] sm:$0xf0]  ;;  %v4083_v31 = vor.u32 %v5184_v15, %v4082_v13  ;;  %v3946_v33 = vld [vmem:[%s8137_s1 + $0x460] sm:$0xf]  ;;  %v5150_v34 = vld [vmem:[%s8137_s1 + $0x464] sm:$0xf0]  ;;  %v4147_v41 = vor.u32 %v5200_v27, %v4146_v24 }
  0x34   :  { %2632 = vmatpush.bf16.msrb.mxu0 %v3667_v36  ;;  %v5901_v36 = vor.u32 %v4998_v19, %v3302_v18  ;;  %v4010_v38 = vld [vmem:[%s8137_s1 + $0x4e0] sm:$0xf]  ;;  %v5920_v44 = vor.u32 %v4986_v28, %v3304_v29  ;;  %v3947_v45 = vor.u32 %v5150_v34, %v3946_v33  ;;  %v5198_v47 = vld [vmem:[%s8137_s1 + $0x5e4] sm:$0xf0]  ;;  %v3938_v50 = vld [vmem:[%s8137_s1 + $0x450] sm:$0xf] }
  0x35   :  { %2646 = vmatpush.bf16.msrb.mxu1 %v3731_v37  ;;  %v3312_v37 = vld [vmem:[%s8138_s0 + $0x7c] sm:$0xf0]  ;;  %v5148_v51 = vld [vmem:[%s8137_s1 + $0x454] sm:$0xf0]  ;;  %v4002_v53 = vld [vmem:[%s8137_s1 + $0x4d0] sm:$0xf] }
  0x36   :  { %2660 = vmatpush.bf16.msrb.mxu2 %v3795_v39  ;;  %v5166_v39 = vld [vmem:[%s8137_s1 + $0x4e4] sm:$0xf0]  ;;  %v4074_v42 = vld [vmem:[%s8137_s1 + $0x560] sm:$0xf]  ;;  %v5164_v54 = vld [vmem:[%s8137_s1 + $0x4d4] sm:$0xf0]  ;;  %v3939_v58 = vor.u32 %v5148_v51, %v3938_v50 }
  0x37   :  { %2674 = vmatpush.bf16.msrb.mxu3 %v3859_v43  ;;  %v5182_v43 = vld [vmem:[%s8137_s1 + $0x564] sm:$0xf0]  ;;  %v4138_v46 = vld [vmem:[%s8137_s1 + $0x5e0] sm:$0xf]  ;;  %v5180_v57 = vld [vmem:[%s8137_s1 + $0x554] sm:$0xf0]  ;;  %v4003_v62 = vor.u32 %v5164_v54, %v4002_v53 }
  0x38   :  { %2633 = vmatpush.bf16.msrb.mxu0 %v3659_v48  ;;  %v5928_v48 = vor.u32 %v4987_v32, %v3312_v37  ;;  %v4139_v55 = vor.u32 %v5198_v47, %v4138_v46  ;;  %v4130_v59 = vld [vmem:[%s8137_s1 + $0x5d0] sm:$0xf]  ;;  %v5196_v61 = vld [vmem:[%s8137_s1 + $0x5d4] sm:$0xf0]  ;;  %v3930_v63 = vld [vmem:[%s8137_s1 + $0x440] sm:$0xf] }
  0x39   :  { %2647 = vmatpush.bf16.msrb.mxu1 %v3723_v49  ;;  %v4011_v49 = vor.u32 %v5166_v39, %v4010_v38  ;;  %v5146_v0 = vld [vmem:[%s8137_s1 + $0x444] sm:$0xf0]  ;;  %v4131_v5 = vor.u32 %v5196_v61, %v4130_v59  ;;  %v4058_v6 = vld [vmem:[%s8137_s1 + $0x540] sm:$0xf]  ;;  %v3922_v13 = vld [vmem:[%s8137_s1 + $0x430] sm:$0xf] }
  0x3a   :  { %2661 = vmatpush.bf16.msrb.mxu2 %v3787_v52  ;;  %v4075_v52 = vor.u32 %v5182_v43, %v4074_v42  ;;  %v5162_v4 = vld [vmem:[%s8137_s1 + $0x4c4] sm:$0xf0]  ;;  %v3931_v9 = vor.u32 %v5146_v0, %v3930_v63  ;;  %v4122_v10 = vld [vmem:[%s8137_s1 + $0x5c0] sm:$0xf]  ;;  %v5144_v15 = vld [vmem:[%s8137_s1 + $0x434] sm:$0xf0] }
  0x3b   :  { %2675 = vmatpush.bf16.msrb.mxu3 %v3851_v56  ;;  %v4066_v56 = vld [vmem:[%s8137_s1 + $0x550] sm:$0xf]  ;;  %v5194_v11 = vld [vmem:[%s8137_s1 + $0x5c4] sm:$0xf0]  ;;  %v5160_v18 = vld [vmem:[%s8137_s1 + $0x4b4] sm:$0xf0]  ;;  %v3923_v22 = vor.u32 %v5144_v15, %v3922_v13 }
  0x3c   :  { %2634 = vmatpush.bf16.msrb.mxu0 %v3651_v1  ;;  %v4067_v1 = vor.u32 %v5180_v57, %v4066_v56  ;;  %v3986_v17 = vld [vmem:[%s8137_s1 + $0x4b0] sm:$0xf]  ;;  %v4123_v19 = vor.u32 %v5194_v11, %v4122_v10  ;;  %v5192_v24 = vld [vmem:[%s8137_s1 + $0x5b4] sm:$0xf0]  ;;  %v5142_v27 = vld [vmem:[%s8137_s1 + $0x424] sm:$0xf0] }
  0x3d   :  { %2648 = vmatpush.bf16.msrb.mxu1 %v3715_v3  ;;  %v3994_v3 = vld [vmem:[%s8137_s1 + $0x4c0] sm:$0xf]  ;;  %v4114_v23 = vld [vmem:[%s8137_s1 + $0x5b0] sm:$0xf]  ;;  %v5174_v33 = vld [vmem:[%s8137_s1 + $0x524] sm:$0xf0] }
  0x3e   :  { %2662 = vmatpush.bf16.msrb.mxu2 %v3779_v7  ;;  %v5178_v7 = vld [vmem:[%s8137_s1 + $0x544] sm:$0xf0]  ;;  %v3978_v29 = vld [vmem:[%s8137_s1 + $0x4a0] sm:$0xf]  ;;  %v3906_v39 = vld [vmem:[%s8137_s1 + $0x410] sm:$0xf] }
  0x3f   :  { %2676 = vmatpush.bf16.msrb.mxu3 %v3843_v12  ;;  %v3995_v12 = vor.u32 %v5162_v4, %v3994_v3  ;;  %v4059_v16 = vor.u32 %v5178_v7, %v4058_v6  ;;  %v4042_v32 = vld [vmem:[%s8137_s1 + $0x520] sm:$0xf]  ;;  %v5190_v37 = vld [vmem:[%s8137_s1 + $0x5a4] sm:$0xf0]  ;;  %v3970_v42 = vld [vmem:[%s8137_s1 + $0x490] sm:$0xf] }
  0x40   :  { %2635 = vmatpush.bf16.msrb.mxu0 %v3643_v20  ;;  %v4050_v20 = vld [vmem:[%s8137_s1 + $0x530] sm:$0xf]  ;;  %v4043_v43 = vor.u32 %v5174_v33, %v4042_v32  ;;  %v5172_v47 = vld [vmem:[%s8137_s1 + $0x514] sm:$0xf0]  ;;  %v5138_v54 = vld [vmem:[%s8137_s1 + $0x404] sm:$0xf0] }
  0x41   :  { %2649 = vmatpush.bf16.msrb.mxu1 %v3707_v21  ;;  %v5176_v21 = vld [vmem:[%s8137_s1 + $0x534] sm:$0xf0]  ;;  %v4034_v46 = vld [vmem:[%s8137_s1 + $0x510] sm:$0xf]  ;;  %v5154_v56 = vld [vmem:[%s8137_s1 + $0x484] sm:$0xf0] }
  0x42   :  { %2663 = vmatpush.bf16.msrb.mxu2 %v3771_v25  ;;  %v3987_v25 = vor.u32 %v5160_v18, %v3986_v17  ;;  %v4051_v28 = vor.u32 %v5176_v21, %v4050_v20  ;;  %v4098_v50 = vld [vmem:[%s8137_s1 + $0x590] sm:$0xf]  ;;  %v5188_v51 = vld [vmem:[%s8137_s1 + $0x594] sm:$0xf0]  ;;  %v5170_v59 = vld [vmem:[%s8137_s1 + $0x504] sm:$0xf0]  ;;  %v4035_v0 = vor.u32 %v5172_v47, %v4034_v46 }
  0x43   :  { %2677 = vmatpush.bf16.msrb.mxu3 %v3835_v35  ;;  %2636 = vmatmul.bf16.vlgmr.msrb.gmra.mxu0 %v5901_v36  ;;  %v4106_v35 = vld [vmem:[%s8137_s1 + $0x5a0] sm:$0xf]  ;;  %v4210_v61 = vld [vmem:[%s8137_s1 + $0x670] sm:$0xf]  ;;  %v5248_v4 = vld [vmem:[%s8137_s1 + $0x774] sm:$0xf0] }
  0x44   :  { %2684 = vmatpush.bf16.msra.mxu0 %v3955_v26  ;;  %2650 = vmatmul.bf16.vlgmr.msrb.gmra.mxu1 %v5920_v44  ;;  %v3914_v26 = vld [vmem:[%s8137_s1 + $0x420] sm:$0xf]  ;;  %v4274_v63 = vld [vmem:[%s8137_s1 + $0x6f0] sm:$0xf]  ;;  %v5186_v7 = vld [vmem:[%s8137_s1 + $0x584] sm:$0xf0] }
  0x45   :  { %2698 = vmatpush.bf16.msra.mxu1 %v4019_v30  ;;  %2664 = vmatmul.bf16.vlgmr.msrb.gmra.mxu2 %v5912_v40  ;;  %v5158_v30 = vld [vmem:[%s8137_s1 + $0x4a4] sm:$0xf0]  ;;  %v3915_v34 = vor.u32 %v5142_v27, %v3914_v26  ;;  %v4338_v3 = vld [vmem:[%s8137_s1 + $0x770] sm:$0xf]  ;;  %v4090_v6 = vld [vmem:[%s8137_s1 + $0x580] sm:$0xf] }
  0x46   :  { %2712 = vmatpush.bf16.msra.mxu2 %v4083_v31  ;;  %2678 = vmatmul.bf16.vlgmr.msrb.gmra.mxu3 %v5928_v48  ;;  %v4115_v31 = vor.u32 %v5192_v24, %v4114_v23  ;;  %v3979_v38 = vor.u32 %v5158_v30, %v3978_v29  ;;  %v5000_v11 = vld [vmem:[%s8138_s0 + $0x80] sm:$0xf0]  ;;  %v5001_v13 = vld [vmem:[%s8138_s0 + $0x88] sm:$0xf0]  ;;  %v4402_v17 = vld [vmem:[%s8137_s1 + $0x7f0] sm:$0xf]  ;;  %v4091_v26 = vor.u32 %v5186_v7, %v4090_v6 }
  0x47   :  { %2726 = vmatpush.bf16.msra.mxu3 %v4147_v41  ;;  %v5140_v41 = vld [vmem:[%s8137_s1 + $0x414] sm:$0xf0]  ;;  %v4989_v23 = vld [vmem:[%s8138_s0 + $0x2c] sm:$0xf]  ;;  %v3328_v24 = vld [vmem:[%s8138_s0 + $0x8c] sm:$0xf0] }
  0x48   :  { %2685 = vmatpush.bf16.msra.mxu0 %v3947_v45  ;;  %v5156_v45 = vld [vmem:[%s8137_s1 + $0x494] sm:$0xf0]  ;;  %v3907_v53 = vor.u32 %v5140_v41, %v3906_v39  ;;  %v4202_v27 = vld [vmem:[%s8137_s1 + $0x660] sm:$0xf]  ;;  %v5230_v32 = vld [vmem:[%s8137_s1 + $0x6e4] sm:$0xf0]  ;;  %v6156_v41 = vor.u32 %v4989_v23, %v3328_v24 }
  0x49   :  { %2699 = vmatpush.bf16.msra.mxu1 %v4011_v49  ;;  %v4107_v49 = vor.u32 %v5190_v37, %v4106_v35  ;;  %v3971_v57 = vor.u32 %v5156_v45, %v3970_v42  ;;  %v5264_v18 = vld [vmem:[%s8137_s1 + $0x7f4] sm:$0xf0]  ;;  %v4266_v29 = vld [vmem:[%s8137_s1 + $0x6e0] sm:$0xf]  ;;  %v5262_v39 = vld [vmem:[%s8137_s1 + $0x7e4] sm:$0xf0] }
  0x4a   :  { %2713 = vmatpush.bf16.msra.mxu2 %v4075_v52  ;;  %v3898_v52 = vld [vmem:[%s8137_s1 + $0x400] sm:$0xf]  ;;  %v4194_v46 = vld [vmem:[%s8137_s1 + $0x650] sm:$0xf]  ;;  %v5212_v47 = vld [vmem:[%s8137_s1 + $0x654] sm:$0xf0] }
  0x4b   :  { %2727 = vmatpush.bf16.msra.mxu3 %v4139_v55  ;;  %v3962_v55 = vld [vmem:[%s8137_s1 + $0x480] sm:$0xf]  ;;  %v3899_v10 = vor.u32 %v5138_v54, %v3898_v52  ;;  %v4322_v52 = vld [vmem:[%s8137_s1 + $0x750] sm:$0xf]  ;;  %v5206_v24 = vld [vmem:[%s8137_s1 + $0x624] sm:$0xf0] }
  0x4c   :  { %2686 = vmatpush.bf16.msra.mxu0 %v3939_v58  ;;  %v4026_v58 = vld [vmem:[%s8137_s1 + $0x500] sm:$0xf]  ;;  %v3963_v15 = vor.u32 %v5154_v56, %v3962_v55  ;;  %v4386_v54 = vld [vmem:[%s8137_s1 + $0x7d0] sm:$0xf]  ;;  %v5260_v55 = vld [vmem:[%s8137_s1 + $0x7d4] sm:$0xf0]  ;;  %v4195_v56 = vor.u32 %v5212_v47, %v4194_v46 }
  0x4d   :  { %2700 = vmatpush.bf16.msra.mxu1 %v4003_v62  ;;  %v5216_v62 = vld [vmem:[%s8137_s1 + $0x674] sm:$0xf0]  ;;  %v4027_v20 = vor.u32 %v5170_v59, %v4026_v58  ;;  %v4330_v33 = vld [vmem:[%s8137_s1 + $0x760] sm:$0xf]  ;;  %v4290_v47 = vld [vmem:[%s8137_s1 + $0x710] sm:$0xf] }
  0x4e   :  { %2714 = vmatpush.bf16.msra.mxu2 %v4067_v1  ;;  %v5232_v1 = vld [vmem:[%s8137_s1 + $0x6f4] sm:$0xf0]  ;;  %v4186_v59 = vld [vmem:[%s8137_s1 + $0x640] sm:$0xf] }
  0x4f   :  { %2728 = vmatpush.bf16.msra.mxu3 %v4131_v5  ;;  %v4099_v5 = vor.u32 %v5188_v51, %v4098_v50  ;;  %v4275_v21 = vor.u32 %v5232_v1, %v4274_v63  ;;  %v5228_v51 = vld [vmem:[%s8137_s1 + $0x6d4] sm:$0xf0]  ;;  %v4387_v63 = vor.u32 %v5260_v55, %v4386_v54  ;;  %v4314_v1 = vld [vmem:[%s8137_s1 + $0x740] sm:$0xf] }
  0x50   :  { %2687 = vmatpush.bf16.msra.mxu0 %v3931_v9  ;;  %v3318_v9 = vld [vmem:[%s8138_s0 + $0x20] sm:$0xf] }
  0x51   :  { %2701 = vmatpush.bf16.msra.mxu1 %v3995_v12  ;;  %v3326_v12 = vld [vmem:[%s8138_s0 + $0x28] sm:$0xf]  ;;  %v6135_v30 = vor.u32 %v5000_v11, %v3318_v9  ;;  %v5208_v11 = vld [vmem:[%s8137_s1 + $0x634] sm:$0xf0]  ;;  %v4170_v23 = vld [vmem:[%s8137_s1 + $0x620] sm:$0xf] }
  0x52   :  { %2715 = vmatpush.bf16.msra.mxu2 %v4059_v16  ;;  %v4211_v16 = vor.u32 %v5216_v62, %v4210_v61  ;;  %v6146_v35 = vor.u32 %v5001_v13, %v3326_v12  ;;  %v5210_v61 = vld [vmem:[%s8137_s1 + $0x644] sm:$0xf0]  ;;  %v4250_v62 = vld [vmem:[%s8137_s1 + $0x6c0] sm:$0xf]  ;;  %v4242_v12 = vld [vmem:[%s8137_s1 + $0x6b0] sm:$0xf] }
  0x53   :  { %2729 = vmatpush.bf16.msra.mxu3 %v4123_v19  ;;  %v4988_v19 = vld [vmem:[%s8138_s0 + $0x24] sm:$0xf]  ;;  %v4187_v6 = vor.u32 %v5210_v61, %v4186_v59  ;;  %v4218_v55 = vld [vmem:[%s8137_s1 + $0x680] sm:$0xf] }
  0x54   :  { %2688 = vmatpush.bf16.msra.mxu0 %v3923_v22  ;;  %v3320_v22 = vld [vmem:[%s8138_s0 + $0x84] sm:$0xf0] }
  0x55   :  { %2702 = vmatpush.bf16.msra.mxu1 %v3987_v25  ;;  %v4339_v25 = vor.u32 %v5248_v4, %v4338_v3  ;;  %v6148_v37 = vor.u32 %v4988_v19, %v3320_v22  ;;  %v5242_v3 = vld [vmem:[%s8137_s1 + $0x744] sm:$0xf0]  ;;  %v4378_v4 = vld [vmem:[%s8137_s1 + $0x7c0] sm:$0xf]  ;;  %v5256_v19 = vld [vmem:[%s8137_s1 + $0x7b4] sm:$0xf0] }
  0x56   :  { %2716 = vmatpush.bf16.msra.mxu2 %v4051_v28  ;;  %v5214_v28 = vld [vmem:[%s8137_s1 + $0x664] sm:$0xf0]  ;;  %v4315_v9 = vor.u32 %v5242_v3, %v4314_v1  ;;  %v5296_v3 = vld [vmem:[%s8137_s1 + $0x8f4] sm:$0xf0] }
  0x57   :  { %2730 = vmatpush.bf16.msra.mxu3 %v4115_v31  ;;  %v4403_v31 = vor.u32 %v5264_v18, %v4402_v17  ;;  %v4203_v42 = vor.u32 %v5214_v28, %v4202_v27  ;;  %v5240_v17 = vld [vmem:[%s8137_s1 + $0x734] sm:$0xf0]  ;;  %v4370_v18 = vld [vmem:[%s8137_s1 + $0x7b0] sm:$0xf]  ;;  %v5222_v27 = vld [vmem:[%s8137_s1 + $0x6a4] sm:$0xf0] }
  0x58   :  { %2689 = vmatpush.bf16.msra.mxu0 %v3915_v34  ;;  %v5246_v34 = vld [vmem:[%s8137_s1 + $0x764] sm:$0xf0]  ;;  %v4298_v28 = vld [vmem:[%s8137_s1 + $0x720] sm:$0xf] }
  0x59   :  { %2703 = vmatpush.bf16.msra.mxu1 %v3979_v38  ;;  %v4394_v38 = vld [vmem:[%s8137_s1 + $0x7e0] sm:$0xf]  ;;  %v4331_v45 = vor.u32 %v5246_v34, %v4330_v33  ;;  %v4171_v33 = vor.u32 %v5206_v24, %v4170_v23  ;;  %v4162_v34 = vld [vmem:[%s8137_s1 + $0x610] sm:$0xf]  ;;  %v4991_v23 = vld [vmem:[%s8138_s0 + $0x3c] sm:$0xf] }
  0x5a   :  { %2717 = vmatpush.bf16.msra.mxu2 %v4043_v43  ;;  %v4267_v43 = vor.u32 %v5230_v32, %v4266_v29  ;;  %v4395_v50 = vor.u32 %v5262_v39, %v4394_v38  ;;  %v5238_v29 = vld [vmem:[%s8137_s1 + $0x724] sm:$0xf0]  ;;  %v3344_v24 = vld [vmem:[%s8138_s0 + $0x9c] sm:$0xf0] }
  0x5b   :  { %2731 = vmatpush.bf16.msra.mxu3 %v4107_v49  ;;  %v4258_v49 = vld [vmem:[%s8137_s1 + $0x6d0] sm:$0xf]  ;;  %v5254_v32 = vld [vmem:[%s8137_s1 + $0x7a4] sm:$0xf0]  ;;  %v4299_v39 = vor.u32 %v5238_v29, %v4298_v28  ;;  %v4522_v29 = vld [vmem:[%s8137_s1 + $0x8e0] sm:$0xf] }
  0x5c   :  { %2690 = vmatpush.bf16.msra.mxu0 %v3907_v53  ;;  %v5244_v53 = vld [vmem:[%s8137_s1 + $0x754] sm:$0xf0]  ;;  %v5278_v28 = vld [vmem:[%s8137_s1 + $0x864] sm:$0xf0] }
  0x5d   :  { %2704 = vmatpush.bf16.msra.mxu1 %v3971_v57  ;;  %v4259_v57 = vor.u32 %v5228_v51, %v4258_v49  ;;  %v4323_v58 = vor.u32 %v5244_v53, %v4322_v52  ;;  %v5236_v49 = vld [vmem:[%s8137_s1 + $0x714] sm:$0xf0]  ;;  %v4154_v52 = vld [vmem:[%s8137_s1 + $0x600] sm:$0xf]  ;;  %v5202_v53 = vld [vmem:[%s8137_s1 + $0x604] sm:$0xf0] }
  0x5e   :  { %2718 = vmatpush.bf16.msra.mxu2 %v4035_v0  ;;  %v5226_v0 = vld [vmem:[%s8137_s1 + $0x6c4] sm:$0xf0]  ;;  %v5252_v51 = vld [vmem:[%s8137_s1 + $0x794] sm:$0xf0]  ;;  %v4291_v61 = vor.u32 %v5236_v49, %v4290_v47 }
  0x5f   :  { %2732 = vmatpush.bf16.msra.mxu3 %v4099_v5  ;;  %v5258_v5 = vld [vmem:[%s8137_s1 + $0x7c4] sm:$0xf0]  ;;  %v4251_v7 = vor.u32 %v5226_v0, %v4250_v62  ;;  %v4466_v62 = vld [vmem:[%s8137_s1 + $0x870] sm:$0xf] }
  0x60   :  { %2691 = vmatpush.bf16.msra.mxu0 %v3899_v10  ;;  %v4178_v10 = vld [vmem:[%s8137_s1 + $0x630] sm:$0xf]  ;;  %v4379_v13 = vor.u32 %v5258_v5, %v4378_v4  ;;  %v5312_v5 = vld [vmem:[%s8137_s1 + $0x974] sm:$0xf0]  ;;  %v5326_v47 = vld [vmem:[%s8137_s1 + $0x9e4] sm:$0xf0] }
  0x61   :  { %2705 = vmatpush.bf16.msra.mxu1 %v3963_v15  ;;  %v5224_v15 = vld [vmem:[%s8137_s1 + $0x6b4] sm:$0xf0]  ;;  %v4530_v0 = vld [vmem:[%s8137_s1 + $0x8f0] sm:$0xf] }
  0x62   :  { %2719 = vmatpush.bf16.msra.mxu2 %v4027_v20  ;;  %v4179_v20 = vor.u32 %v5208_v11, %v4178_v10  ;;  %v4594_v4 = vld [vmem:[%s8137_s1 + $0x970] sm:$0xf]  ;;  %v4155_v10 = vor.u32 %v5202_v53, %v4154_v52  ;;  %v5002_v11 = vld [vmem:[%s8138_s0 + $0x90] sm:$0xf0]  ;;  %v5276_v52 = vld [vmem:[%s8137_s1 + $0x854] sm:$0xf0] }
  0x63   :  { %2733 = vmatpush.bf16.msra.mxu3 %v4091_v26  ;;  %2692 = vmatmul.bf16.vlgmr.msra.gmra.mxu0 %v6135_v30  ;;  %v4371_v26 = vor.u32 %v5256_v19, %v4370_v18  ;;  %v5328_v18 = vld [vmem:[%s8137_s1 + $0x9f4] sm:$0xf0]  ;;  %v4990_v19 = vld [vmem:[%s8138_s0 + $0x34] sm:$0xf]  ;;  %v4514_v53 = vld [vmem:[%s8137_s1 + $0x8d0] sm:$0xf] }
  0x64   :  { %2740 = vmatpush.bf16.msrb.mxu0 %v4211_v16  ;;  %2706 = vmatmul.bf16.vlgmr.msra.gmra.mxu1 %v6148_v37  ;;  %v4306_v16 = vld [vmem:[%s8137_s1 + $0x730] sm:$0xf] }
  0x65   :  { %2754 = vmatpush.bf16.msrb.mxu1 %v4275_v21  ;;  %2720 = vmatmul.bf16.vlgmr.msra.gmra.mxu2 %v6146_v35  ;;  %v4243_v21 = vor.u32 %v5224_v15, %v4242_v12  ;;  %v4307_v22 = vor.u32 %v5240_v17, %v4306_v16  ;;  %v3342_v12 = vld [vmem:[%s8138_s0 + $0x38] sm:$0xf]  ;;  %v4658_v17 = vld [vmem:[%s8137_s1 + $0x9f0] sm:$0xf] }
  0x66   :  { %2768 = vmatpush.bf16.msrb.mxu2 %v4339_v25  ;;  %2734 = vmatmul.bf16.vlgmr.msra.gmra.mxu3 %v6156_v41  ;;  %v4234_v25 = vld [vmem:[%s8137_s1 + $0x6a0] sm:$0xf] }
  0x67   :  { %2782 = vmatpush.bf16.msrb.mxu3 %v4403_v31  ;;  %v4362_v31 = vld [vmem:[%s8137_s1 + $0x7a0] sm:$0xf]  ;;  %v4235_v38 = vor.u32 %v5222_v27, %v4234_v25  ;;  %v4595_v25 = vor.u32 %v5312_v5, %v4594_v4  ;;  %v5290_v4 = vld [vmem:[%s8137_s1 + $0x8c4] sm:$0xf0] }
  0x68   :  { %2741 = vmatpush.bf16.msrb.mxu0 %v4203_v42  ;;  %v5204_v42 = vld [vmem:[%s8137_s1 + $0x614] sm:$0xf0]  ;;  %v4363_v46 = vor.u32 %v5254_v32, %v4362_v31  ;;  %v4458_v27 = vld [vmem:[%s8137_s1 + $0x860] sm:$0xf] }
  0x69   :  { %2755 = vmatpush.bf16.msrb.mxu1 %v4267_v43  ;;  %v4226_v43 = vld [vmem:[%s8137_s1 + $0x690] sm:$0xf]  ;;  %v4163_v54 = vor.u32 %v5204_v42, %v4162_v34  ;;  %v4586_v34 = vld [vmem:[%s8137_s1 + $0x960] sm:$0xf] }
  0x6a   :  { %2769 = vmatpush.bf16.msrb.mxu2 %v4331_v45  ;;  %v5220_v45 = vld [vmem:[%s8137_s1 + $0x694] sm:$0xf0]  ;;  %v4570_v5 = vld [vmem:[%s8137_s1 + $0x940] sm:$0xf] }
  0x6b   :  { %2783 = vmatpush.bf16.msrb.mxu3 %v4395_v50  ;;  %v4354_v50 = vld [vmem:[%s8137_s1 + $0x790] sm:$0xf]  ;;  %v4227_v59 = vor.u32 %v5220_v45, %v4226_v43  ;;  %v6378_v43 = vor.u32 %v4991_v23, %v3344_v24  ;;  %v4459_v45 = vor.u32 %v5278_v28, %v4458_v27  ;;  %v5320_v24 = vld [vmem:[%s8137_s1 + $0x9b4] sm:$0xf0]  ;;  %v4426_v27 = vld [vmem:[%s8137_s1 + $0x820] sm:$0xf] }
  0x6c   :  { %2742 = vmatpush.bf16.msrb.mxu0 %v4195_v56  ;;  %v5218_v56 = vld [vmem:[%s8137_s1 + $0x684] sm:$0xf0]  ;;  %v4355_v1 = vor.u32 %v5252_v51, %v4354_v50  ;;  %v4450_v51 = vld [vmem:[%s8137_s1 + $0x850] sm:$0xf] }
  0x6d   :  { %2756 = vmatpush.bf16.msrb.mxu1 %v4259_v57  ;;  %v4282_v57 = vld [vmem:[%s8137_s1 + $0x700] sm:$0xf]  ;;  %v4219_v15 = vor.u32 %v5218_v56, %v4218_v55  ;;  %v4578_v55 = vld [vmem:[%s8137_s1 + $0x950] sm:$0xf]  ;;  %v5308_v56 = vld [vmem:[%s8137_s1 + $0x954] sm:$0xf0] }
  0x6e   :  { %2770 = vmatpush.bf16.msrb.mxu2 %v4323_v58  ;;  %v5234_v58 = vld [vmem:[%s8137_s1 + $0x704] sm:$0xf0]  ;;  %v4626_v23 = vld [vmem:[%s8137_s1 + $0x9b0] sm:$0xf] }
  0x6f   :  { %2784 = vmatpush.bf16.msrb.mxu3 %v4387_v63  ;;  %v5280_v63 = vld [vmem:[%s8137_s1 + $0x874] sm:$0xf0]  ;;  %v4283_v16 = vor.u32 %v5234_v58, %v4282_v57  ;;  %v4451_v58 = vor.u32 %v5276_v52, %v4450_v51  ;;  %v5270_v28 = vld [vmem:[%s8137_s1 + $0x824] sm:$0xf0] }
  0x70   :  { %2743 = vmatpush.bf16.msrb.mxu0 %v4187_v6  ;;  %v4346_v6 = vld [vmem:[%s8137_s1 + $0x780] sm:$0xf]  ;;  %v5268_v52 = vld [vmem:[%s8137_s1 + $0x814] sm:$0xf0] }
  0x71   :  { %2757 = vmatpush.bf16.msrb.mxu1 %v4251_v7  ;;  %v5250_v7 = vld [vmem:[%s8137_s1 + $0x784] sm:$0xf0] }
  0x72   :  { %2771 = vmatpush.bf16.msrb.mxu2 %v4315_v9  ;;  %v3334_v9 = vld [vmem:[%s8138_s0 + $0x30] sm:$0xf] }
  0x73   :  { %2785 = vmatpush.bf16.msrb.mxu3 %v4379_v13  ;;  %v5003_v13 = vld [vmem:[%s8138_s0 + $0x98] sm:$0xf0]  ;;  %v6363_v31 = vor.u32 %v5002_v11, %v3334_v9  ;;  %v5322_v11 = vld [vmem:[%s8137_s1 + $0x9c4] sm:$0xf0] }
  0x74   :  { %2744 = vmatpush.bf16.msrb.mxu0 %v4179_v20  ;;  %v4467_v20 = vor.u32 %v5280_v63, %v4466_v62  ;;  %v6365_v32 = vor.u32 %v5003_v13, %v3342_v12  ;;  %v4579_v63 = vor.u32 %v5308_v56, %v4578_v55  ;;  %v4546_v55 = vld [vmem:[%s8137_s1 + $0x910] sm:$0xf]  ;;  %v5300_v56 = vld [vmem:[%s8137_s1 + $0x914] sm:$0xf0] }
  0x75   :  { %2758 = vmatpush.bf16.msrb.mxu1 %v4243_v21  ;;  %v4531_v21 = vor.u32 %v5296_v3, %v4530_v0  ;;  %v4442_v0 = vld [vmem:[%s8137_s1 + $0x840] sm:$0xf] }
  0x76   :  { %2772 = vmatpush.bf16.msrb.mxu2 %v4307_v22  ;;  %v3336_v22 = vld [vmem:[%s8138_s0 + $0x94] sm:$0xf0]  ;;  %v4506_v3 = vld [vmem:[%s8137_s1 + $0x8c0] sm:$0xf] }
  0x77   :  { %2786 = vmatpush.bf16.msrb.mxu3 %v4371_v26  ;;  %v4347_v26 = vor.u32 %v5250_v7, %v4346_v6  ;;  %v6376_v42 = vor.u32 %v4990_v19, %v3336_v22  ;;  %v5306_v6 = vld [vmem:[%s8137_s1 + $0x944] sm:$0xf0]  ;;  %v4507_v12 = vor.u32 %v5290_v4, %v4506_v3  ;;  %v4562_v19 = vld [vmem:[%s8137_s1 + $0x930] sm:$0xf]  ;;  %v4538_v3 = vld [vmem:[%s8137_s1 + $0x900] sm:$0xf] }
  0x78   :  { %2745 = vmatpush.bf16.msrb.mxu0 %v4171_v33  ;;  %v5294_v33 = vld [vmem:[%s8137_s1 + $0x8e4] sm:$0xf0]  ;;  %v4571_v13 = vor.u32 %v5306_v6, %v4570_v5  ;;  %v4547_v6 = vor.u32 %v5300_v56, %v4546_v55 }
  0x79   :  { %2759 = vmatpush.bf16.msrb.mxu1 %v4235_v38  ;;  %v5310_v38 = vld [vmem:[%s8137_s1 + $0x964] sm:$0xf0]  ;;  %v4523_v49 = vor.u32 %v5294_v33, %v4522_v29  ;;  %v4490_v29 = vld [vmem:[%s8137_s1 + $0x8a0] sm:$0xf] }
  0x7a   :  { %2773 = vmatpush.bf16.msrb.mxu2 %v4299_v39  ;;  %v4659_v39 = vor.u32 %v5328_v18, %v4658_v17  ;;  %v4587_v50 = vor.u32 %v5310_v38, %v4586_v34  ;;  %v4498_v17 = vld [vmem:[%s8137_s1 + $0x8b0] sm:$0xf]  ;;  %v5288_v18 = vld [vmem:[%s8137_s1 + $0x8b4] sm:$0xf0]  ;;  %v5286_v33 = vld [vmem:[%s8137_s1 + $0x8a4] sm:$0xf0] }
  0x7b   :  { %2787 = vmatpush.bf16.msrb.mxu3 %v4363_v46  ;;  %v4650_v46 = vld [vmem:[%s8137_s1 + $0x9e0] sm:$0xf]  ;;  %v5302_v38 = vld [vmem:[%s8137_s1 + $0x924] sm:$0xf0] }
  0x7c   :  { %2746 = vmatpush.bf16.msrb.mxu0 %v4163_v54  ;;  %v5292_v54 = vld [vmem:[%s8137_s1 + $0x8d4] sm:$0xf0]  ;;  %v4651_v57 = vor.u32 %v5326_v47, %v4650_v46  ;;  %v4554_v34 = vld [vmem:[%s8137_s1 + $0x920] sm:$0xf]  ;;  %v5318_v47 = vld [vmem:[%s8137_s1 + $0x9a4] sm:$0xf0] }
  0x7d   :  { %2760 = vmatpush.bf16.msrb.mxu1 %v4227_v59  ;;  %v4642_v59 = vld [vmem:[%s8137_s1 + $0x9d0] sm:$0xf]  ;;  %v4515_v62 = vor.u32 %v5292_v54, %v4514_v53  ;;  %v4618_v46 = vld [vmem:[%s8137_s1 + $0x9a0] sm:$0xf]  ;;  %v4555_v51 = vor.u32 %v5302_v38, %v4554_v34  ;;  %v5284_v54 = vld [vmem:[%s8137_s1 + $0x894] sm:$0xf0] }
  0x7e   :  { %2774 = vmatpush.bf16.msrb.mxu2 %v4291_v61  ;;  %v5324_v61 = vld [vmem:[%s8137_s1 + $0x9d4] sm:$0xf0]  ;;  %v4482_v53 = vld [vmem:[%s8137_s1 + $0x890] sm:$0xf]  ;;  %v5298_v4 = vld [vmem:[%s8137_s1 + $0x904] sm:$0xf0] }
  0x7f   :  { %2788 = vmatpush.bf16.msrb.mxu3 %v4355_v1  ;;  %v5274_v1 = vld [vmem:[%s8137_s1 + $0x844] sm:$0xf0]  ;;  %v4643_v7 = vor.u32 %v5324_v61, %v4642_v59  ;;  %v5316_v59 = vld [vmem:[%s8137_s1 + $0x994] sm:$0xf0]  ;;  %v4410_v61 = vld [vmem:[%s8137_s1 + $0x800] sm:$0xf]  ;;  %v4483_v5 = vor.u32 %v5284_v54, %v4482_v53 }
  0x80   :  { %2747 = vmatpush.bf16.msrb.mxu0 %v4155_v10  ;;  %v4443_v9 = vor.u32 %v5274_v1, %v4442_v0  ;;  %v4634_v10 = vld [vmem:[%s8137_s1 + $0x9c0] sm:$0xf]  ;;  %v5282_v1 = vld [vmem:[%s8137_s1 + $0x884] sm:$0xf0]  ;;  %v4993_v34 = vld [vmem:[%s8138_s0 + $0x4c] sm:$0xf] }
  0x81   :  { %2761 = vmatpush.bf16.msrb.mxu1 %v4219_v15  ;;  %v4434_v15 = vld [vmem:[%s8137_s1 + $0x830] sm:$0xf]  ;;  %v4474_v0 = vld [vmem:[%s8137_s1 + $0x880] sm:$0xf]  ;;  %v5374_v54 = vld [vmem:[%s8137_s1 + $0xb64] sm:$0xf0] }
  0x82   :  { %2775 = vmatpush.bf16.msrb.mxu2 %v4283_v16  ;;  %v5272_v16 = vld [vmem:[%s8137_s1 + $0x834] sm:$0xf0]  ;;  %v3360_v38 = vld [vmem:[%s8138_s0 + $0xac] sm:$0xf0]  ;;  %v4842_v53 = vld [vmem:[%s8137_s1 + $0xb60] sm:$0xf] }
  0x83   :  { %2789 = vmatpush.bf16.msrb.mxu3 %v4347_v26  ;;  %2748 = vmatmul.bf16.vlgmr.msrb.gmra.mxu0 %v6363_v31  ;;  %v4435_v22 = vor.u32 %v5272_v16, %v4434_v15  ;;  %v4602_v16 = vld [vmem:[%s8137_s1 + $0x980] sm:$0xf] }
  0x84   :  { %2796 = vmatpush.bf16.msra.mxu0 %v4467_v20  ;;  %2762 = vmatmul.bf16.vlgmr.msrb.gmra.mxu1 %v6376_v42  ;;  %v5304_v20 = vld [vmem:[%s8137_s1 + $0x934] sm:$0xf0] }
  0x85   :  { %2810 = vmatpush.bf16.msra.mxu1 %v4531_v21  ;;  %2776 = vmatmul.bf16.vlgmr.msrb.gmra.mxu2 %v6365_v32  ;;  %v4635_v21 = vor.u32 %v5322_v11, %v4634_v10  ;;  %v4563_v26 = vor.u32 %v5304_v20, %v4562_v19  ;;  %v4786_v10 = vld [vmem:[%s8137_s1 + $0xaf0] sm:$0xf]  ;;  %v5360_v11 = vld [vmem:[%s8137_s1 + $0xaf4] sm:$0xf0]  ;;  %v5004_v20 = vld [vmem:[%s8138_s0 + $0xa0] sm:$0xf0] }
  0x86   :  { %2824 = vmatpush.bf16.msra.mxu2 %v4595_v25  ;;  %2790 = vmatmul.bf16.vlgmr.msrb.gmra.mxu3 %v6378_v43  ;;  %v4499_v25 = vor.u32 %v5288_v18, %v4498_v17  ;;  %v5314_v17 = vld [vmem:[%s8137_s1 + $0x984] sm:$0xf0]  ;;  %v3350_v18 = vld [vmem:[%s8138_s0 + $0x40] sm:$0xf] }
  0x87   :  { %2838 = vmatpush.bf16.msra.mxu3 %v4659_v39  ;;  %v4627_v39 = vor.u32 %v5320_v24, %v4626_v23  ;;  %v4475_v23 = vor.u32 %v5282_v1, %v4474_v0  ;;  %v4539_v24 = vor.u32 %v5298_v4, %v4538_v3  ;;  %v4843_v0 = vor.u32 %v5374_v54, %v4842_v53  ;;  %v5340_v1 = vld [vmem:[%s8137_s1 + $0xa54] sm:$0xf0]  ;;  %v4770_v3 = vld [vmem:[%s8137_s1 + $0xad0] sm:$0xf] }
  0x88   :  { %2797 = vmatpush.bf16.msra.mxu0 %v4459_v45  ;;  %v4427_v45 = vor.u32 %v5270_v28, %v4426_v27  ;;  %v4992_v27 = vld [vmem:[%s8138_s0 + $0x44] sm:$0xf]  ;;  %v5356_v4 = vld [vmem:[%s8137_s1 + $0xad4] sm:$0xf0]  ;;  %v4882_v54 = vld [vmem:[%s8137_s1 + $0xbb0] sm:$0xf] }
  0x89   :  { %2811 = vmatpush.bf16.msra.mxu1 %v4523_v49  ;;  %v4418_v49 = vld [vmem:[%s8137_s1 + $0x810] sm:$0xf] }
  0x8a   :  { %2825 = vmatpush.bf16.msra.mxu2 %v4587_v50  ;;  %v4491_v50 = vor.u32 %v5286_v33, %v4490_v29  ;;  %v4787_v29 = vor.u32 %v5360_v11, %v4786_v10  ;;  %v3352_v33 = vld [vmem:[%s8138_s0 + $0xa4] sm:$0xf0]  ;;  %v4898_v11 = vld [vmem:[%s8137_s1 + $0xbd0] sm:$0xf] }
  0x8b   :  { %2839 = vmatpush.bf16.msra.mxu3 %v4651_v57  ;;  %v4610_v57 = vld [vmem:[%s8137_s1 + $0x990] sm:$0xf]  ;;  %v6604_v56 = vor.u32 %v4992_v27, %v3352_v33 }
  0x8c   :  { %2798 = vmatpush.bf16.msra.mxu0 %v4451_v58  ;;  %v4619_v58 = vor.u32 %v5318_v47, %v4618_v46  ;;  %v4611_v15 = vor.u32 %v5316_v59, %v4610_v57  ;;  %v4714_v46 = vld [vmem:[%s8137_s1 + $0xa60] sm:$0xf]  ;;  %v5342_v47 = vld [vmem:[%s8137_s1 + $0xa64] sm:$0xf0]  ;;  %v6606_v57 = vor.u32 %v4993_v34, %v3360_v38  ;;  %v4690_v33 = vld [vmem:[%s8137_s1 + $0xa30] sm:$0xf] }
  0x8d   :  { %2812 = vmatpush.bf16.msra.mxu1 %v4515_v62  ;;  %v5266_v62 = vld [vmem:[%s8137_s1 + $0x804] sm:$0xf0]  ;;  %v4906_v59 = vld [vmem:[%s8137_s1 + $0xbe0] sm:$0xf]  ;;  %v5336_v34 = vld [vmem:[%s8137_s1 + $0xa34] sm:$0xf0] }
  0x8e   :  { %2826 = vmatpush.bf16.msra.mxu2 %v4579_v63  ;;  %v4419_v63 = vor.u32 %v5268_v52, %v4418_v49  ;;  %v4411_v19 = vor.u32 %v5266_v62, %v4410_v61  ;;  %v4778_v49 = vld [vmem:[%s8137_s1 + $0xae0] sm:$0xf]  ;;  %v5358_v52 = vld [vmem:[%s8137_s1 + $0xae4] sm:$0xf0]  ;;  %v4706_v62 = vld [vmem:[%s8137_s1 + $0xa50] sm:$0xf]  ;;  %v4691_v53 = vor.u32 %v5336_v34, %v4690_v33 }
  0x8f   :  { %2840 = vmatpush.bf16.msra.mxu3 %v4643_v7  ;;  %v4722_v7 = vld [vmem:[%s8137_s1 + $0xa70] sm:$0xf]  ;;  %v5390_v61 = vld [vmem:[%s8137_s1 + $0xbe4] sm:$0xf0]  ;;  %v4707_v10 = vor.u32 %v5340_v1, %v4706_v62  ;;  %v4682_v62 = vld [vmem:[%s8137_s1 + $0xa20] sm:$0xf] }
  0x90   :  { %2799 = vmatpush.bf16.msra.mxu0 %v4443_v9  ;;  %v5344_v9 = vld [vmem:[%s8137_s1 + $0xa74] sm:$0xf0]  ;;  %v4754_v38 = vld [vmem:[%s8137_s1 + $0xab0] sm:$0xf]  ;;  %v5350_v1 = vld [vmem:[%s8137_s1 + $0xaa4] sm:$0xf0] }
  0x91   :  { %2813 = vmatpush.bf16.msra.mxu1 %v4507_v12  ;;  %v4850_v12 = vld [vmem:[%s8137_s1 + $0xb70] sm:$0xf]  ;;  %v4723_v28 = vor.u32 %v5344_v9, %v4722_v7  ;;  %v6637_v7 = vld [vmem:[%s8139_s2] sm:$0x3]  ;;  %v4907_v9 = vor.u32 %v5390_v61, %v4906_v59 }
  0x92   :  { %2827 = vmatpush.bf16.msra.mxu2 %v4571_v13  ;;  %v5376_v13 = vld [vmem:[%s8137_s1 + $0xb74] sm:$0xf0]  ;;  %v4730_v34 = vld [vmem:[%s8137_s1 + $0xa80] sm:$0xf] }
  0x93   :  { %2841 = vmatpush.bf16.msra.mxu3 %v4635_v21  ;;  %v3358_v21 = vld [vmem:[%s8138_s0 + $0x48] sm:$0xf] }
  0x94   :  { %2800 = vmatpush.bf16.msra.mxu0 %v4435_v22  ;;  %v5005_v22 = vld [vmem:[%s8138_s0 + $0xa8] sm:$0xf0] }
  0x95   :  { %2814 = vmatpush.bf16.msra.mxu1 %v4499_v25  ;;  %v4914_v25 = vld [vmem:[%s8137_s1 + $0xbf0] sm:$0xf] }
  0x96   :  { %2828 = vmatpush.bf16.msra.mxu2 %v4563_v26  ;;  %v5392_v26 = vld [vmem:[%s8137_s1 + $0xbf4] sm:$0xf0] }
  0x97   :  { %2842 = vmatpush.bf16.msra.mxu3 %v4627_v39  ;;  %v4851_v39 = vor.u32 %v5376_v13, %v4850_v12  ;;  %v4915_v55 = vor.u32 %v5392_v26, %v4914_v25  ;;  %v5388_v12 = vld [vmem:[%s8137_s1 + $0xbd4] sm:$0xf0]  ;;  %v4698_v13 = vld [vmem:[%s8137_s1 + $0xa40] sm:$0xf]  ;;  %v5386_v26 = vld [vmem:[%s8137_s1 + $0xbc4] sm:$0xf0] }
  0x98   :  { %2801 = vmatpush.bf16.msra.mxu0 %v4427_v45  ;;  %v4603_v45 = vor.u32 %v5314_v17, %v4602_v16  ;;  %v5338_v17 = vld [vmem:[%s8137_s1 + $0xa44] sm:$0xf0]  ;;  %v4890_v25 = vld [vmem:[%s8137_s1 + $0xbc0] sm:$0xf] }
  0x99   :  { %2815 = vmatpush.bf16.msra.mxu1 %v4491_v50  ;;  %v6591_v50 = vor.u32 %v5004_v20, %v3350_v18  ;;  %v4762_v18 = vld [vmem:[%s8137_s1 + $0xac0] sm:$0xf]  ;;  %v5354_v20 = vld [vmem:[%s8137_s1 + $0xac4] sm:$0xf0] }
  0x9a   :  { %2829 = vmatpush.bf16.msra.mxu2 %v4555_v51  ;;  %v6593_v51 = vor.u32 %v5005_v22, %v3358_v21  ;;  %v4826_v21 = vld [vmem:[%s8137_s1 + $0xb40] sm:$0xf]  ;;  %v5370_v22 = vld [vmem:[%s8137_s1 + $0xb44] sm:$0xf0] }
  0x9b   :  { %2843 = vmatpush.bf16.msra.mxu3 %v4619_v58  ;;  %v4715_v58 = vor.u32 %v5342_v47, %v4714_v46  ;;  %v4818_v46 = vld [vmem:[%s8137_s1 + $0xb30] sm:$0xf]  ;;  %v5368_v47 = vld [vmem:[%s8137_s1 + $0xb34] sm:$0xf0] }
  0x9c   :  { %2802 = vmatpush.bf16.msra.mxu0 %v4419_v63  ;;  %v4779_v63 = vor.u32 %v5358_v52, %v4778_v49  ;;  %v4891_v49 = vor.u32 %v5386_v26, %v4890_v25  ;;  %v4819_v61 = vor.u32 %v5368_v47, %v4818_v46  ;;  %v5380_v26 = vld [vmem:[%s8137_s1 + $0xb94] sm:$0xf0] }
  0x9d   :  { %2816 = vmatpush.bf16.msra.mxu1 %v4483_v5  ;;  %v4834_v5 = vld [vmem:[%s8137_s1 + $0xb50] sm:$0xf] }
  0x9e   :  { %2830 = vmatpush.bf16.msra.mxu2 %v4547_v6  ;;  %v5372_v6 = vld [vmem:[%s8137_s1 + $0xb54] sm:$0xf0] }
  0x9f   :  { %2844 = vmatpush.bf16.msra.mxu3 %v4611_v15  ;;  %v4771_v15 = vor.u32 %v5356_v4, %v4770_v3  ;;  %v4835_v16 = vor.u32 %v5372_v6, %v4834_v5  ;;  %v4810_v3 = vld [vmem:[%s8137_s1 + $0xb20] sm:$0xf]  ;;  %v5366_v4 = vld [vmem:[%s8137_s1 + $0xb24] sm:$0xf0] }
  0xa0   :  { %2803 = vmatpush.bf16.msra.mxu0 %v4411_v19  ;;  %v442_v19 = vperm.slane %v6637_v7, 0  ;;  %v2581_v27 = vpop.f32.mrf.mxu0 }
  0xa1   :  { %2817 = vmatpush.bf16.msra.mxu1 %v4475_v23  ;;  %v4899_v23 = vor.u32 %v5388_v12, %v4898_v11  ;;  %v2595_v52 = vpop.f32.mrf.mxu1  ;;  %v4674_v11 = vld [vmem:[%s8137_s1 + $0xa10] sm:$0xf] }
  0xa2   :  { %2831 = vmatpush.bf16.msra.mxu2 %v4539_v24  ;;  %v4699_v24 = vor.u32 %v5338_v17, %v4698_v13  ;;  %v5332_v17 = vld [vmem:[%s8137_s1 + $0xa14] sm:$0xf0] }
  0xa3   :  { %2845 = vmatpush.bf16.msra.mxu3 %v4603_v45  ;;  %2804 = vmatmul.bf16.vlgmr.msra.gmra.mxu0 %v6591_v50  ;;  %v5352_v45 = vld [vmem:[%s8137_s1 + $0xab4] sm:$0xf0]  ;;  %v4675_v33 = vor.u32 %v5332_v17, %v4674_v11 }
  0xa4   :  { %2852 = vmatpush.bf16.msrb.mxu0 %v4723_v28  ;;  %2818 = vmatmul.bf16.vlgmr.msra.gmra.mxu1 %v6604_v56  ;;  %v4763_v28 = vor.u32 %v5354_v20, %v4762_v18  ;;  %v4755_v59 = vor.u32 %v5352_v45, %v4754_v38  ;;  %v4738_v18 = vld [vmem:[%s8137_s1 + $0xa90] sm:$0xf]  ;;  %v5348_v20 = vld [vmem:[%s8137_s1 + $0xa94] sm:$0xf0]  ;;  %v5346_v38 = vld [vmem:[%s8137_s1 + $0xa84] sm:$0xf0] }
  0xa5   :  { %2866 = vmatpush.bf16.msrb.mxu1 %v4787_v29  ;;  %2832 = vmatmul.bf16.vlgmr.msra.gmra.mxu2 %v6593_v51  ;;  %v4827_v29 = vor.u32 %v5370_v22, %v4826_v21  ;;  %v4802_v22 = vld [vmem:[%s8137_s1 + $0xb10] sm:$0xf]  ;;  %v5362_v45 = vld [vmem:[%s8137_s1 + $0xb04] sm:$0xf0] }
  0xa6   :  { %2880 = vmatpush.bf16.msrb.mxu2 %v4851_v39  ;;  %2846 = vmatmul.bf16.vlgmr.msra.gmra.mxu3 %v6606_v57  ;;  %v2582_v39 = vadd.f32 %v2581_v27, %v442_v19  ;;  %v5330_v27 = vld [vmem:[%s8137_s1 + $0xa04] sm:$0xf0] }
  0xa7   :  { %2894 = vmatpush.bf16.msrb.mxu3 %v4915_v55  ;;  %v5384_v55 = vld [vmem:[%s8137_s1 + $0xbb4] sm:$0xf0] }
  0xa8   :  { %2853 = vmatpush.bf16.msrb.mxu0 %v4715_v58  ;;  %v2596_v58 = vadd.f32 %v2595_v52, %v2582_v39  ;;  %v4883_v5 = vor.u32 %v5384_v55, %v4882_v54  ;;  %v2609_v6 = vpop.f32.mrf.mxu2  ;;  %v2583_v13 = vpop.f32.mrf.mxu0  ;;  %v4794_v39 = vld [vmem:[%s8137_s1 + $0xb00] sm:$0xf]  ;;  %v5408_v54 = vld [vmem:[%s8137_s1 + $0xc74] sm:$0xf0]  ;;  %v5023_v55 = vld [vmem:[%s8137_s1 + $0x74] sm:$0xf] }
  0xa9   :  { %2867 = vmatpush.bf16.msrb.mxu1 %v4779_v63  ;;  %v5334_v63 = vld [vmem:[%s8137_s1 + $0xa24] sm:$0xf0]  ;;  %v2584_v21 = vadd.f32 %v2583_v13, %v442_v19  ;;  %v4666_v19 = vld [vmem:[%s8137_s1 + $0xa00] sm:$0xf]  ;;  %v4795_v11 = vor.u32 %v5362_v45, %v4794_v39  ;;  %v3572_v13 = vld [vmem:[%s8137_s1 + $0x178] sm:$0xf0] }
  0xaa   :  { %2881 = vmatpush.bf16.msrb.mxu2 %v4843_v0  ;;  %v4746_v0 = vld [vmem:[%s8137_s1 + $0xaa0] sm:$0xf]  ;;  %v4683_v7 = vor.u32 %v5334_v63, %v4682_v62  ;;  %v2610_v12 = vadd.f32 %v2609_v6, %v2596_v58  ;;  %v3444_v58 = vld [vmem:[%s8137_s1 + $0x78] sm:$0xf0]  ;;  %v3374_v6 = vld [vmem:[%s8138_s0 + $0x58] sm:$0xf] }
  0xab   :  { %2895 = vmatpush.bf16.msrb.mxu3 %v4907_v9  ;;  %v4874_v9 = vld [vmem:[%s8137_s1 + $0xba0] sm:$0xf]  ;;  %v3447_v17 = vor.u32 %v5023_v55, %v3444_v58  ;;  %v4962_v58 = vld [vmem:[%s8137_s1 + $0xc50] sm:$0xf] }
  0xac   :  { %2854 = vmatpush.bf16.msrb.mxu0 %v4707_v10  ;;  %v5382_v10 = vld [vmem:[%s8137_s1 + $0xba4] sm:$0xf0]  ;;  %v4858_v63 = vld [vmem:[%s8137_s1 + $0xb80] sm:$0xf] }
  0xad   :  { %2868 = vmatpush.bf16.msrb.mxu1 %v4771_v15  ;;  %v4747_v15 = vor.u32 %v5350_v1, %v4746_v0  ;;  %v4875_v25 = vor.u32 %v5382_v10, %v4874_v9  ;;  %v5378_v0 = vld [vmem:[%s8137_s1 + $0xb84] sm:$0xf0]  ;;  %v3366_v1 = vld [vmem:[%s8138_s0 + $0x50] sm:$0xf]  ;;  %v4731_v10 = vor.u32 %v5346_v38, %v4730_v34  ;;  %v3500_v34 = vld [vmem:[%s8137_s1 + $0xe8] sm:$0xf0] }
  0xae   :  { %2882 = vmatpush.bf16.msrb.mxu2 %v4835_v16  ;;  %v4811_v16 = vor.u32 %v5366_v4, %v4810_v3  ;;  %v4667_v4 = vor.u32 %v5330_v27, %v4666_v19 }
  0xaf   :  { %2896 = vmatpush.bf16.msrb.mxu3 %v4899_v23  ;;  %v5364_v23 = vld [vmem:[%s8137_s1 + $0xb14] sm:$0xf0] }
  0xb0   :  { %2855 = vmatpush.bf16.msrb.mxu0 %v4699_v24  ;;  %v4866_v24 = vld [vmem:[%s8137_s1 + $0xb90] sm:$0xf]  ;;  %v4803_v52 = vor.u32 %v5364_v23, %v4802_v22  ;;  %v2611_v3 = vpop.f32.mrf.mxu2  ;;  %v4859_v23 = vor.u32 %v5378_v0, %v4858_v63  ;;  %v5035_v63 = vld [vmem:[%s8137_s1 + $0xd4] sm:$0xf]  ;;  %v3492_v0 = vld [vmem:[%s8137_s1 + $0xd8] sm:$0xf0] }
  0xb1   :  { %2869 = vmatpush.bf16.msrb.mxu1 %v4763_v28  ;;  %v2623_v28 = vpop.f32.mrf.mxu3  ;;  %v4867_v62 = vor.u32 %v5380_v26, %v4866_v24  ;;  %v4970_v24 = vld [vmem:[%s8137_s1 + $0xc60] sm:$0xf]  ;;  %v5021_v26 = vld [vmem:[%s8137_s1 + $0x64] sm:$0xf] }
  0xb2   :  { %2883 = vmatpush.bf16.msrb.mxu2 %v4827_v29  ;;  %v2597_v29 = vpop.f32.mrf.mxu1  ;;  %v6762_v46 = vadd.f32 %v2623_v28, %v2610_v12  ;;  %v5055_v12 = vld [vmem:[%s8137_s1 + $0x174] sm:$0xf] }
  0xb3   :  { %2897 = vmatpush.bf16.msrb.mxu3 %v4891_v49  ;;  %v2598_v47 = vadd.f32 %v2597_v29, %v2584_v21  ;;  %v4739_v49 = vor.u32 %v5348_v20, %v4738_v18  ;;  %v3368_v18 = vld [vmem:[%s8138_s0 + $0xb4] sm:$0xf0]  ;;  %v4995_v20 = vld [vmem:[%s8138_s0 + $0x5c] sm:$0xf]  ;;  %v3376_v21 = vld [vmem:[%s8138_s0 + $0xbc] sm:$0xf0]  ;;  %v3575_v39 = vor.u32 %v5055_v12, %v3572_v13 }
  0xb4   :  { %2856 = vmatpush.bf16.msrb.mxu0 %v4691_v53  ;;  %v4978_v53 = vld [vmem:[%s8137_s1 + $0xc70] sm:$0xf]  ;;  %v3436_v29 = vld [vmem:[%s8137_s1 + $0x68] sm:$0xf0]  ;;  %v5033_v13 = vld [vmem:[%s8137_s1 + $0xc4] sm:$0xf] }
  0xb5   :  { %2870 = vmatpush.bf16.msrb.mxu1 %v4755_v59  ;;  %v5039_v59 = vld [vmem:[%s8137_s1 + $0xf4] sm:$0xf]  ;;  %v2612_v9 = vadd.f32 %v2611_v3, %v2598_v47  ;;  %v6844_v47 = vor.u32 %v4995_v20, %v3376_v21  ;;  %v3420_v12 = vld [vmem:[%s8137_s1 + $0x48] sm:$0xf0]  ;;  %v5049_v21 = vld [vmem:[%s8137_s1 + $0x144] sm:$0xf] }
  0xb6   :  { %2884 = vmatpush.bf16.msrb.mxu2 %v4819_v61  ;;  %v3508_v61 = vld [vmem:[%s8137_s1 + $0xf8] sm:$0xf0] }
  0xb7   :  { %2898 = vmatpush.bf16.msrb.mxu3 %v4883_v5  ;;  %v5006_v5 = vld [vmem:[%s8138_s0 + $0xb0] sm:$0xf0]  ;;  %v3511_v22 = vor.u32 %v5039_v59, %v3508_v61  ;;  %v5404_v59 = vld [vmem:[%s8137_s1 + $0xc54] sm:$0xf0] }
  0xb8   :  { %2857 = vmatpush.bf16.msrb.mxu0 %v4683_v7  ;;  %v5007_v7 = vld [vmem:[%s8138_s0 + $0xb8] sm:$0xf0]  ;;  %v6827_v27 = vor.u32 %v5006_v5, %v3366_v1  ;;  %v5019_v61 = vld [vmem:[%s8137_s1 + $0x54] sm:$0xf]  ;;  %v4963_v3 = vor.u32 %v5404_v59, %v4962_v58  ;;  %v4938_v59 = vld [vmem:[%s8137_s1 + $0xc20] sm:$0xf] }
  0xb9   :  { %2871 = vmatpush.bf16.msrb.mxu1 %v4747_v15  ;;  %v4994_v15 = vld [vmem:[%s8138_s0 + $0x54] sm:$0xf]  ;;  %v2625_v19 = vpop.f32.mrf.mxu3  ;;  %v6829_v28 = vor.u32 %v5007_v7, %v3374_v6  ;;  %v3556_v5 = vld [vmem:[%s8137_s1 + $0x158] sm:$0xf0]  ;;  %v3495_v7 = vor.u32 %v5035_v63, %v3492_v0  ;;  %v3404_v0 = vld [vmem:[%s8137_s1 + $0x28] sm:$0xf0] }
  0xba   :  { %2885 = vmatpush.bf16.msrb.mxu2 %v4811_v16  ;;  %v4979_v16 = vor.u32 %v5408_v54, %v4978_v53  ;;  %v6840_v38 = vadd.f32 %v2625_v19, %v2612_v9  ;;  %v6842_v45 = vor.u32 %v4994_v15, %v3368_v18  ;;  %v3564_v53 = vld [vmem:[%s8137_s1 + $0x168] sm:$0xf0]  ;;  %v3439_v54 = vor.u32 %v5021_v26, %v3436_v29  ;;  %v4954_v9 = vld [vmem:[%s8137_s1 + $0xc40] sm:$0xf]  ;;  %v4946_v26 = vld [vmem:[%s8137_s1 + $0xc30] sm:$0xf] }
  0xbb   :  { %2899 = vmatpush.bf16.msrb.mxu3 %v4875_v25  ;;  %v5406_v25 = vld [vmem:[%s8137_s1 + $0xc64] sm:$0xf0]  ;;  %v3484_v15 = vld [vmem:[%s8137_s1 + $0xc8] sm:$0xf0]  ;;  %v5015_v19 = vld [vmem:[%s8137_s1 + $0x34] sm:$0xf] }
  0xbc   :  { %2858 = vmatpush.bf16.msrb.mxu0 %v4675_v33  ;;  %v5037_v33 = vld [vmem:[%s8137_s1 + $0xe4] sm:$0xf] }
  0xbd   :  { %2872 = vmatpush.bf16.msrb.mxu1 %v4739_v49  ;;  %v4971_v49 = vor.u32 %v5406_v25, %v4970_v24  ;;  %v3503_v55 = vor.u32 %v5037_v33, %v3500_v34  ;;  %v3487_v24 = vor.u32 %v5033_v13, %v3484_v15  ;;  %v3412_v33 = vld [vmem:[%s8137_s1 + $0x38] sm:$0xf0]  ;;  %v5031_v34 = vld [vmem:[%s8137_s1 + $0xb4] sm:$0xf] }
  0xbe   :  { %2886 = vmatpush.bf16.msrb.mxu2 %v4803_v52  ;;  %v5053_v52 = vld [vmem:[%s8137_s1 + $0x164] sm:$0xf] }
  0xbf   :  { %2900 = vmatpush.bf16.msrb.mxu3 %v4867_v62  ;;  %v3428_v62 = vld [vmem:[%s8137_s1 + $0x58] sm:$0xf0]  ;;  %v3567_v1 = vor.u32 %v5053_v52, %v3564_v53  ;;  %v5047_v53 = vld [vmem:[%s8137_s1 + $0x134] sm:$0xf] }
  0xc0   :  { %2859 = vmatpush.bf16.msrb.mxu0 %v4667_v4  ;;  %v5051_v4 = vld [vmem:[%s8137_s1 + $0x154] sm:$0xf]  ;;  %v3431_v6 = vor.u32 %v5019_v61, %v3428_v62  ;;  %v5398_v61 = vld [vmem:[%s8137_s1 + $0xc24] sm:$0xf0]  ;;  %v5013_v62 = vld [vmem:[%s8137_s1 + $0x24] sm:$0xf] }
  0xc1   :  { %2873 = vmatpush.bf16.msrb.mxu1 %v4731_v10  ;;  %v5402_v10 = vld [vmem:[%s8137_s1 + $0xc44] sm:$0xf0]  ;;  %v2651_v25 = vpop.f32.mrf.mxu1  ;;  %v3407_v15 = vor.u32 %v5013_v62, %v3404_v0  ;;  %v3700_v0 = vld [vmem:[%s8137_s1 + $0x278] sm:$0xf0] }
  0xc2   :  { %2887 = vmatpush.bf16.msrb.mxu2 %v4795_v11  ;;  %v5017_v11 = vld [vmem:[%s8137_s1 + $0x44] sm:$0xf]  ;;  %v4955_v20 = vor.u32 %v5402_v10, %v4954_v9  ;;  %v4939_v10 = vor.u32 %v5398_v61, %v4938_v59  ;;  %v3636_v59 = vld [vmem:[%s8137_s1 + $0x1f8] sm:$0xf0]  ;;  %v5087_v61 = vld [vmem:[%s8137_s1 + $0x274] sm:$0xf] }
  0xc3   :  { %2901 = vmatpush.bf16.msrb.mxu3 %v4859_v23  ;;  %2860 = vmatmul.bf16.vlgmr.msrb.gmra.mxu0 %v6827_v27  ;;  %v3423_v23 = vor.u32 %v5017_v11, %v3420_v12  ;;  %v5045_v11 = vld [vmem:[%s8137_s1 + $0x124] sm:$0xf]  ;;  %v3532_v12 = vld [vmem:[%s8137_s1 + $0x128] sm:$0xf0] }
  0xc4   :  { %2908 = vmatpush.bf16.msra.mxu0 %v4979_v16  ;;  %2874 = vmatmul.bf16.vlgmr.msrb.gmra.mxu1 %v6842_v45  ;;  %v3559_v16 = vor.u32 %v5051_v4, %v3556_v5 }
  0xc5   :  { %2922 = vmatpush.bf16.msra.mxu1 %v3447_v17  ;;  %2888 = vmatmul.bf16.vlgmr.msrb.gmra.mxu2 %v6829_v28  ;;  %v2637_v17 = vpop.f32.mrf.mxu0 }
  0xc6   :  { %2936 = vmatpush.bf16.msra.mxu2 %v3511_v22  ;;  %2902 = vmatmul.bf16.vlgmr.msrb.gmra.mxu3 %v6844_v47  ;;  %v2638_v18 = vadd.f32 %v2637_v17, %v6762_v46  ;;  %v3548_v22 = vld [vmem:[%s8137_s1 + $0x148] sm:$0xf0]  ;;  %v5400_v46 = vld [vmem:[%s8137_s1 + $0xc34] sm:$0xf0] }
  0xc7   :  { %2950 = vmatpush.bf16.msra.mxu3 %v3575_v39  ;;  %v3476_v39 = vld [vmem:[%s8137_s1 + $0xb8] sm:$0xf0]  ;;  %v4947_v52 = vor.u32 %v5400_v46, %v4946_v26  ;;  %v5043_v26 = vld [vmem:[%s8137_s1 + $0x114] sm:$0xf] }
  0xc8   :  { %2909 = vmatpush.bf16.msra.mxu0 %v4971_v49  ;;  %v2652_v29 = vadd.f32 %v2651_v25, %v2638_v18  ;;  %v3551_v49 = vor.u32 %v5049_v21, %v3548_v22  ;;  %v3479_v58 = vor.u32 %v5031_v34, %v3476_v39  ;;  %v2665_v63 = vpop.f32.mrf.mxu2  ;;  %v5396_v18 = vld [vmem:[%s8137_s1 + $0xc14] sm:$0xf0]  ;;  %v3396_v22 = vld [vmem:[%s8137_s1 + $0x18] sm:$0xf0]  ;;  %v3535_v25 = vor.u32 %v5045_v11, %v3532_v12  ;;  %v5009_v34 = vld [vmem:[%s8137_s1 + $0x4] sm:$0xf] }
  0xc9   :  { %2923 = vmatpush.bf16.msra.mxu1 %v3439_v54  ;;  %v3540_v54 = vld [vmem:[%s8137_s1 + $0x138] sm:$0xf0]  ;;  %v2679_v9 = vpop.f32.mrf.mxu3  ;;  %v2653_v17 = vpop.f32.mrf.mxu1 }
  0xca   :  { %2937 = vmatpush.bf16.msra.mxu2 %v3503_v55  ;;  %v3415_v55 = vor.u32 %v5015_v19, %v3412_v33  ;;  %v2666_v4 = vadd.f32 %v2665_v63, %v2652_v29  ;;  %v3543_v5 = vor.u32 %v5047_v53, %v3540_v54  ;;  %v3524_v46 = vld [vmem:[%s8137_s1 + $0x118] sm:$0xf0]  ;;  %v4922_v29 = vld [vmem:[%s8137_s1 + $0xc00] sm:$0xf]  ;;  %v5394_v33 = vld [vmem:[%s8137_s1 + $0xc04] sm:$0xf0] }
  0xcb   :  { %2951 = vmatpush.bf16.msra.mxu3 %v3567_v1  ;;  %v5029_v1 = vld [vmem:[%s8137_s1 + $0xa4] sm:$0xf]  ;;  %v3452_v54 = vld [vmem:[%s8137_s1 + $0x88] sm:$0xf0]  ;;  %v3527_v63 = vor.u32 %v5043_v26, %v3524_v46 }
  0xcc   :  { %2910 = vmatpush.bf16.msra.mxu0 %v4963_v3  ;;  %v3468_v3 = vld [vmem:[%s8137_s1 + $0xa8] sm:$0xf0]  ;;  %v6954_v13 = vadd.f32 %v2679_v9, %v2666_v4  ;;  %v5025_v53 = vld [vmem:[%s8137_s1 + $0x84] sm:$0xf]  ;;  %v3382_v9 = vld [vmem:[%s8138_s0 + $0x60] sm:$0xf] }
  0xcd   :  { %2924 = vmatpush.bf16.msra.mxu1 %v3431_v6  ;;  %v2639_v6 = vpop.f32.mrf.mxu0  ;;  %v3455_v12 = vor.u32 %v5025_v53, %v3452_v54  ;;  %v3620_v54 = vld [vmem:[%s8137_s1 + $0x1d8] sm:$0xf0] }
  0xce   :  { %2938 = vmatpush.bf16.msra.mxu2 %v3495_v7  ;;  %v2640_v7 = vadd.f32 %v2639_v6, %v6840_v38  ;;  %v4930_v38 = vld [vmem:[%s8137_s1 + $0xc10] sm:$0xf]  ;;  %v5041_v6 = vld [vmem:[%s8137_s1 + $0x104] sm:$0xf] }
  0xcf   :  { %2952 = vmatpush.bf16.msra.mxu3 %v3559_v16  ;;  %v3471_v16 = vor.u32 %v5029_v1, %v3468_v3  ;;  %v4931_v19 = vor.u32 %v5396_v18, %v4930_v38  ;;  %v5103_v1 = vld [vmem:[%s8137_s1 + $0x2f4] sm:$0xf]  ;;  %v3764_v3 = vld [vmem:[%s8137_s1 + $0x2f8] sm:$0xf0]  ;;  %v3703_v18 = vor.u32 %v5087_v61, %v3700_v0 }
  0xd0   :  { %2911 = vmatpush.bf16.msra.mxu0 %v4955_v20  ;;  %v5011_v20 = vld [vmem:[%s8137_s1 + $0x14] sm:$0xf]  ;;  %v2654_v21 = vadd.f32 %v2653_v17, %v2640_v7  ;;  %v3516_v7 = vld [vmem:[%s8137_s1 + $0x108] sm:$0xf0]  ;;  %v3828_v17 = vld [vmem:[%s8137_s1 + $0x378] sm:$0xf0] }
  0xd1   :  { %2925 = vmatpush.bf16.msra.mxu1 %v3423_v23  ;;  %v5027_v23 = vld [vmem:[%s8137_s1 + $0x94] sm:$0xf]  ;;  %v3399_v39 = vor.u32 %v5011_v20, %v3396_v22  ;;  %v2681_v4 = vpop.f32.mrf.mxu3  ;;  %v5069_v20 = vld [vmem:[%s8137_s1 + $0x1e4] sm:$0xf]  ;;  %v3519_v22 = vor.u32 %v5041_v6, %v3516_v7  ;;  %v3812_v0 = vld [vmem:[%s8137_s1 + $0x358] sm:$0xf0] }
  0xd2   :  { %2939 = vmatpush.bf16.msra.mxu2 %v3487_v24  ;;  %v3460_v24 = vld [vmem:[%s8137_s1 + $0x98] sm:$0xf0]  ;;  %v5099_v61 = vld [vmem:[%s8137_s1 + $0x2d4] sm:$0xf]  ;;  %v3612_v6 = vld [vmem:[%s8137_s1 + $0x1c8] sm:$0xf0] }
  0xd3   :  { %2953 = vmatpush.bf16.msra.mxu3 %v3551_v49  ;;  %v3463_v49 = vor.u32 %v5027_v23, %v3460_v24  ;;  %v3628_v23 = vld [vmem:[%s8137_s1 + $0x1e8] sm:$0xf0]  ;;  %v5085_v24 = vld [vmem:[%s8137_s1 + $0x264] sm:$0xf] }
  0xd4   :  { %2912 = vmatpush.bf16.msra.mxu0 %v4947_v52  ;;  %v3388_v52 = vld [vmem:[%s8137_s1 + $0x8] sm:$0xf0] }
  0xd5   :  { %2926 = vmatpush.bf16.msra.mxu1 %v3415_v55  ;;  %v2667_v55 = vpop.f32.mrf.mxu2  ;;  %v3391_v11 = vor.u32 %v5009_v34, %v3388_v52  ;;  %v3820_v34 = vld [vmem:[%s8137_s1 + $0x368] sm:$0xf0]  ;;  %v5067_v52 = vld [vmem:[%s8137_s1 + $0x1d4] sm:$0xf] }
  0xd6   :  { %2940 = vmatpush.bf16.msra.mxu2 %v3479_v58  ;;  %v5071_v58 = vld [vmem:[%s8137_s1 + $0x1f4] sm:$0xf]  ;;  %v2668_v62 = vadd.f32 %v2667_v55, %v2654_v21  ;;  %v3767_v21 = vor.u32 %v5103_v1, %v3764_v3  ;;  %v3623_v1 = vor.u32 %v5067_v52, %v3620_v54  ;;  %v5077_v54 = vld [vmem:[%s8137_s1 + $0x224] sm:$0xf] }
  0xd7   :  { %2954 = vmatpush.bf16.msra.mxu3 %v3543_v5  ;;  %v4923_v5 = vor.u32 %v5394_v33, %v4922_v29  ;;  %v3639_v38 = vor.u32 %v5071_v58, %v3636_v59  ;;  %v3756_v29 = vld [vmem:[%s8137_s1 + $0x2e8] sm:$0xf0]  ;;  %v5117_v33 = vld [vmem:[%s8137_s1 + $0x364] sm:$0xf]  ;;  %v5083_v55 = vld [vmem:[%s8137_s1 + $0x254] sm:$0xf] }
  0xd8   :  { %2913 = vmatpush.bf16.msra.mxu0 %v4939_v10  ;;  %v7025_v10 = vadd.f32 %v2681_v4, %v2668_v62  ;;  %v3684_v58 = vld [vmem:[%s8137_s1 + $0x258] sm:$0xf0]  ;;  %v3823_v59 = vor.u32 %v5117_v33, %v3820_v34  ;;  %v5065_v4 = vld [vmem:[%s8137_s1 + $0x1c4] sm:$0xf] }
  0xd9   :  { %2927 = vmatpush.bf16.msra.mxu1 %v3407_v15  ;;  %v5008_v15 = vld [vmem:[%s8138_s0 + $0xc0] sm:$0xf0]  ;;  %v3748_v62 = vld [vmem:[%s8137_s1 + $0x2d8] sm:$0xf0]  ;;  %v3687_v3 = vor.u32 %v5083_v55, %v3684_v58  ;;  %v3660_v55 = vld [vmem:[%s8137_s1 + $0x228] sm:$0xf0] }
  0xda   :  { %2941 = vmatpush.bf16.msra.mxu2 %v3471_v16  ;;  %v5119_v16 = vld [vmem:[%s8137_s1 + $0x374] sm:$0xf]  ;;  %v7048_v26 = vor.u32 %v5008_v15, %v3382_v9  ;;  %v5097_v9 = vld [vmem:[%s8137_s1 + $0x2c4] sm:$0xf]  ;;  %v3796_v33 = vld [vmem:[%s8137_s1 + $0x338] sm:$0xf0] }
  0xdb   :  { %2955 = vmatpush.bf16.msra.mxu3 %v3535_v25  ;;  %v3692_v25 = vld [vmem:[%s8137_s1 + $0x268] sm:$0xf0]  ;;  %v3831_v46 = vor.u32 %v5119_v16, %v3828_v17  ;;  %v5113_v15 = vld [vmem:[%s8137_s1 + $0x344] sm:$0xf]  ;;  %v3615_v17 = vor.u32 %v5065_v4, %v3612_v6 }
  0xdc   :  { %2914 = vmatpush.bf16.msra.mxu0 %v4931_v19  ;;  %v5101_v19 = vld [vmem:[%s8137_s1 + $0x2e4] sm:$0xf]  ;;  %v3804_v16 = vld [vmem:[%s8137_s1 + $0x348] sm:$0xf0] }
  0xdd   :  { %2928 = vmatpush.bf16.msra.mxu1 %v3399_v39  ;;  %v3631_v39 = vor.u32 %v5069_v20, %v3628_v23  ;;  %v3759_v53 = vor.u32 %v5101_v19, %v3756_v29  ;;  %v5063_v20 = vld [vmem:[%s8137_s1 + $0x1b4] sm:$0xf]  ;;  %v3732_v19 = vld [vmem:[%s8137_s1 + $0x2b8] sm:$0xf0]  ;;  %v3788_v4 = vld [vmem:[%s8137_s1 + $0x328] sm:$0xf0] }
  0xde   :  { %2942 = vmatpush.bf16.msra.mxu2 %v3463_v49  ;;  %v3695_v49 = vor.u32 %v5085_v24, %v3692_v25  ;;  %v5079_v23 = vld [vmem:[%s8137_s1 + $0x234] sm:$0xf]  ;;  %v3807_v25 = vor.u32 %v5113_v15, %v3804_v16 }
  0xdf   :  { %2956 = vmatpush.bf16.msra.mxu3 %v3527_v63  ;;  %v5115_v63 = vld [vmem:[%s8137_s1 + $0x354] sm:$0xf] }
  0xe0   :  { %2915 = vmatpush.bf16.msra.mxu0 %v4923_v5  ;;  %v3751_v5 = vor.u32 %v5099_v61, %v3748_v62  ;;  %v3815_v7 = vor.u32 %v5115_v63, %v3812_v0  ;;  %v5111_v29 = vld [vmem:[%s8137_s1 + $0x334] sm:$0xf]  ;;  %v5093_v61 = vld [vmem:[%s8137_s1 + $0x2a4] sm:$0xf]  ;;  %v3724_v62 = vld [vmem:[%s8137_s1 + $0x2a8] sm:$0xf0] }
  0xe1   :  { %2929 = vmatpush.bf16.msra.mxu1 %v3391_v11  ;;  %v3740_v11 = vld [vmem:[%s8137_s1 + $0x2c8] sm:$0xf0]  ;;  %v5075_v15 = vld [vmem:[%s8137_s1 + $0x214] sm:$0xf] }
  0xe2   :  { %2943 = vmatpush.bf16.msra.mxu2 %v3455_v12  ;;  %v2693_v12 = vpop.f32.mrf.mxu0 }
  0xe3   :  { %2957 = vmatpush.bf16.msra.mxu3 %v3519_v22  ;;  %2916 = vmatmul.bf16.vlgmr.msra.gmra.mxu0 %v7048_v26  ;;  %v3604_v22 = vld [vmem:[%s8137_s1 + $0x1b8] sm:$0xf0] }
  0xe4   :  { %2964 = vmatpush.bf16.msrb.mxu0 %v3639_v38  ;;  %2930 = vmatmul.bf16.vlgmr.msra.gmra.mxu1 %v5688_v60  ;;  %v3676_v60 = vld [vmem:[%s8137_s1 + $0x248] sm:$0xf0]  ;;  %v3607_v34 = vor.u32 %v5063_v20, %v3604_v22  ;;  %v3780_v20 = vld [vmem:[%s8137_s1 + $0x318] sm:$0xf0] }
  0xe5   :  { %2978 = vmatpush.bf16.msrb.mxu1 %v3703_v18  ;;  %2944 = vmatmul.bf16.vlgmr.msra.gmra.mxu2 %v5718_v8  ;;  %v5081_v8 = vld [vmem:[%s8137_s1 + $0x244] sm:$0xf]  ;;  %v2707_v18 = vpop.f32.mrf.mxu1 }
  0xe6   :  { %2992 = vmatpush.bf16.msrb.mxu2 %v3767_v21  ;;  %2958 = vmatmul.bf16.vlgmr.msra.gmra.mxu3 %v5702_v2  ;;  %v2694_v2 = vadd.f32 %v2693_v12, %v6954_v13  ;;  %v3679_v38 = vor.u32 %v5081_v8, %v3676_v60  ;;  %v3743_v21 = vor.u32 %v5097_v9, %v3740_v11  ;;  %v3668_v13 = vld [vmem:[%s8137_s1 + $0x238] sm:$0xf0] }
  0xe7   :  { %3006 = vmatpush.bf16.msrb.mxu3 %v3831_v46  ;;  %v5095_v46 = vld [vmem:[%s8137_s1 + $0x2b4] sm:$0xf]  ;;  %v3663_v8 = vor.u32 %v5077_v54, %v3660_v55  ;;  %v3727_v11 = vor.u32 %v5093_v61, %v3724_v62  ;;  %v3588_v12 = vld [vmem:[%s8137_s1 + $0x198] sm:$0xf0] }
  0xe8   :  { %2965 = vmatpush.bf16.msrb.mxu0 %v3631_v39  ;;  %v2708_v24 = vadd.f32 %v2707_v18, %v2694_v2  ;;  %v3671_v39 = vor.u32 %v5079_v23, %v3668_v13  ;;  %v3735_v52 = vor.u32 %v5095_v46, %v3732_v19  ;;  %v2721_v58 = vpop.f32.mrf.mxu2  ;;  %v5107_v18 = vld [vmem:[%s8137_s1 + $0x314] sm:$0xf]  ;;  %v5057_v23 = vld [vmem:[%s8137_s1 + $0x184] sm:$0xf]  ;;  %v3580_v13 = vld [vmem:[%s8137_s1 + $0x188] sm:$0xf0] }
  0xe9   :  { %2979 = vmatpush.bf16.msrb.mxu1 %v3695_v49  ;;  %v5061_v49 = vld [vmem:[%s8137_s1 + $0x1a4] sm:$0xf]  ;;  %v3644_v46 = vld [vmem:[%s8137_s1 + $0x208] sm:$0xf0]  ;;  %v3956_v55 = vld [vmem:[%s8137_s1 + $0x478] sm:$0xf0]  ;;  %v3583_v61 = vor.u32 %v5057_v23, %v3580_v13 }
  0xea   :  { %2993 = vmatpush.bf16.msrb.mxu2 %v3759_v53  ;;  %v3596_v53 = vld [vmem:[%s8137_s1 + $0x1a8] sm:$0xf0]  ;;  %v2722_v63 = vadd.f32 %v2721_v58, %v2708_v24  ;;  %v2695_v0 = vpop.f32.mrf.mxu0  ;;  %v5073_v24 = vld [vmem:[%s8137_s1 + $0x204] sm:$0xf]  ;;  %v5167_v58 = vld [vmem:[%s8137_s1 + $0x4f4] sm:$0xf] }
  0xeb   :  { %3007 = vmatpush.bf16.msrb.mxu3 %v3823_v59  ;;  %v3799_v59 = vor.u32 %v5111_v29, %v3796_v33  ;;  %v3599_v6 = vor.u32 %v5061_v49, %v3596_v53  ;;  %v5089_v19 = vld [vmem:[%s8137_s1 + $0x284] sm:$0xf]  ;;  %v3708_v29 = vld [vmem:[%s8137_s1 + $0x288] sm:$0xf0]  ;;  %v3892_v49 = vld [vmem:[%s8137_s1 + $0x3f8] sm:$0xf0]  ;;  %v3647_v62 = vor.u32 %v5073_v24, %v3644_v46 }
  0xec   :  { %2966 = vmatpush.bf16.msrb.mxu0 %v3623_v1  ;;  %v2735_v1 = vpop.f32.mrf.mxu3  ;;  %v3876_v23 = vld [vmem:[%s8137_s1 + $0x3d8] sm:$0xf0]  ;;  %v5147_v24 = vld [vmem:[%s8137_s1 + $0x454] sm:$0xf] }
  0xed   :  { %2980 = vmatpush.bf16.msrb.mxu1 %v3687_v3  ;;  %v5109_v3 = vld [vmem:[%s8137_s1 + $0x324] sm:$0xf]  ;;  %v2709_v60 = vpop.f32.mrf.mxu1  ;;  %v7167_v9 = vadd.f32 %v2735_v1, %v2722_v63 }
  0xee   :  { %2994 = vmatpush.bf16.msrb.mxu2 %v3751_v5  ;;  %v2696_v5 = vadd.f32 %v2695_v0, %v7025_v10  ;;  %v3652_v10 = vld [vmem:[%s8137_s1 + $0x218] sm:$0xf0]  ;;  %v3791_v2 = vor.u32 %v5109_v3, %v3788_v4  ;;  %v5105_v63 = vld [vmem:[%s8137_s1 + $0x304] sm:$0xf]  ;;  %v3772_v0 = vld [vmem:[%s8137_s1 + $0x308] sm:$0xf0]  ;;  %v3711_v3 = vor.u32 %v5089_v19, %v3708_v29 }
  0xef   :  { %3008 = vmatpush.bf16.msrb.mxu3 %v3815_v7  ;;  %v5059_v7 = vld [vmem:[%s8137_s1 + $0x194] sm:$0xf]  ;;  %v3655_v22 = vor.u32 %v5075_v15, %v3652_v10  ;;  %v5149_v15 = vld [vmem:[%s8137_s1 + $0x464] sm:$0xf]  ;;  %v3948_v10 = vld [vmem:[%s8137_s1 + $0x468] sm:$0xf0] }
  0xf0   :  { %2967 = vmatpush.bf16.msrb.mxu0 %v3615_v17  ;;  %v2710_v16 = vadd.f32 %v2709_v60, %v2696_v5  ;;  %v5091_v17 = vld [vmem:[%s8137_s1 + $0x294] sm:$0xf]  ;;  %v2723_v33 = vpop.f32.mrf.mxu2 }
  0xf1   :  { %2981 = vmatpush.bf16.msrb.mxu1 %v3679_v38  ;;  %v3716_v38 = vld [vmem:[%s8137_s1 + $0x298] sm:$0xf0]  ;;  %v5183_v5 = vld [vmem:[%s8137_s1 + $0x574] sm:$0xf] }
  0xf2   :  { %2995 = vmatpush.bf16.msrb.mxu2 %v3743_v21  ;;  %v3591_v21 = vor.u32 %v5059_v7, %v3588_v12  ;;  %v2724_v53 = vadd.f32 %v2723_v33, %v2710_v16  ;;  %v5133_v7 = vld [vmem:[%s8137_s1 + $0x3e4] sm:$0xf]  ;;  %v3775_v12 = vor.u32 %v5105_v63, %v3772_v0  ;;  %v5163_v19 = vld [vmem:[%s8137_s1 + $0x4d4] sm:$0xf] }
  0xf3   :  { %3009 = vmatpush.bf16.msrb.mxu3 %v3807_v25  ;;  %v3719_v25 = vor.u32 %v5091_v17, %v3716_v38  ;;  %v4012_v17 = vld [vmem:[%s8137_s1 + $0x4e8] sm:$0xf0]  ;;  %v5179_v33 = vld [vmem:[%s8137_s1 + $0x554] sm:$0xf] }
  0xf4   :  { %2968 = vmatpush.bf16.msrb.mxu0 %v3607_v34  ;;  %v3783_v34 = vor.u32 %v5107_v18, %v3780_v20  ;;  %v2737_v54 = vpop.f32.mrf.mxu3  ;;  %v5181_v18 = vld [vmem:[%s8137_s1 + $0x564] sm:$0xf]  ;;  %v4076_v20 = vld [vmem:[%s8137_s1 + $0x568] sm:$0xf0] }
  0xf5   :  { %2982 = vmatpush.bf16.msrb.mxu1 %v3671_v39  ;;  %v5135_v39 = vld [vmem:[%s8137_s1 + $0x3f4] sm:$0xf]  ;;  %v7232_v1 = vadd.f32 %v2737_v54, %v2724_v53  ;;  %v4079_v46 = vor.u32 %v5181_v18, %v4076_v20  ;;  %v5161_v54 = vld [vmem:[%s8137_s1 + $0x4c4] sm:$0xf] }
  0xf6   :  { %2996 = vmatpush.bf16.msrb.mxu2 %v3735_v52  ;;  %v5151_v52 = vld [vmem:[%s8137_s1 + $0x474] sm:$0xf]  ;;  %v3895_v4 = vor.u32 %v5135_v39, %v3892_v49  ;;  %v5129_v39 = vld [vmem:[%s8137_s1 + $0x3c4] sm:$0xf] }
  0xf7   :  { %3010 = vmatpush.bf16.msrb.mxu3 %v3799_v59  ;;  %v4020_v59 = vld [vmem:[%s8137_s1 + $0x4f8] sm:$0xf0] }
  0xf8   :  { %2969 = vmatpush.bf16.msrb.mxu0 %v3599_v6  ;;  %v4084_v6 = vld [vmem:[%s8137_s1 + $0x578] sm:$0xf0]  ;;  %v4023_v60 = vor.u32 %v5167_v58, %v4020_v59 }
  0xf9   :  { %2983 = vmatpush.bf16.msrb.mxu1 %v3663_v8  ;;  %v3959_v8 = vor.u32 %v5151_v52, %v3956_v55  ;;  %v4087_v16 = vor.u32 %v5183_v5, %v4084_v6  ;;  %v5145_v52 = vld [vmem:[%s8137_s1 + $0x444] sm:$0xf]  ;;  %v3996_v55 = vld [vmem:[%s8137_s1 + $0x4c8] sm:$0xf0]  ;;  %v3860_v5 = vld [vmem:[%s8137_s1 + $0x3b8] sm:$0xf0] }
  0xfa   :  { %2997 = vmatpush.bf16.msrb.mxu2 %v3727_v11  ;;  %v3884_v11 = vld [vmem:[%s8137_s1 + $0x3e8] sm:$0xf0]  ;;  %v3999_v6 = vor.u32 %v5161_v54, %v3996_v55 }
  0xfb   :  { %3011 = vmatpush.bf16.msrb.mxu3 %v3791_v2  ;;  %v5165_v2 = vld [vmem:[%s8137_s1 + $0x4e4] sm:$0xf]  ;;  %v3887_v38 = vor.u32 %v5133_v7, %v3884_v11  ;;  %v5159_v11 = vld [vmem:[%s8137_s1 + $0x4b4] sm:$0xf] }
  0xfc   :  { %2970 = vmatpush.bf16.msrb.mxu0 %v3591_v21  ;;  %v3951_v21 = vor.u32 %v5149_v15, %v3948_v10  ;;  %v4015_v13 = vor.u32 %v5165_v2, %v4012_v17  ;;  %v5175_v10 = vld [vmem:[%s8137_s1 + $0x534] sm:$0xf]  ;;  %v5125_v17 = vld [vmem:[%s8137_s1 + $0x3a4] sm:$0xf] }
  0xfd   :  { %2984 = vmatpush.bf16.msrb.mxu1 %v3655_v22  ;;  %v5131_v22 = vld [vmem:[%s8137_s1 + $0x3d4] sm:$0xf] }
  0xfe   :  { %2998 = vmatpush.bf16.msrb.mxu2 %v3719_v25  ;;  %v3940_v25 = vld [vmem:[%s8137_s1 + $0x458] sm:$0xf0]  ;;  %v3879_v29 = vor.u32 %v5131_v22, %v3876_v23  ;;  %v3916_v22 = vld [vmem:[%s8137_s1 + $0x428] sm:$0xf0] }
  0xff   :  { %3012 = vmatpush.bf16.msrb.mxu3 %v3783_v34  ;;  %v3943_v34 = vor.u32 %v5147_v24, %v3940_v25  ;;  %v5157_v24 = vld [vmem:[%s8137_s1 + $0x4a4] sm:$0xf]  ;;  %v3980_v25 = vld [vmem:[%s8137_s1 + $0x4a8] sm:$0xf0] }
 0x100   :  { %2971 = vmatpush.bf16.msrb.mxu0 %v3583_v61  ;;  %v2749_v58 = vpop.f32.mrf.mxu0  ;;  %v5177_v61 = vld [vmem:[%s8137_s1 + $0x544] sm:$0xf] }
 0x101   :  { %2985 = vmatpush.bf16.msrb.mxu1 %v3647_v62  ;;  %v4060_v62 = vld [vmem:[%s8137_s1 + $0x548] sm:$0xf0]  ;;  %v2750_v63 = vadd.f32 %v2749_v58, %v7167_v9  ;;  %v3924_v9 = vld [vmem:[%s8137_s1 + $0x438] sm:$0xf0]  ;;  %v5155_v58 = vld [vmem:[%s8137_s1 + $0x494] sm:$0xf] }
 0x102   :  { %2999 = vmatpush.bf16.msrb.mxu2 %v3711_v3  ;;  %v2763_v3 = vpop.f32.mrf.mxu1  ;;  %v4063_v7 = vor.u32 %v5177_v61, %v4060_v62  ;;  %v5171_v61 = vld [vmem:[%s8137_s1 + $0x514] sm:$0xf] }
 0x103   :  { %3013 = vmatpush.bf16.msrb.mxu3 %v3775_v12  ;;  %2972 = vmatmul.bf16.vlgmr.msrb.gmra.mxu0 %v5729_v14  ;;  %v4004_v14 = vld [vmem:[%s8137_s1 + $0x4d8] sm:$0xf0] }
 0x104   :  { %3020 = vmatpush.bf16.msra.mxu0 %v3895_v4  ;;  %2986 = vmatmul.bf16.vlgmr.msrb.gmra.mxu1 %v5901_v36  ;;  %v3868_v36 = vld [vmem:[%s8137_s1 + $0x3c8] sm:$0xf0]  ;;  %v4007_v49 = vor.u32 %v5163_v19, %v4004_v14  ;;  %v5127_v4 = vld [vmem:[%s8137_s1 + $0x3b4] sm:$0xf]  ;;  %v3988_v12 = vld [vmem:[%s8137_s1 + $0x4b8] sm:$0xf0] }
 0x105   :  { %3034 = vmatpush.bf16.msra.mxu1 %v3959_v8  ;;  %3000 = vmatmul.bf16.vlgmr.msrb.gmra.mxu2 %v5920_v44  ;;  %v4068_v44 = vld [vmem:[%s8137_s1 + $0x558] sm:$0xf0]  ;;  %v3871_v59 = vor.u32 %v5129_v39, %v3868_v36  ;;  %v5143_v8 = vld [vmem:[%s8137_s1 + $0x434] sm:$0xf]  ;;  %v3863_v15 = vor.u32 %v5127_v4, %v3860_v5  ;;  %v3991_v18 = vor.u32 %v5159_v11, %v3988_v12  ;;  %v5137_v5 = vld [vmem:[%s8137_s1 + $0x404] sm:$0xf] }
 0x106   :  { %3048 = vmatpush.bf16.msra.mxu2 %v4023_v60  ;;  %3014 = vmatmul.bf16.vlgmr.msrb.gmra.mxu3 %v5912_v40  ;;  %v3932_v40 = vld [vmem:[%s8137_s1 + $0x448] sm:$0xf0]  ;;  %v4071_v53 = vor.u32 %v5179_v33, %v4068_v44  ;;  %v2764_v60 = vadd.f32 %v2763_v3, %v2750_v63  ;;  %v3927_v2 = vor.u32 %v5143_v8, %v3924_v9  ;;  %v4036_v63 = vld [vmem:[%s8137_s1 + $0x518] sm:$0xf0]  ;;  %v5153_v8 = vld [vmem:[%s8137_s1 + $0x484] sm:$0xf] }
 0x107   :  { %3062 = vmatpush.bf16.msra.mxu3 %v4087_v16  ;;  %v3935_v0 = vor.u32 %v5145_v52, %v3932_v40  ;;  %v4052_v16 = vld [vmem:[%s8137_s1 + $0x538] sm:$0xf0]  ;;  %v4044_v33 = vld [vmem:[%s8137_s1 + $0x528] sm:$0xf0]  ;;  %v3983_v40 = vor.u32 %v5157_v24, %v3980_v25  ;;  %v5199_v11 = vld [vmem:[%s8137_s1 + $0x5f4] sm:$0xf] }
 0x108   :  { %3021 = vmatpush.bf16.msra.mxu0 %v3887_v38  ;;  %v3852_v38 = vld [vmem:[%s8137_s1 + $0x3a8] sm:$0xf0]  ;;  %v2777_v20 = vpop.f32.mrf.mxu2  ;;  %v3844_v52 = vld [vmem:[%s8137_s1 + $0x398] sm:$0xf0]  ;;  %v5247_v25 = vld [vmem:[%s8137_s1 + $0x774] sm:$0xf] }
 0x109   :  { %3035 = vmatpush.bf16.msra.mxu1 %v3951_v21  ;;  %v5141_v21 = vld [vmem:[%s8137_s1 + $0x424] sm:$0xf]  ;;  %v2778_v23 = vadd.f32 %v2777_v20, %v2764_v60  ;;  %v2791_v19 = vpop.f32.mrf.mxu3  ;;  %v3855_v14 = vor.u32 %v5125_v17, %v3852_v38  ;;  %v3836_v3 = vld [vmem:[%s8137_s1 + $0x388] sm:$0xf0]  ;;  %v4148_v12 = vld [vmem:[%s8137_s1 + $0x5f8] sm:$0xf0] }
 0x10a   :  { %3049 = vmatpush.bf16.msra.mxu2 %v4015_v13  ;;  %v4055_v13 = vor.u32 %v5175_v10, %v4052_v16  ;;  %v3919_v39 = vor.u32 %v5141_v21, %v3916_v22  ;;  %v2765_v36 = vpop.f32.mrf.mxu1  ;;  %v4039_v10 = vor.u32 %v5171_v61, %v4036_v63  ;;  %v5215_v16 = vld [vmem:[%s8137_s1 + $0x674] sm:$0xf]  ;;  %v4276_v20 = vld [vmem:[%s8137_s1 + $0x6f8] sm:$0xf0]  ;;  %v5169_v21 = vld [vmem:[%s8137_s1 + $0x504] sm:$0xf]  ;;  %v4151_v24 = vor.u32 %v5199_v11, %v4148_v12 }
 0x10b   :  { %3063 = vmatpush.bf16.msra.mxu3 %v4079_v46  ;;  %v2751_v46 = vpop.f32.mrf.mxu0  ;;  %v5231_v17 = vld [vmem:[%s8137_s1 + $0x6f4] sm:$0xf]  ;;  %v4028_v22 = vld [vmem:[%s8137_s1 + $0x508] sm:$0xf0]  ;;  %v5225_v12 = vld [vmem:[%s8137_s1 + $0x6c4] sm:$0xf] }
 0x10c   :  { %3022 = vmatpush.bf16.msra.mxu0 %v3879_v29  ;;  %v5173_v29 = vld [vmem:[%s8137_s1 + $0x524] sm:$0xf]  ;;  %v2752_v44 = vadd.f32 %v2751_v46, %v7232_v1  ;;  %v3908_v1 = vld [vmem:[%s8137_s1 + $0x418] sm:$0xf0]  ;;  %v5195_v61 = vld [vmem:[%s8137_s1 + $0x5d4] sm:$0xf] }
 0x10d   :  { %3036 = vmatpush.bf16.msra.mxu1 %v3943_v34  ;;  %v7366_v34 = vadd.f32 %v2791_v19, %v2778_v23  ;;  %v4047_v55 = vor.u32 %v5173_v29, %v4044_v33  ;;  %v4340_v46 = vld [vmem:[%s8137_s1 + $0x778] sm:$0xf0]  ;;  %v4279_v29 = vor.u32 %v5231_v17, %v4276_v20  ;;  %v4031_v33 = vor.u32 %v5169_v21, %v4028_v22  ;;  %v5211_v63 = vld [vmem:[%s8137_s1 + $0x654] sm:$0xf]  ;;  %v4188_v11 = vld [vmem:[%s8137_s1 + $0x648] sm:$0xf0] }
 0x10e   :  { %3050 = vmatpush.bf16.msra.mxu2 %v4007_v49  ;;  %v5123_v49 = vld [vmem:[%s8137_s1 + $0x394] sm:$0xf]  ;;  %v2766_v54 = vadd.f32 %v2765_v36, %v2752_v44  ;;  %v5197_v44 = vld [vmem:[%s8137_s1 + $0x5e4] sm:$0xf] }
 0x10f   :  { %3064 = vmatpush.bf16.msra.mxu3 %v4071_v53  ;;  %v5139_v53 = vld [vmem:[%s8137_s1 + $0x414] sm:$0xf]  ;;  %v3847_v62 = vor.u32 %v5123_v49, %v3844_v52  ;;  %v5213_v36 = vld [vmem:[%s8137_s1 + $0x664] sm:$0xf]  ;;  %v4343_v49 = vor.u32 %v5247_v25, %v4340_v46  ;;  %v4204_v52 = vld [vmem:[%s8137_s1 + $0x668] sm:$0xf0] }
 0x110   :  { %3023 = vmatpush.bf16.msra.mxu0 %v3871_v59  ;;  %v3972_v59 = vld [vmem:[%s8137_s1 + $0x498] sm:$0xf0]  ;;  %v3911_v4 = vor.u32 %v5139_v53, %v3908_v1  ;;  %v2779_v60 = vpop.f32.mrf.mxu2  ;;  %v4268_v53 = vld [vmem:[%s8137_s1 + $0x6e8] sm:$0xf0]  ;;  %v5245_v1 = vld [vmem:[%s8137_s1 + $0x764] sm:$0xf] }
 0x111   :  { %3037 = vmatpush.bf16.msra.mxu1 %v3935_v0  ;;  %v5121_v0 = vld [vmem:[%s8137_s1 + $0x384] sm:$0xf]  ;;  %v3975_v9 = vor.u32 %v5155_v58, %v3972_v59  ;;  %v2793_v38 = vpop.f32.mrf.mxu3  ;;  %v4207_v58 = vor.u32 %v5213_v36, %v4204_v52  ;;  %v5191_v22 = vld [vmem:[%s8137_s1 + $0x5b4] sm:$0xf]  ;;  %v4108_v52 = vld [vmem:[%s8137_s1 + $0x5a8] sm:$0xf0] }
 0x112   :  { %3051 = vmatpush.bf16.msra.mxu2 %v3999_v6  ;;  %v3900_v6 = vld [vmem:[%s8137_s1 + $0x408] sm:$0xf0]  ;;  %v5223_v46 = vld [vmem:[%s8137_s1 + $0x6b4] sm:$0xf] }
 0x113   :  { %3065 = vmatpush.bf16.msra.mxu3 %v4063_v7  ;;  %v3964_v7 = vld [vmem:[%s8137_s1 + $0x488] sm:$0xf0] }
 0x114   :  { %3024 = vmatpush.bf16.msra.mxu0 %v3863_v15  ;;  %v2780_v15 = vadd.f32 %v2779_v60, %v2766_v54  ;;  %v3967_v19 = vor.u32 %v5153_v8, %v3964_v7  ;;  %v4332_v54 = vld [vmem:[%s8137_s1 + $0x768] sm:$0xf0]  ;;  %v5209_v7 = vld [vmem:[%s8137_s1 + $0x644] sm:$0xf] }
 0x115   :  { %3038 = vmatpush.bf16.msra.mxu1 %v3927_v2  ;;  %v4212_v2 = vld [vmem:[%s8137_s1 + $0x678] sm:$0xf0] }
 0x116   :  { %3052 = vmatpush.bf16.msra.mxu2 %v3991_v18  ;;  %v3839_v18 = vor.u32 %v5121_v0, %v3836_v3  ;;  %v7434_v23 = vadd.f32 %v2793_v38, %v2780_v15  ;;  %v4335_v0 = vor.u32 %v5245_v1, %v4332_v54  ;;  %v4196_v3 = vld [vmem:[%s8137_s1 + $0x658] sm:$0xf0]  ;;  %v4252_v15 = vld [vmem:[%s8137_s1 + $0x6c8] sm:$0xf0] }
 0x117   :  { %3066 = vmatpush.bf16.msra.mxu3 %v4055_v13  ;;  %v3903_v13 = vor.u32 %v5137_v5, %v3900_v6  ;;  %v4260_v5 = vld [vmem:[%s8137_s1 + $0x6d8] sm:$0xf0]  ;;  %v4255_v20 = vor.u32 %v5225_v12, %v4252_v15  ;;  %v5235_v12 = vld [vmem:[%s8137_s1 + $0x714] sm:$0xf] }
 0x118   :  { %3025 = vmatpush.bf16.msra.mxu0 %v3855_v14  ;;  %v4215_v14 = vor.u32 %v5215_v16, %v4212_v2  ;;  %v4324_v6 = vld [vmem:[%s8137_s1 + $0x758] sm:$0xf0]  ;;  %v4316_v16 = vld [vmem:[%s8137_s1 + $0x748] sm:$0xf0] }
 0x119   :  { %3039 = vmatpush.bf16.msra.mxu1 %v3919_v39  ;;  %v4140_v39 = vld [vmem:[%s8137_s1 + $0x5e8] sm:$0xf0]  ;;  %v4292_v15 = vld [vmem:[%s8137_s1 + $0x718] sm:$0xf0] }
 0x11a   :  { %3053 = vmatpush.bf16.msra.mxu2 %v3983_v40  ;;  %v5229_v40 = vld [vmem:[%s8137_s1 + $0x6e4] sm:$0xf] }
 0x11b   :  { %3067 = vmatpush.bf16.msra.mxu3 %v4047_v55  ;;  %v4143_v55 = vor.u32 %v5197_v44, %v4140_v39  ;;  %v4271_v59 = vor.u32 %v5229_v40, %v4268_v53  ;;  %v5189_v39 = vld [vmem:[%s8137_s1 + $0x5a4] sm:$0xf]  ;;  %v4172_v53 = vld [vmem:[%s8137_s1 + $0x628] sm:$0xf0] }
 0x11c   :  { %3026 = vmatpush.bf16.msra.mxu0 %v3847_v62  ;;  %v4132_v62 = vld [vmem:[%s8137_s1 + $0x5d8] sm:$0xf0]  ;;  %v5205_v40 = vld [vmem:[%s8137_s1 + $0x624] sm:$0xf] }
 0x11d   :  { %3040 = vmatpush.bf16.msra.mxu1 %v3911_v4  ;;  %v5227_v4 = vld [vmem:[%s8137_s1 + $0x6d4] sm:$0xf]  ;;  %v4135_v8 = vor.u32 %v5195_v61, %v4132_v62  ;;  %v5237_v61 = vld [vmem:[%s8137_s1 + $0x724] sm:$0xf]  ;;  %v4300_v62 = vld [vmem:[%s8137_s1 + $0x728] sm:$0xf0] }
 0x11e   :  { %3054 = vmatpush.bf16.msra.mxu2 %v3975_v9  ;;  %v4199_v9 = vor.u32 %v5211_v63, %v4196_v3  ;;  %v4263_v60 = vor.u32 %v5227_v4, %v4260_v5  ;;  %v4111_v3 = vor.u32 %v5189_v39, %v4108_v52  ;;  %v4175_v4 = vor.u32 %v5205_v40, %v4172_v53  ;;  %v4532_v39 = vld [vmem:[%s8137_s1 + $0x8f8] sm:$0xf0] }
 0x11f   :  { %3068 = vmatpush.bf16.msra.mxu3 %v4039_v10  ;;  %v5241_v10 = vld [vmem:[%s8137_s1 + $0x744] sm:$0xf] }
 0x120   :  { %3027 = vmatpush.bf16.msra.mxu0 %v3839_v18  ;;  %v2805_v2 = vpop.f32.mrf.mxu0  ;;  %v4191_v18 = vor.u32 %v5209_v7, %v4188_v11  ;;  %v4319_v25 = vor.u32 %v5241_v10, %v4316_v16  ;;  %v5219_v7 = vld [vmem:[%s8137_s1 + $0x694] sm:$0xf]  ;;  %v5185_v16 = vld [vmem:[%s8137_s1 + $0x584] sm:$0xf] }
 0x121   :  { %3041 = vmatpush.bf16.msra.mxu1 %v3903_v13  ;;  %v2806_v38 = vadd.f32 %v2805_v2, %v7366_v34  ;;  %v2819_v21 = vpop.f32.mrf.mxu1  ;;  %v4116_v13 = vld [vmem:[%s8137_s1 + $0x5b8] sm:$0xf0]  ;;  %v4092_v2 = vld [vmem:[%s8137_s1 + $0x588] sm:$0xf0] }
 0x122   :  { %3055 = vmatpush.bf16.msra.mxu2 %v3967_v19  ;;  %v4180_v34 = vld [vmem:[%s8137_s1 + $0x638] sm:$0xf0]  ;;  %v4119_v44 = vor.u32 %v5191_v22, %v4116_v13  ;;  %v4295_v13 = vor.u32 %v5235_v12, %v4292_v15  ;;  %v5291_v12 = vld [vmem:[%s8137_s1 + $0x8d4] sm:$0xf] }
 0x123   :  { %3069 = vmatpush.bf16.msra.mxu3 %v4031_v33  ;;  %3028 = vmatmul.bf16.vlgmr.msra.gmra.mxu0 %v5928_v48  ;;  %v5243_v48 = vld [vmem:[%s8137_s1 + $0x754] sm:$0xf]  ;;  %v4244_v19 = vld [vmem:[%s8137_s1 + $0x6b8] sm:$0xf0] }
 0x124   :  { %3076 = vmatpush.bf16.msrb.mxu0 %v4151_v24  ;;  %3042 = vmatmul.bf16.vlgmr.msra.gmra.mxu1 %v6135_v30  ;;  %v5193_v30 = vld [vmem:[%s8137_s1 + $0x5c4] sm:$0xf]  ;;  %v5207_v24 = vld [vmem:[%s8137_s1 + $0x634] sm:$0xf]  ;;  %v4308_v33 = vld [vmem:[%s8137_s1 + $0x738] sm:$0xf0] }
 0x125   :  { %3090 = vmatpush.bf16.msrb.mxu1 %v4215_v14  ;;  %3056 = vmatmul.bf16.vlgmr.msra.gmra.mxu2 %v6148_v37  ;;  %v4124_v37 = vld [vmem:[%s8137_s1 + $0x5c8] sm:$0xf0]  ;;  %v2820_v14 = vadd.f32 %v2819_v21, %v2806_v38  ;;  %v4183_v36 = vor.u32 %v5207_v24, %v4180_v34  ;;  %v5217_v21 = vld [vmem:[%s8137_s1 + $0x684] sm:$0xf]  ;;  %v4404_v34 = vld [vmem:[%s8137_s1 + $0x7f8] sm:$0xf0] }
 0x126   :  { %3104 = vmatpush.bf16.msrb.mxu2 %v4279_v29  ;;  %3070 = vmatmul.bf16.vlgmr.msra.gmra.mxu3 %v6146_v35  ;;  %v4327_v35 = vor.u32 %v5243_v48, %v4324_v6  ;;  %v4127_v17 = vor.u32 %v5193_v30, %v4124_v37  ;;  %v5239_v29 = vld [vmem:[%s8137_s1 + $0x734] sm:$0xf]  ;;  %v4303_v37 = vor.u32 %v5237_v61, %v4300_v62  ;;  %v4220_v24 = vld [vmem:[%s8137_s1 + $0x688] sm:$0xf0]  ;;  %v5261_v62 = vld [vmem:[%s8137_s1 + $0x7e4] sm:$0xf] }
 0x127   :  { %3118 = vmatpush.bf16.msrb.mxu3 %v4343_v49  ;;  %v4247_v49 = vor.u32 %v5223_v46, %v4244_v19  ;;  %v4311_v54 = vor.u32 %v5239_v29, %v4308_v33  ;;  %v5203_v30 = vld [vmem:[%s8137_s1 + $0x614] sm:$0xf]  ;;  %v4223_v53 = vor.u32 %v5217_v21, %v4220_v24  ;;  %v4516_v15 = vld [vmem:[%s8137_s1 + $0x8d8] sm:$0xf0]  ;;  %v4508_v21 = vld [vmem:[%s8137_s1 + $0x8c8] sm:$0xf0] }
 0x128   :  { %3077 = vmatpush.bf16.msrb.mxu0 %v4143_v55  ;;  %v2833_v1 = vpop.f32.mrf.mxu2  ;;  %v5221_v55 = vld [vmem:[%s8137_s1 + $0x6a4] sm:$0xf]  ;;  %v2807_v63 = vpop.f32.mrf.mxu0  ;;  %v5279_v19 = vld [vmem:[%s8137_s1 + $0x874] sm:$0xf] }
 0x129   :  { %3091 = vmatpush.bf16.msrb.mxu1 %v4207_v58  ;;  %v4236_v58 = vld [vmem:[%s8137_s1 + $0x6a8] sm:$0xf0]  ;;  %v2808_v5 = vadd.f32 %v2807_v63, %v7434_v23  ;;  %v4164_v23 = vld [vmem:[%s8137_s1 + $0x618] sm:$0xf0]  ;;  %v5295_v29 = vld [vmem:[%s8137_s1 + $0x8f4] sm:$0xf] }
 0x12a   :  { %3105 = vmatpush.bf16.msrb.mxu2 %v4271_v59  ;;  %v2834_v59 = vadd.f32 %v2833_v1, %v2820_v14  ;;  %v4239_v6 = vor.u32 %v5221_v55, %v4236_v58  ;;  %v4468_v14 = vld [vmem:[%s8137_s1 + $0x878] sm:$0xf0]  ;;  %v5311_v55 = vld [vmem:[%s8137_s1 + $0x974] sm:$0xf]  ;;  %v4396_v63 = vld [vmem:[%s8137_s1 + $0x7e8] sm:$0xf0] }
 0x12b   :  { %3119 = vmatpush.bf16.msrb.mxu3 %v4335_v0  ;;  %v2847_v0 = vpop.f32.mrf.mxu3  ;;  %v4596_v58 = vld [vmem:[%s8137_s1 + $0x978] sm:$0xf0] }
 0x12c   :  { %3078 = vmatpush.bf16.msrb.mxu0 %v4135_v8  ;;  %v7568_v48 = vadd.f32 %v2847_v0, %v2834_v59  ;;  %v2821_v8 = vpop.f32.mrf.mxu1  ;;  %v4535_v59 = vor.u32 %v5295_v29, %v4532_v39  ;;  %v5277_v0 = vld [vmem:[%s8137_s1 + $0x864] sm:$0xf]  ;;  %v5271_v39 = vld [vmem:[%s8137_s1 + $0x834] sm:$0xf] }
 0x12d   :  { %3092 = vmatpush.bf16.msrb.mxu1 %v4199_v9  ;;  %v5187_v9 = vld [vmem:[%s8137_s1 + $0x594] sm:$0xf]  ;;  %v2822_v11 = vadd.f32 %v2821_v8, %v2808_v5  ;;  %v4524_v5 = vld [vmem:[%s8137_s1 + $0x8e8] sm:$0xf0]  ;;  %v4399_v8 = vor.u32 %v5261_v62, %v4396_v63  ;;  %v5269_v63 = vld [vmem:[%s8137_s1 + $0x824] sm:$0xf] }
 0x12e   :  { %3106 = vmatpush.bf16.msrb.mxu2 %v4263_v60  ;;  %v4100_v60 = vld [vmem:[%s8137_s1 + $0x598] sm:$0xf0]  ;;  %v4364_v62 = vld [vmem:[%s8137_s1 + $0x7a8] sm:$0xf0] }
 0x12f   :  { %3120 = vmatpush.bf16.msrb.mxu3 %v4327_v35  ;;  %v4228_v35 = vld [vmem:[%s8137_s1 + $0x698] sm:$0xf0]  ;;  %v4103_v10 = vor.u32 %v5187_v9, %v4100_v60  ;;  %v5309_v9 = vld [vmem:[%s8137_s1 + $0x964] sm:$0xf]  ;;  %v4588_v60 = vld [vmem:[%s8137_s1 + $0x968] sm:$0xf0] }
 0x130   :  { %3079 = vmatpush.bf16.msrb.mxu0 %v4127_v17  ;;  %v4167_v17 = vor.u32 %v5203_v30, %v4164_v23  ;;  %v4231_v38 = vor.u32 %v5219_v7, %v4228_v35  ;;  %v2835_v22 = vpop.f32.mrf.mxu2  ;;  %v5259_v23 = vld [vmem:[%s8137_s1 + $0x7d4] sm:$0xf]  ;;  %v4388_v7 = vld [vmem:[%s8137_s1 + $0x7d8] sm:$0xf0] }
 0x131   :  { %3093 = vmatpush.bf16.msrb.mxu1 %v4191_v18  ;;  %v5201_v18 = vld [vmem:[%s8137_s1 + $0x604] sm:$0xf]  ;;  %v2836_v46 = vadd.f32 %v2835_v22, %v2822_v11  ;;  %v5275_v35 = vld [vmem:[%s8137_s1 + $0x854] sm:$0xf]  ;;  %v4452_v11 = vld [vmem:[%s8137_s1 + $0x858] sm:$0xf0] }
 0x132   :  { %3107 = vmatpush.bf16.msrb.mxu2 %v4255_v20  ;;  %v4156_v20 = vld [vmem:[%s8137_s1 + $0x608] sm:$0xf0] }
 0x133   :  { %3121 = vmatpush.bf16.msrb.mxu3 %v4319_v25  ;;  %v5263_v25 = vld [vmem:[%s8137_s1 + $0x7f4] sm:$0xf]  ;;  %v2849_v33 = vpop.f32.mrf.mxu3  ;;  %v4159_v40 = vor.u32 %v5201_v18, %v4156_v20  ;;  %v4444_v18 = vld [vmem:[%s8137_s1 + $0x848] sm:$0xf0]  ;;  %v5289_v20 = vld [vmem:[%s8137_s1 + $0x8c4] sm:$0xf] }
 0x134   :  { %3080 = vmatpush.bf16.msrb.mxu0 %v4119_v44  ;;  %v4095_v44 = vor.u32 %v5185_v16, %v4092_v2  ;;  %v7636_v52 = vadd.f32 %v2849_v33, %v2836_v46  ;;  %v4407_v1 = vor.u32 %v5263_v25, %v4404_v34  ;;  %v4580_v16 = vld [vmem:[%s8137_s1 + $0x958] sm:$0xf0]  ;;  %v4455_v2 = vor.u32 %v5275_v35, %v4452_v11  ;;  %v5305_v25 = vld [vmem:[%s8137_s1 + $0x944] sm:$0xf]  ;;  %v4572_v34 = vld [vmem:[%s8137_s1 + $0x948] sm:$0xf0] }
 0x135   :  { %3094 = vmatpush.bf16.msrb.mxu1 %v4183_v36  ;;  %v5233_v36 = vld [vmem:[%s8137_s1 + $0x704] sm:$0xf]  ;;  %v5255_v33 = vld [vmem:[%s8137_s1 + $0x7b4] sm:$0xf] }
 0x136   :  { %3108 = vmatpush.bf16.msrb.mxu2 %v4247_v49  ;;  %v4284_v49 = vld [vmem:[%s8137_s1 + $0x708] sm:$0xf0] }
 0x137   :  { %3122 = vmatpush.bf16.msrb.mxu3 %v4311_v54  ;;  %v4471_v54 = vor.u32 %v5279_v19, %v4468_v14  ;;  %v4287_v61 = vor.u32 %v5233_v36, %v4284_v49  ;;  %v4511_v14 = vor.u32 %v5289_v20, %v4508_v21  ;;  %v4436_v36 = vld [vmem:[%s8137_s1 + $0x838] sm:$0xf0]  ;;  %v5249_v20 = vld [vmem:[%s8137_s1 + $0x784] sm:$0xf]  ;;  %v4348_v21 = vld [vmem:[%s8137_s1 + $0x788] sm:$0xf0] }
 0x138   :  { %3081 = vmatpush.bf16.msrb.mxu0 %v4111_v3  ;;  %v4460_v3 = vld [vmem:[%s8137_s1 + $0x868] sm:$0xf0]  ;;  %v4500_v49 = vld [vmem:[%s8137_s1 + $0x8b8] sm:$0xf0] }
 0x139   :  { %3095 = vmatpush.bf16.msrb.mxu1 %v4175_v4  ;;  %v5293_v4 = vld [vmem:[%s8137_s1 + $0x8e4] sm:$0xf]  ;;  %v4463_v30 = vor.u32 %v5277_v0, %v4460_v3  ;;  %v4428_v0 = vld [vmem:[%s8137_s1 + $0x828] sm:$0xf0] }
 0x13a   :  { %3109 = vmatpush.bf16.msrb.mxu2 %v4239_v6  ;;  %v4599_v6 = vor.u32 %v5311_v55, %v4596_v58  ;;  %v4564_v55 = vld [vmem:[%s8137_s1 + $0x938] sm:$0xf0]  ;;  %v5253_v58 = vld [vmem:[%s8137_s1 + $0x7a4] sm:$0xf] }
 0x13b   :  { %3123 = vmatpush.bf16.msrb.mxu3 %v4303_v37  ;;  %v4527_v37 = vor.u32 %v5293_v4, %v4524_v5  ;;  %v5285_v4 = vld [vmem:[%s8137_s1 + $0x8a4] sm:$0xf]  ;;  %v4492_v5 = vld [vmem:[%s8137_s1 + $0x8a8] sm:$0xf0] }
 0x13c   :  { %3082 = vmatpush.bf16.msrb.mxu0 %v4103_v10  ;;  %v4591_v10 = vor.u32 %v5309_v9, %v4588_v60 }
 0x13d   :  { %3096 = vmatpush.bf16.msrb.mxu1 %v4167_v17  ;;  %v4519_v17 = vor.u32 %v5291_v12, %v4516_v15  ;;  %v4495_v12 = vor.u32 %v5285_v4, %v4492_v5  ;;  %v5325_v5 = vld [vmem:[%s8137_s1 + $0x9e4] sm:$0xf] }
 0x13e   :  { %3110 = vmatpush.bf16.msrb.mxu2 %v4231_v38  ;;  %v5273_v38 = vld [vmem:[%s8137_s1 + $0x844] sm:$0xf] }
 0x13f   :  { %3124 = vmatpush.bf16.msrb.mxu3 %v4295_v13  ;;  %v4447_v19 = vor.u32 %v5273_v38, %v4444_v18  ;;  %v4548_v18 = vld [vmem:[%s8137_s1 + $0x918] sm:$0xf0] }
 0x140   :  { %3083 = vmatpush.bf16.msrb.mxu0 %v4095_v44  ;;  %v2861_v13 = vpop.f32.mrf.mxu0  ;;  %v4372_v44 = vld [vmem:[%s8137_s1 + $0x7b8] sm:$0xf0] }
 0x141   :  { %3097 = vmatpush.bf16.msrb.mxu1 %v4159_v40  ;;  %v2862_v46 = vadd.f32 %v2861_v13, %v7568_v48  ;;  %v2875_v29 = vpop.f32.mrf.mxu1  ;;  %v5287_v48 = vld [vmem:[%s8137_s1 + $0x8b4] sm:$0xf] }
 0x142   :  { %3111 = vmatpush.bf16.msrb.mxu2 %v4223_v53  ;;  %v4575_v53 = vor.u32 %v5305_v25, %v4572_v34  ;;  %v4412_v25 = vld [vmem:[%s8137_s1 + $0x808] sm:$0xf0]  ;;  %v5281_v34 = vld [vmem:[%s8137_s1 + $0x884] sm:$0xf] }
 0x143   :  { %3125 = vmatpush.bf16.msrb.mxu3 %v4287_v61  ;;  %3084 = vmatmul.bf16.vlgmr.msrb.gmra.mxu0 %v6156_v41  ;;  %v4391_v41 = vor.u32 %v5259_v23, %v4388_v7  ;;  %v2876_v40 = vadd.f32 %v2875_v29, %v2862_v46  ;;  %v4503_v61 = vor.u32 %v5287_v48, %v4500_v49  ;;  %v5301_v23 = vld [vmem:[%s8137_s1 + $0x924] sm:$0xf]  ;;  %v4556_v7 = vld [vmem:[%s8137_s1 + $0x928] sm:$0xf0]  ;;  %v4660_v29 = vld [vmem:[%s8137_s1 + $0x9f8] sm:$0xf0] }
 0x144   :  { %3132 = vmatpush.bf16.msra.mxu0 %v4407_v1  ;;  %3098 = vmatmul.bf16.vlgmr.msrb.gmra.mxu1 %v6363_v31  ;;  %v5257_v31 = vld [vmem:[%s8137_s1 + $0x7c4] sm:$0xf]  ;;  %v4375_v1 = vor.u32 %v5255_v33, %v4372_v44  ;;  %v5359_v48 = vld [vmem:[%s8137_s1 + $0xaf4] sm:$0xf] }
 0x145   :  { %3146 = vmatpush.bf16.msra.mxu1 %v4471_v54  ;;  %3112 = vmatmul.bf16.vlgmr.msrb.gmra.mxu2 %v6376_v42  ;;  %v5307_v42 = vld [vmem:[%s8137_s1 + $0x954] sm:$0xf] }
 0x146   :  { %3160 = vmatpush.bf16.msra.mxu2 %v4535_v59  ;;  %3126 = vmatmul.bf16.vlgmr.msrb.gmra.mxu3 %v6365_v32  ;;  %v4380_v32 = vld [vmem:[%s8137_s1 + $0x7c8] sm:$0xf0]  ;;  %v4583_v22 = vor.u32 %v5307_v42, %v4580_v16  ;;  %v5303_v54 = vld [vmem:[%s8137_s1 + $0x934] sm:$0xf]  ;;  %v4439_v59 = vor.u32 %v5271_v39, %v4436_v36  ;;  %v4724_v36 = vld [vmem:[%s8137_s1 + $0xa78] sm:$0xf0] }
 0x147   :  { %3174 = vmatpush.bf16.msra.mxu3 %v4599_v6  ;;  %v4383_v24 = vor.u32 %v5257_v31, %v4380_v32  ;;  %v5267_v42 = vld [vmem:[%s8137_s1 + $0x814] sm:$0xf]  ;;  %v4559_v31 = vor.u32 %v5301_v23, %v4556_v7  ;;  %v5373_v7 = vld [vmem:[%s8137_s1 + $0xb64] sm:$0xf] }
 0x148   :  { %3133 = vmatpush.bf16.msra.mxu0 %v4399_v8  ;;  %v2889_v3 = vpop.f32.mrf.mxu2  ;;  %v4567_v8 = vor.u32 %v5303_v54, %v4564_v55  ;;  %v2863_v9 = vpop.f32.mrf.mxu0  ;;  %v5283_v16 = vld [vmem:[%s8137_s1 + $0x894] sm:$0xf]  ;;  %v4540_v54 = vld [vmem:[%s8137_s1 + $0x908] sm:$0xf0] }
 0x149   :  { %3147 = vmatpush.bf16.msra.mxu1 %v4463_v30  ;;  %v2890_v6 = vadd.f32 %v2889_v3, %v2876_v40  ;;  %v2903_v60 = vpop.f32.mrf.mxu3  ;;  %v4367_v30 = vor.u32 %v5253_v58, %v4364_v62  ;;  %v2864_v35 = vadd.f32 %v2863_v9, %v7636_v52  ;;  %v2877_v15 = vpop.f32.mrf.mxu1  ;;  %v4420_v52 = vld [vmem:[%s8137_s1 + $0x818] sm:$0xf0]  ;;  %v5299_v32 = vld [vmem:[%s8137_s1 + $0x914] sm:$0xf]  ;;  %v4351_v40 = vor.u32 %v5249_v20, %v4348_v21  ;;  %v4716_v9 = vld [vmem:[%s8137_s1 + $0xa68] sm:$0xf0] }
 0x14a   :  { %3161 = vmatpush.bf16.msra.mxu2 %v4527_v37  ;;  %v4431_v37 = vor.u32 %v5269_v63, %v4428_v0  ;;  %v4551_v44 = vor.u32 %v5299_v32, %v4548_v18  ;;  %v5343_v39 = vld [vmem:[%s8137_s1 + $0xa74] sm:$0xf]  ;;  %v4852_v0 = vld [vmem:[%s8137_s1 + $0xb78] sm:$0xf0]  ;;  %v5337_v18 = vld [vmem:[%s8137_s1 + $0xa44] sm:$0xf] }
 0x14b   :  { %3175 = vmatpush.bf16.msra.mxu3 %v4591_v10  ;;  %v7770_v11 = vadd.f32 %v2903_v60, %v2890_v6  ;;  %v5251_v10 = vld [vmem:[%s8137_s1 + $0x794] sm:$0xf]  ;;  %v4727_v62 = vor.u32 %v5343_v39, %v4724_v36  ;;  %v4652_v6 = vld [vmem:[%s8137_s1 + $0x9e8] sm:$0xf0]  ;;  %v5357_v60 = vld [vmem:[%s8137_s1 + $0xae4] sm:$0xf] }
 0x14c   :  { %3134 = vmatpush.bf16.msra.mxu0 %v4391_v41  ;;  %v4356_v41 = vld [vmem:[%s8137_s1 + $0x798] sm:$0xf0]  ;;  %v5375_v63 = vld [vmem:[%s8137_s1 + $0xb74] sm:$0xf]  ;;  %v4655_v23 = vor.u32 %v5325_v5, %v4652_v6  ;;  %v4700_v20 = vld [vmem:[%s8137_s1 + $0xa48] sm:$0xf0] }
 0x14d   :  { %3148 = vmatpush.bf16.msra.mxu1 %v4455_v2  ;;  %v4484_v2 = vld [vmem:[%s8137_s1 + $0x898] sm:$0xf0]  ;;  %v4359_v38 = vor.u32 %v5251_v10, %v4356_v41  ;;  %v5323_v10 = vld [vmem:[%s8137_s1 + $0x9d4] sm:$0xf]  ;;  %v5353_v21 = vld [vmem:[%s8137_s1 + $0xac4] sm:$0xf] }
 0x14e   :  { %3162 = vmatpush.bf16.msra.mxu2 %v4519_v17  ;;  %v2878_v17 = vadd.f32 %v2877_v15, %v2864_v35  ;;  %v4487_v13 = vor.u32 %v5283_v16, %v4484_v2  ;;  %v4844_v35 = vld [vmem:[%s8137_s1 + $0xb68] sm:$0xf0]  ;;  %v4644_v41 = vld [vmem:[%s8137_s1 + $0x9d8] sm:$0xf0]  ;;  %v5355_v16 = vld [vmem:[%s8137_s1 + $0xad4] sm:$0xf] }
 0x14f   :  { %3176 = vmatpush.bf16.msra.mxu3 %v4583_v22  ;;  %v4423_v22 = vor.u32 %v5267_v42, %v4420_v52  ;;  %v5339_v42 = vld [vmem:[%s8137_s1 + $0xa54] sm:$0xf]  ;;  %v4708_v52 = vld [vmem:[%s8137_s1 + $0xa58] sm:$0xf0] }
 0x150   :  { %3135 = vmatpush.bf16.msra.mxu0 %v4383_v24  ;;  %v5265_v24 = vld [vmem:[%s8137_s1 + $0x804] sm:$0xf]  ;;  %v2891_v46 = vpop.f32.mrf.mxu2  ;;  %v4772_v2 = vld [vmem:[%s8137_s1 + $0xad8] sm:$0xf0]  ;;  %v4711_v32 = vor.u32 %v5339_v42, %v4708_v52  ;;  %v5335_v39 = vld [vmem:[%s8137_s1 + $0xa34] sm:$0xf] }
 0x151   :  { %3149 = vmatpush.bf16.msra.mxu1 %v4447_v19  ;;  %v4476_v19 = vld [vmem:[%s8137_s1 + $0x888] sm:$0xf0]  ;;  %v2892_v33 = vadd.f32 %v2891_v46, %v2878_v17  ;;  %v2905_v49 = vpop.f32.mrf.mxu3  ;;  %v4415_v58 = vor.u32 %v5265_v24, %v4412_v25  ;;  %v4847_v17 = vor.u32 %v5373_v7, %v4844_v35  ;;  %v4692_v36 = vld [vmem:[%s8137_s1 + $0xa38] sm:$0xf0]  ;;  %v5331_v35 = vld [vmem:[%s8137_s1 + $0xa14] sm:$0xf] }
 0x152   :  { %3163 = vmatpush.bf16.msra.mxu2 %v4511_v14  ;;  %v5327_v14 = vld [vmem:[%s8137_s1 + $0x9f4] sm:$0xf]  ;;  %v4828_v46 = vld [vmem:[%s8137_s1 + $0xb48] sm:$0xf0]  ;;  %v4612_v7 = vld [vmem:[%s8137_s1 + $0x998] sm:$0xf0] }
 0x153   :  { %3177 = vmatpush.bf16.msra.mxu3 %v4575_v53  ;;  %v4788_v53 = vld [vmem:[%s8137_s1 + $0xaf8] sm:$0xf0]  ;;  %v7838_v55 = vadd.f32 %v2905_v49, %v2892_v33  ;;  %v5319_v33 = vld [vmem:[%s8137_s1 + $0x9b4] sm:$0xf] }
 0x154   :  { %3136 = vmatpush.bf16.msra.mxu0 %v4375_v1  ;;  %v5297_v1 = vld [vmem:[%s8137_s1 + $0x904] sm:$0xf]  ;;  %v4791_v3 = vor.u32 %v5359_v48, %v4788_v53  ;;  %v4756_v48 = vld [vmem:[%s8137_s1 + $0xab8] sm:$0xf0]  ;;  %v5367_v53 = vld [vmem:[%s8137_s1 + $0xb34] sm:$0xf] }
 0x155   :  { %3150 = vmatpush.bf16.msra.mxu1 %v4439_v59  ;;  %v4479_v59 = vor.u32 %v5281_v34, %v4476_v19  ;;  %v4543_v4 = vor.u32 %v5297_v1, %v4540_v54  ;;  %v5369_v34 = vld [vmem:[%s8137_s1 + $0xb44] sm:$0xf]  ;;  %v4820_v1 = vld [vmem:[%s8137_s1 + $0xb38] sm:$0xf0]  ;;  %v4695_v54 = vor.u32 %v5335_v39, %v4692_v36  ;;  %v5363_v42 = vld [vmem:[%s8137_s1 + $0xb14] sm:$0xf] }
 0x156   :  { %3164 = vmatpush.bf16.msra.mxu2 %v4503_v61  ;;  %v4663_v61 = vor.u32 %v5327_v14, %v4660_v29  ;;  %v4703_v14 = vor.u32 %v5337_v18, %v4700_v20  ;;  %v4831_v49 = vor.u32 %v5369_v34, %v4828_v46  ;;  %v4804_v52 = vld [vmem:[%s8137_s1 + $0xb18] sm:$0xf0]  ;;  %v5407_v20 = vld [vmem:[%s8137_s1 + $0xc74] sm:$0xf]  ;;  %v5405_v39 = vld [vmem:[%s8137_s1 + $0xc64] sm:$0xf] }
 0x157   :  { %3178 = vmatpush.bf16.msra.mxu3 %v4567_v8  ;;  %v5341_v8 = vld [vmem:[%s8137_s1 + $0xa64] sm:$0xf]  ;;  %v4916_v18 = vld [vmem:[%s8137_s1 + $0xbf8] sm:$0xf0]  ;;  %v4972_v36 = vld [vmem:[%s8137_s1 + $0xc68] sm:$0xf0] }
 0x158   :  { %3137 = vmatpush.bf16.msra.mxu0 %v4367_v30  ;;  %v4780_v30 = vld [vmem:[%s8137_s1 + $0xae8] sm:$0xf0] }
 0x159   :  { %3151 = vmatpush.bf16.msra.mxu1 %v4431_v37  ;;  %v4855_v37 = vor.u32 %v5375_v63, %v4852_v0  ;;  %v4783_v15 = vor.u32 %v5357_v60, %v4780_v30  ;;  %v4684_v63 = vld [vmem:[%s8137_s1 + $0xa28] sm:$0xf0]  ;;  %v5349_v0 = vld [vmem:[%s8137_s1 + $0xaa4] sm:$0xf] }
 0x15a   :  { %3165 = vmatpush.bf16.msra.mxu2 %v4495_v12  ;;  %v4719_v12 = vor.u32 %v5341_v8, %v4716_v9  ;;  %v5365_v8 = vld [vmem:[%s8137_s1 + $0xb24] sm:$0xf]  ;;  %v4812_v9 = vld [vmem:[%s8137_s1 + $0xb28] sm:$0xf0] }
 0x15b   :  { %3179 = vmatpush.bf16.msra.mxu3 %v4559_v31  ;;  %v4836_v31 = vld [vmem:[%s8137_s1 + $0xb58] sm:$0xf0] }
 0x15c   :  { %3138 = vmatpush.bf16.msra.mxu0 %v4359_v38  ;;  %v4775_v38 = vor.u32 %v5355_v16, %v4772_v2  ;;  %v5313_v16 = vld [vmem:[%s8137_s1 + $0x984] sm:$0xf] }
 0x15d   :  { %3152 = vmatpush.bf16.msra.mxu1 %v4423_v22  ;;  %v4764_v22 = vld [vmem:[%s8137_s1 + $0xac8] sm:$0xf0] }
 0x15e   :  { %3166 = vmatpush.bf16.msra.mxu2 %v4487_v13  ;;  %v4767_v29 = vor.u32 %v5353_v21, %v4764_v22  ;;  %v4980_v21 = vld [vmem:[%s8137_s1 + $0xc78] sm:$0xf0] }
 0x15f   :  { %3180 = vmatpush.bf16.msra.mxu3 %v4551_v44  ;;  %v4628_v44 = vld [vmem:[%s8137_s1 + $0x9b8] sm:$0xf0] }
 0x160   :  { %3139 = vmatpush.bf16.msra.mxu0 %v4351_v40  ;;  %v2917_v24 = vpop.f32.mrf.mxu0  ;;  %v4631_v40 = vor.u32 %v5319_v33, %v4628_v44  ;;  %v5389_v33 = vld [vmem:[%s8137_s1 + $0xbe4] sm:$0xf]  ;;  %v4908_v44 = vld [vmem:[%s8137_s1 + $0xbe8] sm:$0xf0] }
 0x161   :  { %3153 = vmatpush.bf16.msra.mxu1 %v4415_v58  ;;  %v7923_v19 = vadd.f32 %v2917_v24, %v7770_v11  ;;  %v5351_v11 = vld [vmem:[%s8137_s1 + $0xab4] sm:$0xf]  ;;  %v4796_v24 = vld [vmem:[%s8137_s1 + $0xb08] sm:$0xf0] }
 0x162   :  { %3167 = vmatpush.bf16.msra.mxu2 %v4479_v59  ;;  %v4759_v58 = vor.u32 %v5351_v11, %v4756_v48  ;;  %v5317_v59 = vld [vmem:[%s8137_s1 + $0x9a4] sm:$0xf]  ;;  %v4911_v11 = vor.u32 %v5389_v33, %v4908_v44  ;;  %v4975_v48 = vor.u32 %v5405_v39, %v4972_v36 }
 0x163   :  { %3181 = vmatpush.bf16.msra.mxu3 %v4543_v4  ;;  %3140 = vmatmul.bf16.vlgmr.msra.gmra.mxu0 %v6378_v43  ;;  %v4647_v43 = vor.u32 %v5323_v10, %v4644_v41  ;;  %v4823_v4 = vor.u32 %v5367_v53, %v4820_v1  ;;  %v4815_v10 = vor.u32 %v5365_v8, %v4812_v9  ;;  %v5403_v53 = vld [vmem:[%s8137_s1 + $0xc54] sm:$0xf]  ;;  %v4876_v8 = vld [vmem:[%s8137_s1 + $0xba8] sm:$0xf0]  ;;  %v5397_v9 = vld [vmem:[%s8137_s1 + $0xc24] sm:$0xf] }
 0x164   :  { %3188 = vmatpush.bf16.msrb.mxu0 %v4663_v61  ;;  %3154 = vmatmul.bf16.vlgmr.msra.gmra.mxu1 %v6591_v50  ;;  %v5321_v50 = vld [vmem:[%s8137_s1 + $0x9c4] sm:$0xf]  ;;  %v4620_v61 = vld [vmem:[%s8137_s1 + $0x9a8] sm:$0xf0] }
 0x165   :  { %3202 = vmatpush.bf16.msrb.mxu1 %v4727_v62  ;;  %3168 = vmatmul.bf16.vlgmr.msra.gmra.mxu2 %v6604_v56  ;;  %v5371_v56 = vld [vmem:[%s8137_s1 + $0xb54] sm:$0xf]  ;;  %v5333_v62 = vld [vmem:[%s8137_s1 + $0xa24] sm:$0xf]  ;;  %v4623_v6 = vor.u32 %v5317_v59, %v4620_v61 }
 0x166   :  { %3216 = vmatpush.bf16.msrb.mxu2 %v4791_v3  ;;  %3182 = vmatmul.bf16.vlgmr.msra.gmra.mxu3 %v6593_v51  ;;  %v4636_v51 = vld [vmem:[%s8137_s1 + $0x9c8] sm:$0xf0]  ;;  %v4839_v13 = vor.u32 %v5371_v56, %v4836_v31  ;;  %v4687_v30 = vor.u32 %v5333_v62, %v4684_v63  ;;  %v5329_v56 = vld [vmem:[%s8137_s1 + $0xa04] sm:$0xf]  ;;  %v5383_v62 = vld [vmem:[%s8137_s1 + $0xbb4] sm:$0xf] }
 0x167   :  { %3230 = vmatpush.bf16.msrb.mxu3 %v4855_v37  ;;  %v4639_v25 = vor.u32 %v5321_v50, %v4636_v51  ;;  %v4748_v3 = vld [vmem:[%s8137_s1 + $0xaa8] sm:$0xf0]  ;;  %v5391_v50 = vld [vmem:[%s8137_s1 + $0xbf4] sm:$0xf]  ;;  %v4807_v51 = vor.u32 %v5363_v42, %v4804_v52  ;;  %v4884_v63 = vld [vmem:[%s8137_s1 + $0xbb8] sm:$0xf0] }
 0x168   :  { %3189 = vmatpush.bf16.msrb.mxu0 %v4655_v23  ;;  %v2919_v5 = vpop.f32.mrf.mxu0  ;;  %v4751_v37 = vor.u32 %v5349_v0, %v4748_v3  ;;  %v5315_v23 = vld [vmem:[%s8137_s1 + $0x994] sm:$0xf]  ;;  %v4668_v31 = vld [vmem:[%s8137_s1 + $0xa08] sm:$0xf0]  ;;  %v4919_v46 = vor.u32 %v5391_v50, %v4916_v18  ;;  %v4948_v3 = vld [vmem:[%s8137_s1 + $0xc38] sm:$0xf0] }
 0x169   :  { %3203 = vmatpush.bf16.msrb.mxu1 %v4719_v12  ;;  %v7974_v60 = vadd.f32 %v2919_v5, %v7838_v55  ;;  %v4676_v12 = vld [vmem:[%s8137_s1 + $0xa18] sm:$0xf0]  ;;  %v5347_v55 = vld [vmem:[%s8137_s1 + $0xa94] sm:$0xf]  ;;  %v4615_v41 = vor.u32 %v5315_v23, %v4612_v7  ;;  %v4860_v42 = vld [vmem:[%s8137_s1 + $0xb88] sm:$0xf0] }
 0x16a   :  { %3217 = vmatpush.bf16.msrb.mxu2 %v4783_v15  ;;  %v4740_v15 = vld [vmem:[%s8137_s1 + $0xa98] sm:$0xf0]  ;;  %v4679_v2 = vor.u32 %v5331_v35, %v4676_v12  ;;  %v5399_v0 = vld [vmem:[%s8137_s1 + $0xc34] sm:$0xf]  ;;  %v5393_v52 = vld [vmem:[%s8137_s1 + $0xc04] sm:$0xf] }
 0x16b   :  { %3231 = vmatpush.bf16.msrb.mxu3 %v4847_v17  ;;  %v4743_v17 = vor.u32 %v5347_v55, %v4740_v15  ;;  %v4951_v5 = vor.u32 %v5399_v0, %v4948_v3  ;;  %v5379_v7 = vld [vmem:[%s8137_s1 + $0xb94] sm:$0xf]  ;;  %v4868_v35 = vld [vmem:[%s8137_s1 + $0xb98] sm:$0xf0] }
 0x16c   :  { %3190 = vmatpush.bf16.msrb.mxu0 %v4647_v43  ;;  %v4604_v43 = vld [vmem:[%s8137_s1 + $0x988] sm:$0xf0]  ;;  %v5395_v12 = vld [vmem:[%s8137_s1 + $0xc14] sm:$0xf]  ;;  %v4932_v55 = vld [vmem:[%s8137_s1 + $0xc18] sm:$0xf0]  ;;  %v4871_v15 = vor.u32 %v5379_v7, %v4868_v35 }
 0x16d   :  { %3204 = vmatpush.bf16.msrb.mxu1 %v4711_v32  ;;  %v5345_v32 = vld [vmem:[%s8137_s1 + $0xa84] sm:$0xf]  ;;  %v4607_v22 = vor.u32 %v5313_v16, %v4604_v43  ;;  %v4924_v16 = vld [vmem:[%s8137_s1 + $0xc08] sm:$0xf0]  ;;  %v2931_v43 = vpop.f32.mrf.mxu1 }
 0x16e   :  { %3218 = vmatpush.bf16.msrb.mxu2 %v4775_v38  ;;  %v4732_v38 = vld [vmem:[%s8137_s1 + $0xa88] sm:$0xf0] }
 0x16f   :  { %3232 = vmatpush.bf16.msrb.mxu3 %v4839_v13  ;;  %v5361_v13 = vld [vmem:[%s8137_s1 + $0xb04] sm:$0xf]  ;;  %v4735_v34 = vor.u32 %v5345_v32, %v4732_v38  ;;  %v2959_v32 = vpop.f32.mrf.mxu3 }
 0x170   :  { %3191 = vmatpush.bf16.msrb.mxu0 %v4639_v25  ;;  %v4671_v25 = vor.u32 %v5329_v56, %v4668_v31  ;;  %v2945_v56 = vpop.f32.mrf.mxu2 }
 0x171   :  { %3205 = vmatpush.bf16.msrb.mxu1 %v4703_v14  ;;  %v4983_v14 = vor.u32 %v5407_v20, %v4980_v21 }
 0x172   :  { %3219 = vmatpush.bf16.msrb.mxu2 %v4767_v29  ;;  %v4799_v29 = vor.u32 %v5361_v13, %v4796_v24  ;;  %v5409_v24 = vld [vmem:[%s8139_s2] sm:$0x3] }
 0x173   :  { %3233 = vmatpush.bf16.msrb.mxu3 %v4831_v49  ;;  %v5387_v49 = vld [vmem:[%s8137_s1 + $0xbd4] sm:$0xf] }
 0x174   :  { %3192 = vmatpush.bf16.msrb.mxu0 %v4631_v40  ;;  %v4900_v40 = vld [vmem:[%s8137_s1 + $0xbd8] sm:$0xf0] }
 0x175   :  { %3206 = vmatpush.bf16.msrb.mxu1 %v4695_v54  ;;  %v4903_v1 = vor.u32 %v5387_v49, %v4900_v40  ;;  %v2933_v31 = vpop.f32.mrf.mxu1 }
 0x176   :  { %3220 = vmatpush.bf16.msrb.mxu2 %v4759_v58  ;;  %v5401_v58 = vld [vmem:[%s8137_s1 + $0xc44] sm:$0xf] }
 0x177   :  { %3234 = vmatpush.bf16.msrb.mxu3 %v4823_v4  ;;  %v4887_v4 = vor.u32 %v5383_v62, %v4884_v63  ;;  %v2961_v18 = vpop.f32.mrf.mxu3 }
 0x178   :  { %3193 = vmatpush.bf16.msrb.mxu0 %v4623_v6  ;;  %v5381_v6 = vld [vmem:[%s8137_s1 + $0xba4] sm:$0xf]  ;;  %v2947_v38 = vpop.f32.mrf.mxu2 }
 0x179   :  { %3207 = vmatpush.bf16.msrb.mxu1 %v4687_v30  ;;  %v4940_v30 = vld [vmem:[%s8137_s1 + $0xc28] sm:$0xf0] }
 0x17a   :  { %3221 = vmatpush.bf16.msrb.mxu2 %v4751_v37  ;;  %v4879_v37 = vor.u32 %v5381_v6, %v4876_v8  ;;  %v4943_v23 = vor.u32 %v5397_v9, %v4940_v30 }
 0x17b   :  { %3235 = vmatpush.bf16.msrb.mxu3 %v4815_v10  ;;  %v4935_v10 = vor.u32 %v5395_v12, %v4932_v55 }
 0x17c   :  { %3194 = vmatpush.bf16.msrb.mxu0 %v4615_v41  ;;  %v5377_v41 = vld [vmem:[%s8137_s1 + $0xb84] sm:$0xf] }
 0x17d   :  { %3208 = vmatpush.bf16.msrb.mxu1 %v4679_v2  ;;  %v4863_v2 = vor.u32 %v5377_v41, %v4860_v42 }
 0x17e   :  { %3222 = vmatpush.bf16.msrb.mxu2 %v4743_v17  ;;  %v4927_v17 = vor.u32 %v5393_v52, %v4924_v16 }
 0x17f   :  { %3236 = vmatpush.bf16.msrb.mxu3 %v4807_v51 }
 0x180   :  { %3195 = vmatpush.bf16.msrb.mxu0 %v4607_v22  ;;  %v2973_v50 = vpop.f32.mrf.mxu0 }
 0x181   :  { %3209 = vmatpush.bf16.msrb.mxu1 %v4671_v25  ;;  %v2987_v51 = vpop.f32.mrf.mxu1  ;;  %v443_v25 = vperm.slane %v5409_v24, 1 }
 0x182   :  { %3223 = vmatpush.bf16.msrb.mxu2 %v4735_v34 }
 0x183   :  { %3237 = vmatpush.bf16.msrb.mxu3 %v4799_v29  ;;  %3196 = vmatmul.bf16.vlgmr.msrb.gmra.mxu0 %v6606_v57  ;;  %v4964_v57 = vld [vmem:[%s8137_s1 + $0xc58] sm:$0xf0]  ;;  %v2934_v36 = vadd.f32 %v2933_v31, %v443_v25 }
 0x184   :  { %3244 = vmatpush.bf16.msra.mxu0 %v4919_v46  ;;  %3210 = vmatmul.bf16.vlgmr.msrb.gmra.mxu1 %v6827_v27  ;;  %v4967_v54 = vor.u32 %v5403_v53, %v4964_v57  ;;  %v4892_v27 = vld [vmem:[%s8137_s1 + $0xbc8] sm:$0xf0] }
 0x185   :  { %3258 = vmatpush.bf16.msra.mxu1 %v4983_v14  ;;  %3224 = vmatmul.bf16.vlgmr.msrb.gmra.mxu2 %v6842_v45  ;;  %v5385_v45 = vld [vmem:[%s8137_s1 + $0xbc4] sm:$0xf]  ;;  %v2948_v40 = vadd.f32 %v2947_v38, %v2934_v36 }
 0x186   :  { %3238 = vmatmul.bf16.vlgmr.msrb.gmra.mxu3 %v6829_v28  ;;  %v4956_v28 = vld [vmem:[%s8137_s1 + $0xc48] sm:$0xf0]  ;;  %v4895_v59 = vor.u32 %v5385_v45, %v4892_v27 }
 0x187   :  { %v4959_v61 = vor.u32 %v5401_v58, %v4956_v28 }
 0x188   :  { %3245 = vmatpush.bf16.msra.mxu0 %v4911_v11  ;;  %v3001_v20 = vpop.f32.mrf.mxu2  ;;  %v2975_v21 = vpop.f32.mrf.mxu0 }
 0x189   :  { %3259 = vmatpush.bf16.msra.mxu1 %v4975_v48  ;;  %v2989_v22 = vpop.f32.mrf.mxu1  ;;  %v3015_v13 = vpop.f32.mrf.mxu3 }
 0x18c   :  { %3246 = vmatpush.bf16.msra.mxu0 %v4903_v1 }
 0x18d   :  { %3260 = vmatpush.bf16.msra.mxu1 %v4967_v54  ;;  %v2962_v54 = vadd.f32 %v2961_v18, %v2948_v40 }
 0x18f   :  { %v2976_v58 = vadd.f32 %v2975_v21, %v2962_v54 }
 0x190   :  { %3247 = vmatpush.bf16.msra.mxu0 %v4895_v59  ;;  %v3003_v34 = vpop.f32.mrf.mxu2 }
 0x191   :  { %3261 = vmatpush.bf16.msra.mxu1 %v4959_v61  ;;  %v3017_v29 = vpop.f32.mrf.mxu3  ;;  %v2990_v61 = vadd.f32 %v2989_v22, %v2976_v58 }
 0x193   :  { %v3004_v0 = vadd.f32 %v3003_v34, %v2990_v61 }
 0x194   :  { %3248 = vmatpush.bf16.msra.mxu0 %v4887_v4 }
 0x195   :  { %3262 = vmatpush.bf16.msra.mxu1 %v4951_v5  ;;  %v3018_v8 = vadd.f32 %v3017_v29, %v3004_v0 }
 0x198   :  { %3249 = vmatpush.bf16.msra.mxu0 %v4879_v37 }
 0x199   :  { %3263 = vmatpush.bf16.msra.mxu1 %v4943_v23 }
 0x19c   :  { %3250 = vmatpush.bf16.msra.mxu0 %v4871_v15 }
 0x19d   :  { %3264 = vmatpush.bf16.msra.mxu1 %v4935_v10 }
 0x1a0   :  { %3251 = vmatpush.bf16.msra.mxu0 %v4863_v2 }
 0x1a1   :  { %3265 = vmatpush.bf16.msra.mxu1 %v4927_v17  ;;  %v3043_v46 = vpop.f32.mrf.mxu1 }
 0x1a3   :  { %3252 = vmatmul.bf16.vlgmr.msra.gmra.mxu0 %v6844_v47  ;;  %v2932_v47 = vadd.f32 %v2931_v43, %v443_v25 }
 0x1a4   :  { %3266 = vmatmul.bf16.vlgmr.msra.gmra.mxu1 %v7048_v26  ;;  %v3029_v26 = vpop.f32.mrf.mxu0 }
 0x1a5   :  { %v2946_v14 = vadd.f32 %v2945_v56, %v2932_v47 }
 0x1a7   :  { %v2960_v33 = vadd.f32 %v2959_v32, %v2946_v14 }
 0x1a8   :  { %v3057_v44 = vpop.f32.mrf.mxu2 }
 0x1a9   :  { %v2974_v11 = vadd.f32 %v2973_v50, %v2960_v33  ;;  %v3045_v48 = vpop.f32.mrf.mxu1  ;;  %v3071_v49 = vpop.f32.mrf.mxu3 }
 0x1ab   :  { %v2988_v53 = vadd.f32 %v2987_v51, %v2974_v11 }
 0x1ac   :  { %v3031_v39 = vpop.f32.mrf.mxu0 }
 0x1ad   :  { %v3002_v45 = vadd.f32 %v3001_v20, %v2988_v53  ;;  %v3032_v30 = vadd.f32 %v3031_v39, %v3018_v8 }
 0x1af   :  { %v3016_v59 = vadd.f32 %v3015_v13, %v3002_v45  ;;  %v3046_v35 = vadd.f32 %v3045_v48, %v3032_v30 }
 0x1b0   :  { %v3059_v57 = vpop.f32.mrf.mxu2 }
 0x1b1   :  { %v3073_v28 = vpop.f32.mrf.mxu3  ;;  %v3030_v62 = vadd.f32 %v3029_v26, %v3016_v59  ;;  %v3060_v15 = vadd.f32 %v3059_v57, %v3046_v35 }
 0x1b3   :  { %v3044_v4 = vadd.f32 %v3043_v46, %v3030_v62  ;;  %v3074_v42 = vadd.f32 %v3073_v28, %v3060_v15  ;;  %v3272_v28 = vmax.f32 %v7923_v19, 0.0 }
 0x1b5   :  { %v3058_v9 = vadd.f32 %v3057_v44, %v3044_v4 }
 0x1b7   :  { %v3072_v37 = vadd.f32 %v3071_v49, %v3058_v9 }
 0x1c0   :  { %v3085_v1 = vpop.f32.mrf.mxu0 }
 0x1c1   :  { %v3099_v27 = vpop.f32.mrf.mxu1  ;;  %v3086_v12 = vadd.f32 %v3085_v1, %v3072_v37 }
 0x1c3   :  { %v3100_v41 = vadd.f32 %v3099_v27, %v3086_v12 }
 0x1c8   :  { %v3113_v63 = vpop.f32.mrf.mxu2  ;;  %v3087_v3 = vpop.f32.mrf.mxu0 }
 0x1c9   :  { %v3101_v5 = vpop.f32.mrf.mxu1  ;;  %v3127_v6 = vpop.f32.mrf.mxu3  ;;  %v3114_v52 = vadd.f32 %v3113_v63, %v3100_v41  ;;  %v3088_v2 = vadd.f32 %v3087_v3, %v3074_v42 }
 0x1cb   :  { %v3128_v43 = vadd.f32 %v3127_v6, %v3114_v52  ;;  %v3102_v32 = vadd.f32 %v3101_v5, %v3088_v2  ;;  %v3274_v5 = vmax.f32 %v7974_v60, 0.0 }
 0x1d0   :  { %v3115_v23 = vpop.f32.mrf.mxu2 }
 0x1d1   :  { %v3129_v10 = vpop.f32.mrf.mxu3  ;;  %v3116_v50 = vadd.f32 %v3115_v23, %v3102_v32 }
 0x1d3   :  { %v3130_v21 = vadd.f32 %v3129_v10, %v3116_v50 }
 0x1e0   :  { %v3141_v7 = vpop.f32.mrf.mxu0 }
 0x1e1   :  { %v3155_v55 = vpop.f32.mrf.mxu1  ;;  %v3142_v38 = vadd.f32 %v3141_v7, %v3128_v43 }
 0x1e3   :  { %v3156_v51 = vadd.f32 %v3155_v55, %v3142_v38 }
 0x1e8   :  { %v3169_v16 = vpop.f32.mrf.mxu2  ;;  %v3143_v17 = vpop.f32.mrf.mxu0 }
 0x1e9   :  { %v3157_v56 = vpop.f32.mrf.mxu1  ;;  %v3183_v31 = vpop.f32.mrf.mxu3  ;;  %v3170_v22 = vadd.f32 %v3169_v16, %v3156_v51  ;;  %v3144_v24 = vadd.f32 %v3143_v17, %v3130_v21 }
 0x1eb   :  { %v3184_v47 = vadd.f32 %v3183_v31, %v3170_v22  ;;  %v3158_v34 = vadd.f32 %v3157_v56, %v3144_v24 }
 0x1f0   :  { %v3171_v18 = vpop.f32.mrf.mxu2 }
 0x1f1   :  { %v3185_v25 = vpop.f32.mrf.mxu3  ;;  %v3172_v14 = vadd.f32 %v3171_v18, %v3158_v34 }
 0x1f3   :  { %v3186_v36 = vadd.f32 %v3185_v25, %v3172_v14 }
 0x200   :  { %v3197_v20 = vpop.f32.mrf.mxu0 }
 0x201   :  { %v3211_v13 = vpop.f32.mrf.mxu1  ;;  %v3198_v26 = vadd.f32 %v3197_v20, %v3184_v47 }
 0x203   :  { %v3212_v33 = vadd.f32 %v3211_v13, %v3198_v26 }
 0x208   :  { %v3225_v46 = vpop.f32.mrf.mxu2  ;;  %v3199_v29 = vpop.f32.mrf.mxu0 }
 0x209   :  { %v3213_v44 = vpop.f32.mrf.mxu1  ;;  %v3239_v39 = vpop.f32.mrf.mxu3  ;;  %v3226_v11 = vadd.f32 %v3225_v46, %v3212_v33  ;;  %v3200_v48 = vadd.f32 %v3199_v29, %v3186_v36 }
 0x20b   :  { %v3240_v49 = vadd.f32 %v3239_v39, %v3226_v11  ;;  %v3214_v57 = vadd.f32 %v3213_v44, %v3200_v48 }
 0x210   :  { %v3227_v40 = vpop.f32.mrf.mxu2 }
 0x211   :  { %v3228_v45 = vadd.f32 %v3227_v40, %v3214_v57  ;;  %v3241_v58 = vpop.f32.mrf.mxu3 }
 0x213   :  { %v3242_v61 = vadd.f32 %v3241_v58, %v3228_v45 }
 0x220   :  { %v3253_v53 = vpop.f32.mrf.mxu0 }
 0x221   :  { %v3254_v1 = vadd.f32 %v3253_v53, %v3240_v49  ;;  %v3267_v54 = vpop.f32.mrf.mxu1 }
 0x223   :  { %v3268_v27 = vadd.f32 %v3267_v54, %v3254_v1 }
 0x225   :  { %v3273_v59 = vmax.f32 %v3268_v27, 0.0 }
 0x227   :  { %v3276_v62 = vpack.c.bf16 %v3273_v59, %v3272_v28 }
 0x228   :  { %v3255_v63 = vpop.f32.mrf.mxu0 }
 0x229   :  { %3278 = vst [vmem:[%s8140_s3] sm:$0xff] %v3276_v62  ;;  %v3256_v0 = vadd.f32 %v3255_v63, %v3242_v61  ;;  %v3269_v3 = vpop.f32.mrf.mxu1 }
 0x22b   :  { %v3270_v4 = vadd.f32 %v3269_v3, %v3256_v0 }
 0x22d   :  { %v3275_v6 = vmax.f32 %v3270_v4, 0.0 }
 0x22f   :  { %v3277_v8 = vpack.c.bf16 %v3275_v6, %v3274_v5 }
 0x231   :  { %3279 = vst [vmem:[%s8140_s3 + $0x8] sm:$0xff] %v3277_v8 }

</bundles_post_ra>
